<compile_context>
chip_gen: v7x
topology: tpu7x:2x2x1
jax: 0.10.0
libtpu: 0.0.40
codegen_flags: <defaults>
</compile_context>

<pallas_src>
import functools
import math

import jax
import jax.numpy as jnp
from jax.experimental import pallas as pl
from jax.experimental.pallas import tpu as pltpu

LN_EPS = 1e-12            # BertConfig.layer_norm_eps default
MASK_VALUE = -10000.0     # HF extended-attention-mask fill value
_GELU_C = 0.7978845608028654   # sqrt(2/pi)
ACT_DTYPE = jnp.bfloat16  # inter-kernel activation dtype
_VMEM_LIMIT = 64 * 1024 * 1024  # <= physical VMEM on every generation (v7x = 64 MiB)


def _fit(dim, target, align):
    """Largest tile <= target that is a multiple of `align` and divides `dim`
    exactly; falls back to the full dimension when no aligned divisor exists.
    # TODO(synk): remainder tiles (masked epilogue) for dims with no aligned
    # divisor; real BERT shapes (N = B*512, D/I multiples of 128) never hit it."""
    if dim <= target:
        return dim
    for t in range(target, align - 1, -align):
        if dim % t == 0:
            return t
    return dim


def _gelu(x):
    # TODO(synk): HF BERT default act is erf-gelu; tanh approximation is used
    # because erf lowering is not guaranteed in Mosaic.
    return 0.5 * x * (1.0 + jnp.tanh(_GELU_C * (x + 0.044715 * x * x * x)))


# ----------------------------------------------------------------------------
# Kernel 1: tiled matmul + bias (+ optional GELU), K-accumulated, bf16 out
# ----------------------------------------------------------------------------
def _matmul_kernel(x_ref, w_ref, b_ref, o_ref, acc_ref, *, activation):
    @pl.when(pl.program_id(2) == 0)
    def _():
        acc_ref[...] = jnp.zeros_like(acc_ref)

    acc_ref[...] += jnp.dot(x_ref[...], w_ref[...],
                            preferred_element_type=jnp.float32)

    @pl.when(pl.program_id(2) == pl.num_programs(2) - 1)
    def _():
        y = acc_ref[...] + b_ref[...].astype(jnp.float32)
        if activation == "gelu":
            y = _gelu(y)
        o_ref[...] = y.astype(o_ref.dtype)


def dense(x, w, b, activation=None, *, tm=1024, tn=1024, tk=512):
    n, kdim = x.shape
    dout = w.shape[1]
    tm = _fit(n, tm, 8)
    tn = dout if dout <= 1536 else _fit(dout, tn, 128)  # full-width weight when it fits
    tk = _fit(kdim, tk, 128)
    grid = (pl.cdiv(n, tm), pl.cdiv(dout, tn), pl.cdiv(kdim, tk))
    return pl.pallas_call(
        functools.partial(_matmul_kernel, activation=activation),
        grid=grid,
        in_specs=[
            pl.BlockSpec((tm, tk), lambda m, nn, k: (m, k)),
            pl.BlockSpec((tk, tn), lambda m, nn, k: (k, nn)),
            pl.BlockSpec((1, tn), lambda m, nn, k: (0, nn)),
        ],
        out_specs=pl.BlockSpec((tm, tn), lambda m, nn, k: (m, nn)),
        out_shape=jax.ShapeDtypeStruct((n, dout), ACT_DTYPE),
        scratch_shapes=[pltpu.VMEM((tm, tn), jnp.float32)],
        compiler_params=pltpu.CompilerParams(
            dimension_semantics=("parallel", "parallel", "arbitrary"),
            vmem_limit_bytes=_VMEM_LIMIT),
    )(x, w, b.reshape(1, dout))


# ----------------------------------------------------------------------------
# Kernel 2: matmul + bias + residual + LayerNorm (attention output projection)
# Full-K, full-width weight kept resident; grid over row tiles only.
# ----------------------------------------------------------------------------
def _matmul_res_ln_kernel(x_ref, w_ref, b_ref, r_ref, g_ref, bb_ref, o_ref):
    y = jnp.dot(x_ref[...], w_ref[...], preferred_element_type=jnp.float32)
    y = y + b_ref[...].astype(jnp.float32) + r_ref[...].astype(jnp.float32)
    mu = jnp.mean(y, axis=-1, keepdims=True)
    var = jnp.mean((y - mu) ** 2, axis=-1, keepdims=True)
    y = (y - mu) * jax.lax.rsqrt(var + LN_EPS)
    o_ref[...] = (y * g_ref[...].astype(jnp.float32)
                  + bb_ref[...].astype(jnp.float32)).astype(o_ref.dtype)


def dense_residual_layernorm(x, w, b, residual, gamma, beta, *, tm=512):
    n, kdim = x.shape
    d = w.shape[1]
    tm = _fit(n, tm, 8)
    grid = (pl.cdiv(n, tm),)
    return pl.pallas_call(
        _matmul_res_ln_kernel,
        grid=grid,
        in_specs=[
            pl.BlockSpec((tm, kdim), lambda m: (m, 0)),
            pl.BlockSpec((kdim, d), lambda m: (0, 0)),
            pl.BlockSpec((1, d), lambda m: (0, 0)),
            pl.BlockSpec((tm, d), lambda m: (m, 0)),
            pl.BlockSpec((1, d), lambda m: (0, 0)),
            pl.BlockSpec((1, d), lambda m: (0, 0)),
        ],
        out_specs=pl.BlockSpec((tm, d), lambda m: (m, 0)),
        out_shape=jax.ShapeDtypeStruct((n, d), ACT_DTYPE),
        compiler_params=pltpu.CompilerParams(
            dimension_semantics=("parallel",),
            vmem_limit_bytes=_VMEM_LIMIT),
    )(x, w, b.reshape(1, d), residual, gamma.reshape(1, d), beta.reshape(1, d))


# ----------------------------------------------------------------------------
# Kernel 3: fused FFN — gelu(x@w1+b1) produced per I-chunk and immediately
# consumed by the w2 matmul, + residual + LayerNorm.  h never hits HBM.
# ----------------------------------------------------------------------------
def _ffn_kernel(x_ref, w1_ref, b1_ref, w2_ref, b2_ref, g_ref, bb_ref,
                o_ref, acc_ref):
    @pl.when(pl.program_id(1) == 0)
    def _():
        acc_ref[...] = jnp.zeros_like(acc_ref)

    h = jnp.dot(x_ref[...], w1_ref[...], preferred_element_type=jnp.float32)
    h = _gelu(h + b1_ref[...].astype(jnp.float32))
    acc_ref[...] += jnp.dot(h.astype(jnp.bfloat16), w2_ref[...],
                            preferred_element_type=jnp.float32)

    @pl.when(pl.program_id(1) == pl.num_programs(1) - 1)
    def _():
        y = (acc_ref[...] + b2_ref[...].astype(jnp.float32)
             + x_ref[...].astype(jnp.float32))         # residual = FFN input
        mu = jnp.mean(y, axis=-1, keepdims=True)
        var = jnp.mean((y - mu) ** 2, axis=-1, keepdims=True)
        y = (y - mu) * jax.lax.rsqrt(var + LN_EPS)
        o_ref[...] = (y * g_ref[...].astype(jnp.float32)
                      + bb_ref[...].astype(jnp.float32)).astype(o_ref.dtype)


def ffn_fused(x, w1, b1, w2, b2, gamma, beta, *, tm=512, tc=512):
    n, d = x.shape
    inter = w1.shape[1]
    tm = _fit(n, tm, 8)
    tc = _fit(inter, tc, 128)
    grid = (pl.cdiv(n, tm), pl.cdiv(inter, tc))
    return pl.pallas_call(
        _ffn_kernel,
        grid=grid,
        in_specs=[
            pl.BlockSpec((tm, d), lambda m, c: (m, 0)),      # x (also residual)
            pl.BlockSpec((d, tc), lambda m, c: (0, c)),      # w1 chunk
            pl.BlockSpec((1, tc), lambda m, c: (0, c)),      # b1 chunk
            pl.BlockSpec((tc, d), lambda m, c: (c, 0)),      # w2 chunk
            pl.BlockSpec((1, d), lambda m, c: (0, 0)),       # b2
            pl.BlockSpec((1, d), lambda m, c: (0, 0)),       # ln gamma
            pl.BlockSpec((1, d), lambda m, c: (0, 0)),       # ln beta
        ],
        out_specs=pl.BlockSpec((tm, d), lambda m, c: (m, 0)),
        out_shape=jax.ShapeDtypeStruct((n, d), ACT_DTYPE),
        scratch_shapes=[pltpu.VMEM((tm, d), jnp.float32)],
        compiler_params=pltpu.CompilerParams(
            dimension_semantics=("parallel", "arbitrary"),
            vmem_limit_bytes=_VMEM_LIMIT),
    )(x, w1, b1.reshape(1, inter), w2, b2.reshape(1, d),
      gamma.reshape(1, d), beta.reshape(1, d))


# ----------------------------------------------------------------------------
# Kernel 4: multi-head self-attention.
# grid = (batch, query-tile); Q/K/V are carved out of the lane-dense [B,T,3D]
# bf16 slab purely via BlockSpec column-block indices.  Per-head contexts are
# accumulated into a VMEM scratch, then written with ONE lane-dense store.
# The 1/sqrt(dh) scale is baked into the Q weights at init time.
# ----------------------------------------------------------------------------
def _attn_kernel(q_ref, k_ref, v_ref, m_ref, o_ref, ctx_ref, *, num_heads):
    d = q_ref.shape[-1]
    dh = d // num_heads
    bias = m_ref[...].astype(jnp.float32)                  # [1, T] additive
    # TODO(synk): static head loop (fine for <=16 heads); for very long T use a
    # key-tile axis + online-softmax (flash) accumulator instead.
    for h in range(num_heads):
        q = q_ref[:, h * dh:(h + 1) * dh]
        k = k_ref[:, h * dh:(h + 1) * dh]
        v = v_ref[:, h * dh:(h + 1) * dh]
        s = jax.lax.dot_general(q, k, (((1,), (1,)), ((), ())),
                                preferred_element_type=jnp.float32)
        s = s + bias                                        # key-padding mask
        s = s - jnp.max(s, axis=-1, keepdims=True)
        p = jnp.exp(s)
        p = p * pl.reciprocal(jnp.sum(p, axis=-1, keepdims=True), approx=True)
        ctx_ref[:, h * dh:(h + 1) * dh] = jnp.dot(
            p.astype(jnp.bfloat16), v, preferred_element_type=jnp.float32)
    o_ref[...] = ctx_ref[...].astype(o_ref.dtype)           # single lane-dense store


def mha(qkv, mask, *, num_heads, tq=256):
    # qkv: [B, T, 3D] bf16   mask: [B, 1, T] additive f32   ->   [B, T, D] bf16
    b, t, d3 = qkv.shape
    d = d3 // 3
    tq = _fit(t, tq, 8)
    grid = (b, pl.cdiv(t, tq))
    return pl.pallas_call(
        functools.partial(_attn_kernel, num_heads=num_heads),
        grid=grid,
        in_specs=[
            pl.BlockSpec((None, tq, d), lambda bi, qi: (bi, qi, 0)),  # Q cols [0,D)
            pl.BlockSpec((None, t, d), lambda bi, qi: (bi, 0, 1)),    # K cols [D,2D)
            pl.BlockSpec((None, t, d), lambda bi, qi: (bi, 0, 2)),    # V cols [2D,3D)
            pl.BlockSpec((None, 1, t), lambda bi, qi: (bi, 0, 0)),    # mask
        ],
        out_specs=pl.BlockSpec((None, tq, d), lambda bi, qi: (bi, qi, 0)),
        out_shape=jax.ShapeDtypeStruct((b, t, d), ACT_DTYPE),
        scratch_shapes=[pltpu.VMEM((tq, d), jnp.float32)],
        compiler_params=pltpu.CompilerParams(
            dimension_semantics=("parallel", "parallel"),
            vmem_limit_bytes=_VMEM_LIMIT),
    )(qkv, qkv, qkv, mask)


# ----------------------------------------------------------------------------
# Kernel 5: plain LayerNorm (embeddings), row-tiled, bf16 out
# ----------------------------------------------------------------------------
def _ln_kernel(x_ref, g_ref, b_ref, o_ref):
    x = x_ref[...].astype(jnp.float32)
    mu = jnp.mean(x, axis=-1, keepdims=True)
    var = jnp.mean((x - mu) ** 2, axis=-1, keepdims=True)
    y = (x - mu) * jax.lax.rsqrt(var + LN_EPS)
    o_ref[...] = (y * g_ref[...] + b_ref[...]).astype(o_ref.dtype)


def layernorm(x, gamma, beta, *, tm=512):
    n, d = x.shape
    tm = _fit(n, tm, 8)
    return pl.pallas_call(
        _ln_kernel,
        grid=(pl.cdiv(n, tm),),
        in_specs=[
            pl.BlockSpec((tm, d), lambda m: (m, 0)),
            pl.BlockSpec((1, d), lambda m: (0, 0)),
            pl.BlockSpec((1, d), lambda m: (0, 0)),
        ],
        out_specs=pl.BlockSpec((tm, d), lambda m: (m, 0)),
        out_shape=jax.ShapeDtypeStruct((n, d), ACT_DTYPE),
        compiler_params=pltpu.CompilerParams(
            dimension_semantics=("parallel",),
            vmem_limit_bytes=_VMEM_LIMIT),
    )(x, gamma.reshape(1, d), beta.reshape(1, d))


# ----------------------------------------------------------------------------
# Parameters (deterministic synthetic init — no checkpoint load)
# ----------------------------------------------------------------------------
def init_params(key, *, vocab, hidden, num_layers, intermediate, max_pos,
                num_heads, type_vocab=2):
    def nrm(k, shape, dtype=jnp.float32):
        return (0.02 * jax.random.normal(k, shape, jnp.float32)).astype(dtype)

    ki = iter(jax.random.split(key, 8 + 8 * num_layers))
    d = hidden
    scale = 1.0 / math.sqrt(d // num_heads)
    p = {
        "word_emb": nrm(next(ki), (vocab, d)),
        "pos_emb": nrm(next(ki), (max_pos, d)),
        "type_emb": nrm(next(ki), (type_vocab, d)),
        "emb_ln_g": jnp.ones((d,), jnp.float32),
        "emb_ln_b": jnp.zeros((d,), jnp.float32),
        "pool_w": nrm(next(ki), (d, d)),          # pooler stays in plain jnp
        "pool_b": jnp.zeros((d,), jnp.float32),
        "layers": [],
    }
    for _ in range(num_layers):
        wq = nrm(next(ki), (d, d))
        wk = nrm(next(ki), (d, d))
        wv = nrm(next(ki), (d, d))
        bq = jnp.zeros((d,), jnp.float32)
        # 1/sqrt(dh) folded into the Q columns -> no in-kernel score scaling.
        lp = {
            "wqkv": jnp.concatenate([wq * scale, wk, wv], axis=1).astype(jnp.bfloat16),
            "bqkv": jnp.concatenate([bq * scale, jnp.zeros((2 * d,), jnp.float32)]),
            "wo": nrm(next(ki), (d, d), jnp.bfloat16),
            "bo": jnp.zeros((d,), jnp.float32),
            "ln1_g": jnp.ones((d,), jnp.float32),
            "ln1_b": jnp.zeros((d,), jnp.float32),
            "w1": nrm(next(ki), (d, intermediate), jnp.bfloat16),
            "b1": jnp.zeros((intermediate,), jnp.float32),
            "w2": nrm(next(ki), (intermediate, d), jnp.bfloat16),
            "b2": jnp.zeros((d,), jnp.float32),
            "ln2_g": jnp.ones((d,), jnp.float32),
            "ln2_b": jnp.zeros((d,), jnp.float32),
        }
        p["layers"].append(lp)
    return p


# ----------------------------------------------------------------------------
# Forward pass (BertModel: embeddings -> encoder layers -> pooler)
# ----------------------------------------------------------------------------
def forward(params, input_ids, attention_mask, token_type_ids, *, num_heads):
    bsz, t = input_ids.shape
    d = params["word_emb"].shape[1]

    # --- BertEmbeddings (gathers in plain JAX; dropout = identity at eval) ---
    emb = (jnp.take(params["word_emb"], input_ids, axis=0)
           + params["pos_emb"][:t][None, :, :]
           + jnp.take(params["type_emb"], token_type_ids, axis=0))
    x2d = layernorm(emb.reshape(bsz * t, d),
                    params["emb_ln_g"], params["emb_ln_b"])   # bf16 [N, D]

    # --- extended attention mask: additive [B, 1, T] over keys (bidirectional) ---
    add_mask = ((1.0 - attention_mask.astype(jnp.float32))
                * MASK_VALUE).reshape(bsz, 1, t)

    hidden_states = [x2d.reshape(bsz, t, d)]
    for lp in params["layers"]:
        # fused QKV projection -> lane-dense [N, 3D] bf16 slab (no head transposes)
        qkv = dense(x2d, lp["wqkv"], lp["bqkv"])
        ctx = mha(qkv.reshape(bsz, t, 3 * d), add_mask,
                  num_heads=num_heads).reshape(bsz * t, d)
        # attention output projection + residual + LayerNorm, fused
        x2d = dense_residual_layernorm(ctx, lp["wo"], lp["bo"], x2d,
                                       lp["ln1_g"], lp["ln1_b"])
        # fused FFN: intermediate never materialized in HBM
        x2d = ffn_fused(x2d, lp["w1"], lp["b1"], lp["w2"], lp["b2"],
                        lp["ln2_g"], lp["ln2_b"])
        hidden_states.append(x2d.reshape(bsz, t, d))

    last_hidden_state = x2d.reshape(bsz, t, d).astype(jnp.float32)
    # Pooler: tiny [B, D] GEMM -> plain jnp (a Pallas call is pure overhead here)
    cls = last_hidden_state[:, 0, :]
    pooler_output = jnp.tanh(cls @ params["pool_w"] + params["pool_b"])
    # TODO(synk): output_attentions=True attention-prob tensors are not
    # materialized (softmax is fused inside the attention kernel).
    return {
        "last_hidden_state": last_hidden_state,
        "pooler_output": pooler_output,
        "hidden_states": tuple(hidden_states),   # kept in bf16
    }


# ----------------------------------------------------------------------------
if __name__ == "__main__":
    key = jax.random.PRNGKey(0)
    B, T = 2, 8                      # batch, sequence length
    D, HEADS, LAYERS = 128, 4, 2     # hidden, heads, encoder layers (lane-aligned D)
    VOCAB, INTER, MAX_POS = 128, 512, 64

    kp, kid = jax.random.split(key)
    params = init_params(kp, vocab=VOCAB, hidden=D, num_layers=LAYERS,
                         intermediate=INTER, max_pos=MAX_POS, num_heads=HEADS)

    input_ids = jax.random.randint(kid, (B, T), 0, VOCAB, dtype=jnp.int32)
    attention_mask = jnp.array([[1] * T, [1] * (T - 2) + [0, 0]], dtype=jnp.int32)
    token_type_ids = jnp.zeros((B, T), jnp.int32)

    fwd = jax.jit(lambda ids, am, tt: forward(params, ids, am, tt,
                                              num_heads=HEADS))
    out = fwd(input_ids, attention_mask, token_type_ids)
    jax.block_until_ready(out)

    last, pooled = out["last_hidden_state"], out["pooler_output"]
    assert last.shape == (B, T, D), last.shape
    assert pooled.shape == (B, D), pooled.shape
    assert last.dtype == jnp.float32 and pooled.dtype == jnp.float32
    assert len(out["hidden_states"]) == LAYERS + 1
    assert bool(jnp.all(jnp.isfinite(last)))
    assert bool(jnp.all(jnp.isfinite(pooled)))
    print("KERNEL_OK")
</pallas_src>

<mosaic_0001>
module attributes {stable_mosaic.version = 11 : i64} {
  func.func @_ln_kernel(%arg0: i32, %arg1: memref<16x128xf32, #tpu.memory_space<vmem>>, %arg2: memref<1x128xf32, #tpu.memory_space<vmem>>, %arg3: memref<1x128xf32, #tpu.memory_space<vmem>>, %arg4: memref<16x128xbf16, #tpu.memory_space<vmem>>) attributes {dimension_semantics = [#tpu.dimension_semantics<parallel>], iteration_bounds = array<i64: 1>, scalar_prefetch = 0 : i64, scratch_operands = 0 : i64, tpu.core_type = #tpu.core_type<tc>, window_params = [{transform_indices = @transform_0, window_bounds = array<i64: 16, 128>}, {pipeline_mode = #tpu.pipeline_mode<synchronous>, transform_indices = @transform_1, window_bounds = array<i64: 1, 128>}, {pipeline_mode = #tpu.pipeline_mode<synchronous>, transform_indices = @transform_2, window_bounds = array<i64: 1, 128>}, {transform_indices = @transform_3, window_bounds = array<i64: 16, 128>}]} {
    %c0 = arith.constant 0 : index
    %c0_0 = arith.constant 0 : index
    %0 = vector.load %arg1[%c0, %c0_0] : memref<16x128xf32, #tpu.memory_space<vmem>>, vector<16x128xf32>
    %cst = arith.constant dense<0.000000e+00> : vector<16xf32>
    %1 = vector.multi_reduction <add>, %0, %cst [1] : vector<16x128xf32> to vector<16xf32>
    %2 = vector.shape_cast %1 : vector<16xf32> to vector<16x1xf32>
    %cst_1 = arith.constant 1.280000e+02 : f32
    %3 = vector.broadcast %cst_1 : f32 to vector<16x1xf32>
    %4 = arith.divf %2, %3 : vector<16x1xf32>
    %5 = vector.broadcast %4 : vector<16x1xf32> to vector<16x128xf32>
    %6 = arith.subf %0, %5 : vector<16x128xf32>
    %7 = arith.mulf %6, %6 : vector<16x128xf32>
    %cst_2 = arith.constant dense<0.000000e+00> : vector<16xf32>
    %8 = vector.multi_reduction <add>, %7, %cst_2 [1] : vector<16x128xf32> to vector<16xf32>
    %9 = vector.shape_cast %8 : vector<16xf32> to vector<16x1xf32>
    %cst_3 = arith.constant 1.280000e+02 : f32
    %10 = vector.broadcast %cst_3 : f32 to vector<16x1xf32>
    %11 = arith.divf %9, %10 : vector<16x1xf32>
    %12 = vector.broadcast %4 : vector<16x1xf32> to vector<16x128xf32>
    %13 = arith.subf %0, %12 : vector<16x128xf32>
    %cst_4 = arith.constant 9.99999996E-13 : f32
    %14 = vector.broadcast %cst_4 : f32 to vector<16x1xf32>
    %15 = arith.addf %11, %14 : vector<16x1xf32>
    %16 = math.rsqrt %15 : vector<16x1xf32>
    %17 = vector.broadcast %16 : vector<16x1xf32> to vector<16x128xf32>
    %18 = arith.mulf %13, %17 : vector<16x128xf32>
    %c0_5 = arith.constant 0 : index
    %c0_6 = arith.constant 0 : index
    %19 = vector.load %arg2[%c0_5, %c0_6] : memref<1x128xf32, #tpu.memory_space<vmem>>, vector<1x128xf32>
    %20 = vector.broadcast %19 : vector<1x128xf32> to vector<16x128xf32>
    %21 = arith.mulf %18, %20 : vector<16x128xf32>
    %c0_7 = arith.constant 0 : index
    %c0_8 = arith.constant 0 : index
    %22 = vector.load %arg3[%c0_7, %c0_8] : memref<1x128xf32, #tpu.memory_space<vmem>>, vector<1x128xf32>
    %23 = vector.broadcast %22 : vector<1x128xf32> to vector<16x128xf32>
    %24 = arith.addf %21, %23 : vector<16x128xf32>
    %25 = arith.truncf %24 : vector<16x128xf32> to vector<16x128xbf16>
    %c0_9 = arith.constant 0 : index
    %c0_10 = arith.constant 0 : index
    %26 = vector.load %arg4[%c0_9, %c0_10] : memref<16x128xbf16, #tpu.memory_space<vmem>>, vector<16x128xbf16>
    tpu.vector_store %arg4[%c0_9, %c0_10], %25 {strides = array<i32>} : memref<16x128xbf16, #tpu.memory_space<vmem>>, vector<16x128xbf16>,
    return
  }
  func.func @transform_0(%arg0: i32) -> (i32, i32) {
    %c0_i32 = arith.constant 0 : i32
    %c0_i32_0 = arith.constant 0 : i32
    return %arg0, %c0_i32 : i32, i32
  }
  func.func @transform_1(%arg0: i32) -> (i32, i32) {
    %c0_i32 = arith.constant 0 : i32
    %c0_i32_0 = arith.constant 0 : i32
    %c0_i32_1 = arith.constant 0 : i32
    return %c0_i32, %c0_i32_0 : i32, i32
  }
  func.func @transform_2(%arg0: i32) -> (i32, i32) {
    %c0_i32 = arith.constant 0 : i32
    %c0_i32_0 = arith.constant 0 : i32
    %c0_i32_1 = arith.constant 0 : i32
    return %c0_i32, %c0_i32_0 : i32, i32
  }
  func.func @transform_3(%arg0: i32) -> (i32, i32) {
    %c0_i32 = arith.constant 0 : i32
    %c0_i32_0 = arith.constant 0 : i32
    return %arg0, %c0_i32 : i32, i32
  }
}

module attributes {stable_mosaic.version = 11 : i64} {
  func.func @_matmul_kernel(%arg0: i32, %arg1: i32, %arg2: i32, %arg3: memref<16x128xbf16, #tpu.memory_space<vmem>>, %arg4: memref<128x384xbf16, #tpu.memory_space<vmem>>, %arg5: memref<1x384xf32, #tpu.memory_space<vmem>>, %arg6: memref<16x384xbf16, #tpu.memory_space<vmem>>, %arg7: memref<16x384xf32, #tpu.memory_space<vmem>>) attributes {dimension_semantics = [#tpu.dimension_semantics<parallel>, #tpu.dimension_semantics<parallel>, #tpu.dimension_semantics<arbitrary>], iteration_bounds = array<i64: 1, 1, 1>, scalar_prefetch = 0 : i64, scratch_operands = 1 : i64, tpu.core_type = #tpu.core_type<tc>, window_params = [{transform_indices = @transform_0, window_bounds = array<i64: 16, 128>}, {transform_indices = @transform_1, window_bounds = array<i64: 128, 384>}, {transform_indices = @transform_2, window_bounds = array<i64: 1, 384>}, {transform_indices = @transform_3, window_bounds = array<i64: 16, 384>}]} {
    %c0_i32 = arith.constant 0 : i32
    %0 = arith.cmpi eq, %arg2, %c0_i32 : i32
    %1 = arith.extui %0 : i1 to i32
    %c0_i32_0 = arith.constant 0 : i32
    %2 = arith.cmpi ne, %1, %c0_i32_0 : i32
    scf.if %2 {
      %cst_10 = arith.constant 0.000000e+00 : f32
      %12 = vector.broadcast %cst_10 : f32 to vector<16x384xf32>
      %c0_11 = arith.constant 0 : index
      %c0_12 = arith.constant 0 : index
      %13 = vector.load %arg7[%c0_11, %c0_12] : memref<16x384xf32, #tpu.memory_space<vmem>>, vector<16x384xf32>
      tpu.vector_store %arg7[%c0_11, %c0_12], %12 {strides = array<i32>} : memref<16x384xf32, #tpu.memory_space<vmem>>, vector<16x384xf32>,
    } else {
    }
    %c0 = arith.constant 0 : index
    %c0_1 = arith.constant 0 : index
    %3 = vector.load %arg7[%c0, %c0_1] : memref<16x384xf32, #tpu.memory_space<vmem>>, vector<16x384xf32>
    %c0_2 = arith.constant 0 : index
    %c0_3 = arith.constant 0 : index
    %4 = vector.load %arg3[%c0_2, %c0_3] : memref<16x128xbf16, #tpu.memory_space<vmem>>, vector<16x128xbf16>
    %c0_4 = arith.constant 0 : index
    %c0_5 = arith.constant 0 : index
    %5 = vector.load %arg4[%c0_4, %c0_5] : memref<128x384xbf16, #tpu.memory_space<vmem>>, vector<128x384xbf16>
    %cst = arith.constant dense<0.000000e+00> : vector<16x384xf32>
    %6 = tpu.matmul %4, %5, %cst {dimension_numbers = #tpu.dot_dimension_numbers<[1], [0], [0], [1], [0, 0, 1, 1], [], []>} : vector<16x128xbf16>, vector<128x384xbf16>, vector<16x384xf32> -> vector<16x384xf32>
    %7 = arith.addf %3, %6 : vector<16x384xf32>
    %c0_6 = arith.constant 0 : index
    %c0_7 = arith.constant 0 : index
    %8 = vector.load %arg7[%c0_6, %c0_7] : memref<16x384xf32, #tpu.memory_space<vmem>>, vector<16x384xf32>
    tpu.vector_store %arg7[%c0_6, %c0_7], %7 {strides = array<i32>} : memref<16x384xf32, #tpu.memory_space<vmem>>, vector<16x384xf32>,
    %c0_i32_8 = arith.constant 0 : i32
    %9 = arith.cmpi eq, %arg2, %c0_i32_8 : i32
    %10 = arith.extui %9 : i1 to i32
    %c0_i32_9 = arith.constant 0 : i32
    %11 = arith.cmpi ne, %10, %c0_i32_9 : i32
    scf.if %11 {
      %c0_10 = arith.constant 0 : index
      %c0_11 = arith.constant 0 : index
      %12 = vector.load %arg7[%c0_10, %c0_11] : memref<16x384xf32, #tpu.memory_space<vmem>>, vector<16x384xf32>
      %c0_12 = arith.constant 0 : index
      %c0_13 = arith.constant 0 : index
      %13 = vector.load %arg5[%c0_12, %c0_13] : memref<1x384xf32, #tpu.memory_space<vmem>>, vector<1x384xf32>
      %14 = vector.broadcast %13 : vector<1x384xf32> to vector<16x384xf32>
      %15 = arith.addf %12, %14 : vector<16x384xf32>
      %16 = arith.truncf %15 : vector<16x384xf32> to vector<16x384xbf16>
      %c0_14 = arith.constant 0 : index
      %c0_15 = arith.constant 0 : index
      %17 = vector.load %arg6[%c0_14, %c0_15] : memref<16x384xbf16, #tpu.memory_space<vmem>>, vector<16x384xbf16>
      tpu.vector_store %arg6[%c0_14, %c0_15], %16 {strides = array<i32>} : memref<16x384xbf16, #tpu.memory_space<vmem>>, vector<16x384xbf16>,
    } else {
    }
    return
  }
  func.func @transform_0(%arg0: i32, %arg1: i32, %arg2: i32) -> (i32, i32) {
    %c0_i32 = arith.constant 0 : i32
    return %arg0, %arg2 : i32, i32
  }
  func.func @transform_1(%arg0: i32, %arg1: i32, %arg2: i32) -> (i32, i32) {
    %c0_i32 = arith.constant 0 : i32
    return %arg2, %arg1 : i32, i32
  }
  func.func @transform_2(%arg0: i32, %arg1: i32, %arg2: i32) -> (i32, i32) {
    %c0_i32 = arith.constant 0 : i32
    %c0_i32_0 = arith.constant 0 : i32
    return %c0_i32, %arg1 : i32, i32
  }
  func.func @transform_3(%arg0: i32, %arg1: i32, %arg2: i32) -> (i32, i32) {
    %c0_i32 = arith.constant 0 : i32
    return %arg0, %arg1 : i32, i32
  }
}

module attributes {stable_mosaic.version = 11 : i64} {
  func.func @_attn_kernel(%arg0: i32, %arg1: i32, %arg2: memref<1x8x128xbf16, #tpu.memory_space<vmem>>, %arg3: memref<1x8x128xbf16, #tpu.memory_space<vmem>>, %arg4: memref<1x8x128xbf16, #tpu.memory_space<vmem>>, %arg5: memref<1x1x8xf32, #tpu.memory_space<vmem>>, %arg6: memref<1x8x128xbf16, #tpu.memory_space<vmem>>, %arg7: memref<8x128xf32, #tpu.memory_space<vmem>>) attributes {dimension_semantics = [#tpu.dimension_semantics<parallel>, #tpu.dimension_semantics<parallel>], iteration_bounds = array<i64: 2, 1>, scalar_prefetch = 0 : i64, scratch_operands = 1 : i64, tpu.core_type = #tpu.core_type<tc>, window_params = [{transform_indices = @transform_0, window_bounds = array<i64: 1, 8, 128>}, {transform_indices = @transform_1, window_bounds = array<i64: 1, 8, 128>}, {transform_indices = @transform_2, window_bounds = array<i64: 1, 8, 128>}, {transform_indices = @transform_3, window_bounds = array<i64: 1, 1, 8>}, {transform_indices = @transform_4, window_bounds = array<i64: 1, 8, 128>}]} {
    %c0 = arith.constant 0 : index
    %c0_0 = arith.constant 0 : index
    %c0_1 = arith.constant 0 : index
    %0 = vector.load %arg5[%c0, %c0_0, %c0_1] : memref<1x1x8xf32, #tpu.memory_space<vmem>>, vector<1x1x8xf32>
    %1 = vector.shape_cast %0 : vector<1x1x8xf32> to vector<1x8xf32>
    %c0_2 = arith.constant 0 : index
    %c0_3 = arith.constant 0 : index
    %c0_4 = arith.constant 0 : index
    %2 = vector.load %arg2[%c0_2, %c0_3, %c0_4] : memref<1x8x128xbf16, #tpu.memory_space<vmem>>, vector<1x8x32xbf16>
    %3 = vector.shape_cast %2 : vector<1x8x32xbf16> to vector<8x32xbf16>
    %c0_5 = arith.constant 0 : index
    %c0_6 = arith.constant 0 : index
    %c0_7 = arith.constant 0 : index
    %4 = vector.load %arg3[%c0_5, %c0_6, %c0_7] : memref<1x8x128xbf16, #tpu.memory_space<vmem>>, vector<1x8x32xbf16>
    %5 = vector.shape_cast %4 : vector<1x8x32xbf16> to vector<8x32xbf16>
    %c0_8 = arith.constant 0 : index
    %c0_9 = arith.constant 0 : index
    %c0_10 = arith.constant 0 : index
    %6 = vector.load %arg4[%c0_8, %c0_9, %c0_10] : memref<1x8x128xbf16, #tpu.memory_space<vmem>>, vector<1x8x32xbf16>
    %7 = vector.shape_cast %6 : vector<1x8x32xbf16> to vector<8x32xbf16>
    %cst = arith.constant dense<0.000000e+00> : vector<8x8xf32>
    %8 = tpu.matmul %3, %5, %cst {dimension_numbers = #tpu.dot_dimension_numbers<[1], [1], [0], [0], [0, 0, 1, 0], [], []>} : vector<8x32xbf16>, vector<8x32xbf16>, vector<8x8xf32> -> vector<8x8xf32>
    %9 = vector.broadcast %1 : vector<1x8xf32> to vector<8x8xf32>
    %10 = arith.addf %8, %9 : vector<8x8xf32>
    %cst_11 = arith.constant dense<0xFF800000> : vector<8xf32>
    %11 = vector.multi_reduction <maximumf>, %10, %cst_11 [1] : vector<8x8xf32> to vector<8xf32>
    %12 = vector.shape_cast %11 : vector<8xf32> to vector<8x1xf32>
    %13 = vector.broadcast %12 : vector<8x1xf32> to vector<8x8xf32>
    %14 = arith.subf %10, %13 : vector<8x8xf32>
    %15 = math.exp %14 : vector<8x8xf32>
    %cst_12 = arith.constant dense<0.000000e+00> : vector<8xf32>
    %16 = vector.multi_reduction <add>, %15, %cst_12 [1] : vector<8x8xf32> to vector<8xf32>
    %17 = vector.shape_cast %16 : vector<8xf32> to vector<8x1xf32>
    %18 = tpu.reciprocal %17 {approx = true} : vector<8x1xf32> -> vector<8x1xf32>
    %19 = vector.broadcast %18 : vector<8x1xf32> to vector<8x8xf32>
    %20 = arith.mulf %15, %19 : vector<8x8xf32>
    %21 = arith.truncf %20 : vector<8x8xf32> to vector<8x8xbf16>
    %cst_13 = arith.constant dense<0.000000e+00> : vector<8x32xf32>
    %22 = tpu.matmul %21, %7, %cst_13 {dimension_numbers = #tpu.dot_dimension_numbers<[1], [0], [0], [1], [0, 0, 1, 1], [], []>} : vector<8x8xbf16>, vector<8x32xbf16>, vector<8x32xf32> -> vector<8x32xf32>
    %c0_14 = arith.constant 0 : index
    %c0_15 = arith.constant 0 : index
    %23 = vector.load %arg7[%c0_14, %c0_15] : memref<8x128xf32, #tpu.memory_space<vmem>>, vector<8x32xf32>
    tpu.vector_store %arg7[%c0_14, %c0_15], %22 {strides = array<i32>} : memref<8x128xf32, #tpu.memory_space<vmem>>, vector<8x32xf32>,
    %c0_16 = arith.constant 0 : index
    %c0_17 = arith.constant 0 : index
    %c32 = arith.constant 32 : index
    %24 = vector.load %arg2[%c0_16, %c0_17, %c32] : memref<1x8x128xbf16, #tpu.memory_space<vmem>>, vector<1x8x32xbf16>
    %25 = vector.shape_cast %24 : vector<1x8x32xbf16> to vector<8x32xbf16>
    %c0_18 = arith.constant 0 : index
    %c0_19 = arith.constant 0 : index
    %c32_20 = arith.constant 32 : index
    %26 = vector.load %arg3[%c0_18, %c0_19, %c32_20] : memref<1x8x128xbf16, #tpu.memory_space<vmem>>, vector<1x8x32xbf16>
    %27 = vector.shape_cast %26 : vector<1x8x32xbf16> to vector<8x32xbf16>
    %c0_21 = arith.constant 0 : index
    %c0_22 = arith.constant 0 : index
    %c32_23 = arith.constant 32 : index
    %28 = vector.load %arg4[%c0_21, %c0_22, %c32_23] : memref<1x8x128xbf16, #tpu.memory_space<vmem>>, vector<1x8x32xbf16>
    %29 = vector.shape_cast %28 : vector<1x8x32xbf16> to vector<8x32xbf16>
    %cst_24 = arith.constant dense<0.000000e+00> : vector<8x8xf32>
    %30 = tpu.matmul %25, %27, %cst_24 {dimension_numbers = #tpu.dot_dimension_numbers<[1], [1], [0], [0], [0, 0, 1, 0], [], []>} : vector<8x32xbf16>, vector<8x32xbf16>, vector<8x8xf32> -> vector<8x8xf32>
    %31 = vector.broadcast %1 : vector<1x8xf32> to vector<8x8xf32>
    %32 = arith.addf %30, %31 : vector<8x8xf32>
    %cst_25 = arith.constant dense<0xFF800000> : vector<8xf32>
    %33 = vector.multi_reduction <maximumf>, %32, %cst_25 [1] : vector<8x8xf32> to vector<8xf32>
    %34 = vector.shape_cast %33 : vector<8xf32> to vector<8x1xf32>
    %35 = vector.broadcast %34 : vector<8x1xf32> to vector<8x8xf32>
    %36 = arith.subf %32, %35 : vector<8x8xf32>
    %37 = math.exp %36 : vector<8x8xf32>
    %cst_26 = arith.constant dense<0.000000e+00> : vector<8xf32>
    %38 = vector.multi_reduction <add>, %37, %cst_26 [1] : vector<8x8xf32> to vector<8xf32>
    %39 = vector.shape_cast %38 : vector<8xf32> to vector<8x1xf32>
    %40 = tpu.reciprocal %39 {approx = true} : vector<8x1xf32> -> vector<8x1xf32>
    %41 = vector.broadcast %40 : vector<8x1xf32> to vector<8x8xf32>
    %42 = arith.mulf %37, %41 : vector<8x8xf32>
    %43 = arith.truncf %42 : vector<8x8xf32> to vector<8x8xbf16>
    %cst_27 = arith.constant dense<0.000000e+00> : vector<8x32xf32>
    %44 = tpu.matmul %43, %29, %cst_27 {dimension_numbers = #tpu.dot_dimension_numbers<[1], [0], [0], [1], [0, 0, 1, 1], [], []>} : vector<8x8xbf16>, vector<8x32xbf16>, vector<8x32xf32> -> vector<8x32xf32>
    %c0_28 = arith.constant 0 : index
    %c32_29 = arith.constant 32 : index
    %45 = vector.load %arg7[%c0_28, %c32_29] : memref<8x128xf32, #tpu.memory_space<vmem>>, vector<8x32xf32>
    tpu.vector_store %arg7[%c0_28, %c32_29], %44 {strides = array<i32>} : memref<8x128xf32, #tpu.memory_space<vmem>>, vector<8x32xf32>,
    %c0_30 = arith.constant 0 : index
    %c0_31 = arith.constant 0 : index
    %c64 = arith.constant 64 : index
    %46 = vector.load %arg2[%c0_30, %c0_31, %c64] : memref<1x8x128xbf16, #tpu.memory_space<vmem>>, vector<1x8x32xbf16>
    %47 = vector.shape_cast %46 : vector<1x8x32xbf16> to vector<8x32xbf16>
    %c0_32 = arith.constant 0 : index
    %c0_33 = arith.constant 0 : index
    %c64_34 = arith.constant 64 : index
    %48 = vector.load %arg3[%c0_32, %c0_33, %c64_34] : memref<1x8x128xbf16, #tpu.memory_space<vmem>>, vector<1x8x32xbf16>
    %49 = vector.shape_cast %48 : vector<1x8x32xbf16> to vector<8x32xbf16>
    %c0_35 = arith.constant 0 : index
    %c0_36 = arith.constant 0 : index
    %c64_37 = arith.constant 64 : index
    %50 = vector.load %arg4[%c0_35, %c0_36, %c64_37] : memref<1x8x128xbf16, #tpu.memory_space<vmem>>, vector<1x8x32xbf16>
    %51 = vector.shape_cast %50 : vector<1x8x32xbf16> to vector<8x32xbf16>
    %cst_38 = arith.constant dense<0.000000e+00> : vector<8x8xf32>
    %52 = tpu.matmul %47, %49, %cst_38 {dimension_numbers = #tpu.dot_dimension_numbers<[1], [1], [0], [0], [0, 0, 1, 0], [], []>} : vector<8x32xbf16>, vector<8x32xbf16>, vector<8x8xf32> -> vector<8x8xf32>
    %53 = vector.broadcast %1 : vector<1x8xf32> to vector<8x8xf32>
    %54 = arith.addf %52, %53 : vector<8x8xf32>
    %cst_39 = arith.constant dense<0xFF800000> : vector<8xf32>
    %55 = vector.multi_reduction <maximumf>, %54, %cst_39 [1] : vector<8x8xf32> to vector<8xf32>
    %56 = vector.shape_cast %55 : vector<8xf32> to vector<8x1xf32>
    %57 = vector.broadcast %56 : vector<8x1xf32> to vector<8x8xf32>
    %58 = arith.subf %54, %57 : vector<8x8xf32>
    %59 = math.exp %58 : vector<8x8xf32>
    %cst_40 = arith.constant dense<0.000000e+00> : vector<8xf32>
    %60 = vector.multi_reduction <add>, %59, %cst_40 [1] : vector<8x8xf32> to vector<8xf32>
    %61 = vector.shape_cast %60 : vector<8xf32> to vector<8x1xf32>
    %62 = tpu.reciprocal %61 {approx = true} : vector<8x1xf32> -> vector<8x1xf32>
    %63 = vector.broadcast %62 : vector<8x1xf32> to vector<8x8xf32>
    %64 = arith.mulf %59, %63 : vector<8x8xf32>
    %65 = arith.truncf %64 : vector<8x8xf32> to vector<8x8xbf16>
    %cst_41 = arith.constant dense<0.000000e+00> : vector<8x32xf32>
    %66 = tpu.matmul %65, %51, %cst_41 {dimension_numbers = #tpu.dot_dimension_numbers<[1], [0], [0], [1], [0, 0, 1, 1], [], []>} : vector<8x8xbf16>, vector<8x32xbf16>, vector<8x32xf32> -> vector<8x32xf32>
    %c0_42 = arith.constant 0 : index
    %c64_43 = arith.constant 64 : index
    %67 = vector.load %arg7[%c0_42, %c64_43] : memref<8x128xf32, #tpu.memory_space<vmem>>, vector<8x32xf32>
    tpu.vector_store %arg7[%c0_42, %c64_43], %66 {strides = array<i32>} : memref<8x128xf32, #tpu.memory_space<vmem>>, vector<8x32xf32>,
    %c0_44 = arith.constant 0 : index
    %c0_45 = arith.constant 0 : index
    %c96 = arith.constant 96 : index
    %68 = vector.load %arg2[%c0_44, %c0_45, %c96] : memref<1x8x128xbf16, #tpu.memory_space<vmem>>, vector<1x8x32xbf16>
    %69 = vector.shape_cast %68 : vector<1x8x32xbf16> to vector<8x32xbf16>
    %c0_46 = arith.constant 0 : index
    %c0_47 = arith.constant 0 : index
    %c96_48 = arith.constant 96 : index
    %70 = vector.load %arg3[%c0_46, %c0_47, %c96_48] : memref<1x8x128xbf16, #tpu.memory_space<vmem>>, vector<1x8x32xbf16>
    %71 = vector.shape_cast %70 : vector<1x8x32xbf16> to vector<8x32xbf16>
    %c0_49 = arith.constant 0 : index
    %c0_50 = arith.constant 0 : index
    %c96_51 = arith.constant 96 : index
    %72 = vector.load %arg4[%c0_49, %c0_50, %c96_51] : memref<1x8x128xbf16, #tpu.memory_space<vmem>>, vector<1x8x32xbf16>
    %73 = vector.shape_cast %72 : vector<1x8x32xbf16> to vector<8x32xbf16>
    %cst_52 = arith.constant dense<0.000000e+00> : vector<8x8xf32>
    %74 = tpu.matmul %69, %71, %cst_52 {dimension_numbers = #tpu.dot_dimension_numbers<[1], [1], [0], [0], [0, 0, 1, 0], [], []>} : vector<8x32xbf16>, vector<8x32xbf16>, vector<8x8xf32> -> vector<8x8xf32>
    %75 = vector.broadcast %1 : vector<1x8xf32> to vector<8x8xf32>
    %76 = arith.addf %74, %75 : vector<8x8xf32>
    %cst_53 = arith.constant dense<0xFF800000> : vector<8xf32>
    %77 = vector.multi_reduction <maximumf>, %76, %cst_53 [1] : vector<8x8xf32> to vector<8xf32>
    %78 = vector.shape_cast %77 : vector<8xf32> to vector<8x1xf32>
    %79 = vector.broadcast %78 : vector<8x1xf32> to vector<8x8xf32>
    %80 = arith.subf %76, %79 : vector<8x8xf32>
    %81 = math.exp %80 : vector<8x8xf32>
    %cst_54 = arith.constant dense<0.000000e+00> : vector<8xf32>
    %82 = vector.multi_reduction <add>, %81, %cst_54 [1] : vector<8x8xf32> to vector<8xf32>
    %83 = vector.shape_cast %82 : vector<8xf32> to vector<8x1xf32>
    %84 = tpu.reciprocal %83 {approx = true} : vector<8x1xf32> -> vector<8x1xf32>
    %85 = vector.broadcast %84 : vector<8x1xf32> to vector<8x8xf32>
    %86 = arith.mulf %81, %85 : vector<8x8xf32>
    %87 = arith.truncf %86 : vector<8x8xf32> to vector<8x8xbf16>
    %cst_55 = arith.constant dense<0.000000e+00> : vector<8x32xf32>
    %88 = tpu.matmul %87, %73, %cst_55 {dimension_numbers = #tpu.dot_dimension_numbers<[1], [0], [0], [1], [0, 0, 1, 1], [], []>} : vector<8x8xbf16>, vector<8x32xbf16>, vector<8x32xf32> -> vector<8x32xf32>
    %c0_56 = arith.constant 0 : index
    %c96_57 = arith.constant 96 : index
    %89 = vector.load %arg7[%c0_56, %c96_57] : memref<8x128xf32, #tpu.memory_space<vmem>>, vector<8x32xf32>
    tpu.vector_store %arg7[%c0_56, %c96_57], %88 {strides = array<i32>} : memref<8x128xf32, #tpu.memory_space<vmem>>, vector<8x32xf32>,
    %c0_58 = arith.constant 0 : index
    %c0_59 = arith.constant 0 : index
    %90 = vector.load %arg7[%c0_58, %c0_59] : memref<8x128xf32, #tpu.memory_space<vmem>>, vector<8x128xf32>
    %91 = arith.truncf %90 : vector<8x128xf32> to vector<8x128xbf16>
    %c0_60 = arith.constant 0 : index
    %c0_61 = arith.constant 0 : index
    %c0_62 = arith.constant 0 : index
    %92 = vector.load %arg6[%c0_60, %c0_61, %c0_62] : memref<1x8x128xbf16, #tpu.memory_space<vmem>>, vector<1x8x128xbf16>
    %93 = vector.shape_cast %92 : vector<1x8x128xbf16> to vector<8x128xbf16>
    %94 = vector.shape_cast %91 : vector<8x128xbf16> to vector<1x8x128xbf16>
    tpu.vector_store %arg6[%c0_60, %c0_61, %c0_62], %94 {strides = array<i32>} : memref<1x8x128xbf16, #tpu.memory_space<vmem>>, vector<1x8x128xbf16>,
    return
  }
  func.func @transform_0(%arg0: i32, %arg1: i32) -> (i32, i32, i32) {
    %c0_i32 = arith.constant 0 : i32
    %c0_i32_0 = arith.constant 0 : i32
    return %arg0, %arg1, %c0_i32 : i32, i32, i32
  }
  func.func @transform_1(%arg0: i32, %arg1: i32) -> (i32, i32, i32) {
    %c0_i32 = arith.constant 0 : i32
    %c1_i32 = arith.constant 1 : i32
    %c0_i32_0 = arith.constant 0 : i32
    return %arg0, %c0_i32, %c1_i32 : i32, i32, i32
  }
  func.func @transform_2(%arg0: i32, %arg1: i32) -> (i32, i32, i32) {
    %c0_i32 = arith.constant 0 : i32
    %c2_i32 = arith.constant 2 : i32
    %c0_i32_0 = arith.constant 0 : i32
    return %arg0, %c0_i32, %c2_i32 : i32, i32, i32
  }
  func.func @transform_3(%arg0: i32, %arg1: i32) -> (i32, i32, i32) {
    %c0_i32 = arith.constant 0 : i32
    %c0_i32_0 = arith.constant 0 : i32
    %c0_i32_1 = arith.constant 0 : i32
    return %arg0, %c0_i32, %c0_i32_0 : i32, i32, i32
  }
  func.func @transform_4(%arg0: i32, %arg1: i32) -> (i32, i32, i32) {
    %c0_i32 = arith.constant 0 : i32
    %c0_i32_0 = arith.constant 0 : i32
    return %arg0, %arg1, %c0_i32 : i32, i32, i32
  }
}

module attributes {stable_mosaic.version = 11 : i64} {
  func.func @_matmul_res_ln_kernel(%arg0: i32, %arg1: memref<16x128xbf16, #tpu.memory_space<vmem>>, %arg2: memref<128x128xbf16, #tpu.memory_space<vmem>>, %arg3: memref<1x128xf32, #tpu.memory_space<vmem>>, %arg4: memref<16x128xbf16, #tpu.memory_space<vmem>>, %arg5: memref<1x128xf32, #tpu.memory_space<vmem>>, %arg6: memref<1x128xf32, #tpu.memory_space<vmem>>, %arg7: memref<16x128xbf16, #tpu.memory_space<vmem>>) attributes {dimension_semantics = [#tpu.dimension_semantics<parallel>], iteration_bounds = array<i64: 1>, scalar_prefetch = 0 : i64, scratch_operands = 0 : i64, tpu.core_type = #tpu.core_type<tc>, window_params = [{transform_indices = @transform_0, window_bounds = array<i64: 16, 128>}, {pipeline_mode = #tpu.pipeline_mode<synchronous>, transform_indices = @transform_1, window_bounds = array<i64: 128, 128>}, {pipeline_mode = #tpu.pipeline_mode<synchronous>, transform_indices = @transform_2, window_bounds = array<i64: 1, 128>}, {transform_indices = @transform_3, window_bounds = array<i64: 16, 128>}, {pipeline_mode = #tpu.pipeline_mode<synchronous>, transform_indices = @transform_4, window_bounds = array<i64: 1, 128>}, {pipeline_mode = #tpu.pipeline_mode<synchronous>, transform_indices = @transform_5, window_bounds = array<i64: 1, 128>}, {transform_indices = @transform_6, window_bounds = array<i64: 16, 128>}]} {
    %c0 = arith.constant 0 : index
    %c0_0 = arith.constant 0 : index
    %0 = vector.load %arg1[%c0, %c0_0] : memref<16x128xbf16, #tpu.memory_space<vmem>>, vector<16x128xbf16>
    %c0_1 = arith.constant 0 : index
    %c0_2 = arith.constant 0 : index
    %1 = vector.load %arg2[%c0_1, %c0_2] : memref<128x128xbf16, #tpu.memory_space<vmem>>, vector<128x128xbf16>
    %cst = arith.constant dense<0.000000e+00> : vector<16x128xf32>
    %2 = tpu.matmul %0, %1, %cst {dimension_numbers = #tpu.dot_dimension_numbers<[1], [0], [0], [1], [0, 0, 1, 1], [], []>} : vector<16x128xbf16>, vector<128x128xbf16>, vector<16x128xf32> -> vector<16x128xf32>
    %c0_3 = arith.constant 0 : index
    %c0_4 = arith.constant 0 : index
    %3 = vector.load %arg3[%c0_3, %c0_4] : memref<1x128xf32, #tpu.memory_space<vmem>>, vector<1x128xf32>
    %4 = vector.broadcast %3 : vector<1x128xf32> to vector<16x128xf32>
    %5 = arith.addf %2, %4 : vector<16x128xf32>
    %c0_5 = arith.constant 0 : index
    %c0_6 = arith.constant 0 : index
    %6 = vector.load %arg4[%c0_5, %c0_6] : memref<16x128xbf16, #tpu.memory_space<vmem>>, vector<16x128xbf16>
    %7 = arith.extf %6 : vector<16x128xbf16> to vector<16x128xf32>
    %8 = arith.addf %5, %7 : vector<16x128xf32>
    %cst_7 = arith.constant dense<0.000000e+00> : vector<16xf32>
    %9 = vector.multi_reduction <add>, %8, %cst_7 [1] : vector<16x128xf32> to vector<16xf32>
    %10 = vector.shape_cast %9 : vector<16xf32> to vector<16x1xf32>
    %cst_8 = arith.constant 1.280000e+02 : f32
    %11 = vector.broadcast %cst_8 : f32 to vector<16x1xf32>
    %12 = arith.divf %10, %11 : vector<16x1xf32>
    %13 = vector.broadcast %12 : vector<16x1xf32> to vector<16x128xf32>
    %14 = arith.subf %8, %13 : vector<16x128xf32>
    %15 = arith.mulf %14, %14 : vector<16x128xf32>
    %cst_9 = arith.constant dense<0.000000e+00> : vector<16xf32>
    %16 = vector.multi_reduction <add>, %15, %cst_9 [1] : vector<16x128xf32> to vector<16xf32>
    %17 = vector.shape_cast %16 : vector<16xf32> to vector<16x1xf32>
    %cst_10 = arith.constant 1.280000e+02 : f32
    %18 = vector.broadcast %cst_10 : f32 to vector<16x1xf32>
    %19 = arith.divf %17, %18 : vector<16x1xf32>
    %20 = vector.broadcast %12 : vector<16x1xf32> to vector<16x128xf32>
    %21 = arith.subf %8, %20 : vector<16x128xf32>
    %cst_11 = arith.constant 9.99999996E-13 : f32
    %22 = vector.broadcast %cst_11 : f32 to vector<16x1xf32>
    %23 = arith.addf %19, %22 : vector<16x1xf32>
    %24 = math.rsqrt %23 : vector<16x1xf32>
    %25 = vector.broadcast %24 : vector<16x1xf32> to vector<16x128xf32>
    %26 = arith.mulf %21, %25 : vector<16x128xf32>
    %c0_12 = arith.constant 0 : index
    %c0_13 = arith.constant 0 : index
    %27 = vector.load %arg5[%c0_12, %c0_13] : memref<1x128xf32, #tpu.memory_space<vmem>>, vector<1x128xf32>
    %28 = vector.broadcast %27 : vector<1x128xf32> to vector<16x128xf32>
    %29 = arith.mulf %26, %28 : vector<16x128xf32>
    %c0_14 = arith.constant 0 : index
    %c0_15 = arith.constant 0 : index
    %30 = vector.load %arg6[%c0_14, %c0_15] : memref<1x128xf32, #tpu.memory_space<vmem>>, vector<1x128xf32>
    %31 = vector.broadcast %30 : vector<1x128xf32> to vector<16x128xf32>
    %32 = arith.addf %29, %31 : vector<16x128xf32>
    %33 = arith.truncf %32 : vector<16x128xf32> to vector<16x128xbf16>
    %c0_16 = arith.constant 0 : index
    %c0_17 = arith.constant 0 : index
    %34 = vector.load %arg7[%c0_16, %c0_17] : memref<16x128xbf16, #tpu.memory_space<vmem>>, vector<16x128xbf16>
    tpu.vector_store %arg7[%c0_16, %c0_17], %33 {strides = array<i32>} : memref<16x128xbf16, #tpu.memory_space<vmem>>, vector<16x128xbf16>,
    return
  }
  func.func @transform_0(%arg0: i32) -> (i32, i32) {
    %c0_i32 = arith.constant 0 : i32
    %c0_i32_0 = arith.constant 0 : i32
    return %arg0, %c0_i32 : i32, i32
  }
  func.func @transform_1(%arg0: i32) -> (i32, i32) {
    %c0_i32 = arith.constant 0 : i32
    %c0_i32_0 = arith.constant 0 : i32
    %c0_i32_1 = arith.constant 0 : i32
    return %c0_i32, %c0_i32_0 : i32, i32
  }
  func.func @transform_2(%arg0: i32) -> (i32, i32) {
    %c0_i32 = arith.constant 0 : i32
    %c0_i32_0 = arith.constant 0 : i32
    %c0_i32_1 = arith.constant 0 : i32
    return %c0_i32, %c0_i32_0 : i32, i32
  }
  func.func @transform_3(%arg0: i32) -> (i32, i32) {
    %c0_i32 = arith.constant 0 : i32
    %c0_i32_0 = arith.constant 0 : i32
    return %arg0, %c0_i32 : i32, i32
  }
  func.func @transform_4(%arg0: i32) -> (i32, i32) {
    %c0_i32 = arith.constant 0 : i32
    %c0_i32_0 = arith.constant 0 : i32
    %c0_i32_1 = arith.constant 0 : i32
    return %c0_i32, %c0_i32_0 : i32, i32
  }
  func.func @transform_5(%arg0: i32) -> (i32, i32) {
    %c0_i32 = arith.constant 0 : i32
    %c0_i32_0 = arith.constant 0 : i32
    %c0_i32_1 = arith.constant 0 : i32
    return %c0_i32, %c0_i32_0 : i32, i32
  }
  func.func @transform_6(%arg0: i32) -> (i32, i32) {
    %c0_i32 = arith.constant 0 : i32
    %c0_i32_0 = arith.constant 0 : i32
    return %arg0, %c0_i32 : i32, i32
  }
}

module attributes {stable_mosaic.version = 11 : i64} {
  func.func @_ffn_kernel(%arg0: i32, %arg1: i32, %arg2: memref<16x128xbf16, #tpu.memory_space<vmem>>, %arg3: memref<128x512xbf16, #tpu.memory_space<vmem>>, %arg4: memref<1x512xf32, #tpu.memory_space<vmem>>, %arg5: memref<512x128xbf16, #tpu.memory_space<vmem>>, %arg6: memref<1x128xf32, #tpu.memory_space<vmem>>, %arg7: memref<1x128xf32, #tpu.memory_space<vmem>>, %arg8: memref<1x128xf32, #tpu.memory_space<vmem>>, %arg9: memref<16x128xbf16, #tpu.memory_space<vmem>>, %arg10: memref<16x128xf32, #tpu.memory_space<vmem>>) attributes {dimension_semantics = [#tpu.dimension_semantics<parallel>, #tpu.dimension_semantics<arbitrary>], iteration_bounds = array<i64: 1, 1>, scalar_prefetch = 0 : i64, scratch_operands = 1 : i64, tpu.core_type = #tpu.core_type<tc>, window_params = [{transform_indices = @transform_0, window_bounds = array<i64: 16, 128>}, {transform_indices = @transform_1, window_bounds = array<i64: 128, 512>}, {transform_indices = @transform_2, window_bounds = array<i64: 1, 512>}, {transform_indices = @transform_3, window_bounds = array<i64: 512, 128>}, {pipeline_mode = #tpu.pipeline_mode<synchronous>, transform_indices = @transform_4, window_bounds = array<i64: 1, 128>}, {pipeline_mode = #tpu.pipeline_mode<synchronous>, transform_indices = @transform_5, window_bounds = array<i64: 1, 128>}, {pipeline_mode = #tpu.pipeline_mode<synchronous>, transform_indices = @transform_6, window_bounds = array<i64: 1, 128>}, {transform_indices = @transform_7, window_bounds = array<i64: 16, 128>}]} {
    %c0_i32 = arith.constant 0 : i32
    %0 = arith.cmpi eq, %arg1, %c0_i32 : i32
    %1 = arith.extui %0 : i1 to i32
    %c0_i32_0 = arith.constant 0 : i32
    %2 = arith.cmpi ne, %1, %c0_i32_0 : i32
    scf.if %2 {
      %cst_19 = arith.constant 0.000000e+00 : f32
      %31 = vector.broadcast %cst_19 : f32 to vector<16x128xf32>
      %c0_20 = arith.constant 0 : index
      %c0_21 = arith.constant 0 : index
      %32 = vector.load %arg10[%c0_20, %c0_21] : memref<16x128xf32, #tpu.memory_space<vmem>>, vector<16x128xf32>
      tpu.vector_store %arg10[%c0_20, %c0_21], %31 {strides = array<i32>} : memref<16x128xf32, #tpu.memory_space<vmem>>, vector<16x128xf32>,
    } else {
    }
    %c0 = arith.constant 0 : index
    %c0_1 = arith.constant 0 : index
    %3 = vector.load %arg2[%c0, %c0_1] : memref<16x128xbf16, #tpu.memory_space<vmem>>, vector<16x128xbf16>
    %c0_2 = arith.constant 0 : index
    %c0_3 = arith.constant 0 : index
    %4 = vector.load %arg3[%c0_2, %c0_3] : memref<128x512xbf16, #tpu.memory_space<vmem>>, vector<128x512xbf16>
    %cst = arith.constant dense<0.000000e+00> : vector<16x512xf32>
    %5 = tpu.matmul %3, %4, %cst {dimension_numbers = #tpu.dot_dimension_numbers<[1], [0], [0], [1], [0, 0, 1, 1], [], []>} : vector<16x128xbf16>, vector<128x512xbf16>, vector<16x512xf32> -> vector<16x512xf32>
    %c0_4 = arith.constant 0 : index
    %c0_5 = arith.constant 0 : index
    %6 = vector.load %arg4[%c0_4, %c0_5] : memref<1x512xf32, #tpu.memory_space<vmem>>, vector<1x512xf32>
    %7 = vector.broadcast %6 : vector<1x512xf32> to vector<16x512xf32>
    %8 = arith.addf %5, %7 : vector<16x512xf32>
    %cst_6 = arith.constant 5.000000e-01 : f32
    %9 = vector.broadcast %cst_6 : f32 to vector<16x512xf32>
    %10 = arith.mulf %9, %8 : vector<16x512xf32>
    %cst_7 = arith.constant 4.471500e-02 : f32
    %11 = vector.broadcast %cst_7 : f32 to vector<16x512xf32>
    %12 = arith.mulf %11, %8 : vector<16x512xf32>
    %13 = arith.mulf %12, %8 : vector<16x512xf32>
    %14 = arith.mulf %13, %8 : vector<16x512xf32>
    %15 = arith.addf %8, %14 : vector<16x512xf32>
    %cst_8 = arith.constant 0.797884583 : f32
    %16 = vector.broadcast %cst_8 : f32 to vector<16x512xf32>
    %17 = arith.mulf %16, %15 : vector<16x512xf32>
    %18 = math.tanh %17 : vector<16x512xf32>
    %cst_9 = arith.constant 1.000000e+00 : f32
    %19 = vector.broadcast %cst_9 : f32 to vector<16x512xf32>
    %20 = arith.addf %19, %18 : vector<16x512xf32>
    %21 = arith.mulf %10, %20 : vector<16x512xf32>
    %c0_10 = arith.constant 0 : index
    %c0_11 = arith.constant 0 : index
    %22 = vector.load %arg10[%c0_10, %c0_11] : memref<16x128xf32, #tpu.memory_space<vmem>>, vector<16x128xf32>
    %23 = arith.truncf %21 : vector<16x512xf32> to vector<16x512xbf16>
    %c0_12 = arith.constant 0 : index
    %c0_13 = arith.constant 0 : index
    %24 = vector.load %arg5[%c0_12, %c0_13] : memref<512x128xbf16, #tpu.memory_space<vmem>>, vector<512x128xbf16>
    %cst_14 = arith.constant dense<0.000000e+00> : vector<16x128xf32>
    %25 = tpu.matmul %23, %24, %cst_14 {dimension_numbers = #tpu.dot_dimension_numbers<[1], [0], [0], [1], [0, 0, 1, 1], [], []>} : vector<16x512xbf16>, vector<512x128xbf16>, vector<16x128xf32> -> vector<16x128xf32>
    %26 = arith.addf %22, %25 : vector<16x128xf32>
    %c0_15 = arith.constant 0 : index
    %c0_16 = arith.constant 0 : index
    %27 = vector.load %arg10[%c0_15, %c0_16] : memref<16x128xf32, #tpu.memory_space<vmem>>, vector<16x128xf32>
    tpu.vector_store %arg10[%c0_15, %c0_16], %26 {strides = array<i32>} : memref<16x128xf32, #tpu.memory_space<vmem>>, vector<16x128xf32>,
    %c0_i32_17 = arith.constant 0 : i32
    %28 = arith.cmpi eq, %arg1, %c0_i32_17 : i32
    %29 = arith.extui %28 : i1 to i32
    %c0_i32_18 = arith.constant 0 : i32
    %30 = arith.cmpi ne, %29, %c0_i32_18 : i32
    scf.if %30 {
      %c0_19 = arith.constant 0 : index
      %c0_20 = arith.constant 0 : index
      %31 = vector.load %arg10[%c0_19, %c0_20] : memref<16x128xf32, #tpu.memory_space<vmem>>, vector<16x128xf32>
      %c0_21 = arith.constant 0 : index
      %c0_22 = arith.constant 0 : index
      %32 = vector.load %arg6[%c0_21, %c0_22] : memref<1x128xf32, #tpu.memory_space<vmem>>, vector<1x128xf32>
      %33 = vector.broadcast %32 : vector<1x128xf32> to vector<16x128xf32>
      %34 = arith.addf %31, %33 : vector<16x128xf32>
      %c0_23 = arith.constant 0 : index
      %c0_24 = arith.constant 0 : index
      %35 = vector.load %arg2[%c0_23, %c0_24] : memref<16x128xbf16, #tpu.memory_space<vmem>>, vector<16x128xbf16>
      %36 = arith.extf %35 : vector<16x128xbf16> to vector<16x128xf32>
      %37 = arith.addf %34, %36 : vector<16x128xf32>
      %cst_25 = arith.constant dense<0.000000e+00> : vector<16xf32>
      %38 = vector.multi_reduction <add>, %37, %cst_25 [1] : vector<16x128xf32> to vector<16xf32>
      %39 = vector.shape_cast %38 : vector<16xf32> to vector<16x1xf32>
      %cst_26 = arith.constant 1.280000e+02 : f32
      %40 = vector.broadcast %cst_26 : f32 to vector<16x1xf32>
      %41 = arith.divf %39, %40 : vector<16x1xf32>
      %42 = vector.broadcast %41 : vector<16x1xf32> to vector<16x128xf32>
      %43 = arith.subf %37, %42 : vector<16x128xf32>
      %44 = arith.mulf %43, %43 : vector<16x128xf32>
      %cst_27 = arith.constant dense<0.000000e+00> : vector<16xf32>
      %45 = vector.multi_reduction <add>, %44, %cst_27 [1] : vector<16x128xf32> to vector<16xf32>
      %46 = vector.shape_cast %45 : vector<16xf32> to vector<16x1xf32>
      %cst_28 = arith.constant 1.280000e+02 : f32
      %47 = vector.broadcast %cst_28 : f32 to vector<16x1xf32>
      %48 = arith.divf %46, %47 : vector<16x1xf32>
      %49 = vector.broadcast %41 : vector<16x1xf32> to vector<16x128xf32>
      %50 = arith.subf %37, %49 : vector<16x128xf32>
      %cst_29 = arith.constant 9.99999996E-13 : f32
      %51 = vector.broadcast %cst_29 : f32 to vector<16x1xf32>
      %52 = arith.addf %48, %51 : vector<16x1xf32>
      %53 = math.rsqrt %52 : vector<16x1xf32>
      %54 = vector.broadcast %53 : vector<16x1xf32> to vector<16x128xf32>
      %55 = arith.mulf %50, %54 : vector<16x128xf32>
      %c0_30 = arith.constant 0 : index
      %c0_31 = arith.constant 0 : index
      %56 = vector.load %arg7[%c0_30, %c0_31] : memref<1x128xf32, #tpu.memory_space<vmem>>, vector<1x128xf32>
      %57 = vector.broadcast %56 : vector<1x128xf32> to vector<16x128xf32>
      %58 = arith.mulf %55, %57 : vector<16x128xf32>
      %c0_32 = arith.constant 0 : index
      %c0_33 = arith.constant 0 : index
      %59 = vector.load %arg8[%c0_32, %c0_33] : memref<1x128xf32, #tpu.memory_space<vmem>>, vector<1x128xf32>
      %60 = vector.broadcast %59 : vector<1x128xf32> to vector<16x128xf32>
      %61 = arith.addf %58, %60 : vector<16x128xf32>
      %62 = arith.truncf %61 : vector<16x128xf32> to vector<16x128xbf16>
      %c0_34 = arith.constant 0 : index
      %c0_35 = arith.constant 0 : index
      %63 = vector.load %arg9[%c0_34, %c0_35] : memref<16x128xbf16, #tpu.memory_space<vmem>>, vector<16x128xbf16>
      tpu.vector_store %arg9[%c0_34, %c0_35], %62 {strides = array<i32>} : memref<16x128xbf16, #tpu.memory_space<vmem>>, vector<16x128xbf16>,
    } else {
    }
    return
  }
  func.func @transform_0(%arg0: i32, %arg1: i32) -> (i32, i32) {
    %c0_i32 = arith.constant 0 : i32
    %c0_i32_0 = arith.constant 0 : i32
    return %arg0, %c0_i32 : i32, i32
  }
  func.func @transform_1(%arg0: i32, %arg1: i32) -> (i32, i32) {
    %c0_i32 = arith.constant 0 : i32
    %c0_i32_0 = arith.constant 0 : i32
    return %c0_i32, %arg1 : i32, i32
  }
  func.func @transform_2(%arg0: i32, %arg1: i32) -> (i32, i32) {
    %c0_i32 = arith.constant 0 : i32
    %c0_i32_0 = arith.constant 0 : i32
    return %c0_i32, %arg1 : i32, i32
  }
  func.func @transform_3(%arg0: i32, %arg1: i32) -> (i32, i32) {
    %c0_i32 = arith.constant 0 : i32
    %c0_i32_0 = arith.constant 0 : i32
    return %arg1, %c0_i32 : i32, i32
  }
  func.func @transform_4(%arg0: i32, %arg1: i32) -> (i32, i32) {
    %c0_i32 = arith.constant 0 : i32
    %c0_i32_0 = arith.constant 0 : i32
    %c0_i32_1 = arith.constant 0 : i32
    return %c0_i32, %c0_i32_0 : i32, i32
  }
  func.func @transform_5(%arg0: i32, %arg1: i32) -> (i32, i32) {
    %c0_i32 = arith.constant 0 : i32
    %c0_i32_0 = arith.constant 0 : i32
    %c0_i32_1 = arith.constant 0 : i32
    return %c0_i32, %c0_i32_0 : i32, i32
  }
  func.func @transform_6(%arg0: i32, %arg1: i32) -> (i32, i32) {
    %c0_i32 = arith.constant 0 : i32
    %c0_i32_0 = arith.constant 0 : i32
    %c0_i32_1 = arith.constant 0 : i32
    return %c0_i32, %c0_i32_0 : i32, i32
  }
  func.func @transform_7(%arg0: i32, %arg1: i32) -> (i32, i32) {
    %c0_i32 = arith.constant 0 : i32
    %c0_i32_0 = arith.constant 0 : i32
    return %arg0, %c0_i32 : i32, i32
  }
}

</mosaic_0001>

<bundles_post_ra>
// kernel: _lambda_.9
= control target key start
LH: loop header
LB: loop body
LE: loop exit
PB: predicated region body
PF: predicated region fallthrough
CT: control target
= control target key end

     0   :  { %8 = vsyncpa [#allocation3], 0  ;;  %s323_s0 = inlined_call_operand.hbm [shape: f32[16,128], index: 0, kind: input, shape index: {}]   ;;  %s324_s1 = inlined_call_operand.hbm [shape: f32[1,128], index: 1, kind: input, shape index: {}]   ;;  %s325_s2 = inlined_call_operand.hbm [shape: f32[1,128], index: 2, kind: input, shape index: {}]   ;;  %s326_s3 = inlined_call_operand.hbm [shape: bf16[16,128], index: 3, kind: output, shape index: {}]  }
   0x1   :  { %9 = vsyncpa [#allocation6], 0 }
   0x2   :  { %10 = vsyncpa [#allocation4], 0  ;;  %s240_s12 = smov [#allocation5]   ;;  %s241_s14 = smov [#allocation2]  }
   0x3   :  { %s29_s13 = sshll.u32 %s240_s12, 4  ;;  %s16_s15 = sshll.u32 %s241_s14, 4  ;;  %s30_s13 = int_to_ptr.vmem [resolvable:$true] %s29_s13  ;;  %s268_s15 = int_to_ptr.vmem [resolvable:$true] %s16_s15 }
   0x4   :  { %s146_s18 = scalar_lea.hbm %s324_s1, 16 }
   0x5   :  { %p147_p0 = scmp.ne.s32.totalorder %s324_s1, %s146_s18  ;;  %p150_p1 = scmp.lt.u32.totalorder %s146_s18, %s324_s1 }
   0x7   :  { %p152_p2 = pnand %p150_p1, %p147_p0 }
   0x9   :  { %155 = shalt.err (!%p152_p2)
}
   0xa   :  { %s156_s23 = scalar_lea.vmem %s30_s13, 16  ;;  %s160_s24 = scalar_lea.vmem %s30_s13, 32 }
   0xb   :  { %p157_p3 = scmp.ne.s32.totalorder %s30_s13, %s156_s23  ;;  %p161_p4 = scmp.lt.s32.totalorder %s30_s13, %s30_s13 }
   0xc   :  { %p162_p5 = scmp.lt.s32.totalorder %s160_s24, %s156_s23 }
   0xe   :  { %p163_p6 = por %p162_p5, %p161_p4 }
  0x10   :  { %p164_p7 = pnand %p163_p6, %p157_p3 }
  0x12   :  { %167 = shalt.err (!%p164_p7)
}
  0x13   :  { %32 = dma.hbm_to_vmem [thread:$0]  %s324_s1, 16, %s30_s13, [#allocation6]  }
  0x14   :  { %s168_s29 = scalar_lea.hbm %s323_s0, 256 }
  0x15   :  { %p169_p8 = scmp.ne.s32.totalorder %s323_s0, %s168_s29  ;;  %p172_p9 = scmp.lt.u32.totalorder %s168_s29, %s323_s0 }
  0x17   :  { %p174_p10 = pnand %p172_p9, %p169_p8 }
  0x19   :  { %177 = shalt.err (!%p174_p10)
}
  0x1a   :  { %s178_s7 = scalar_lea.vmem %s268_s15, 256  ;;  %p183_p12 = scmp.lt.s32.totalorder %s268_s15, %s268_s15 }
  0x1b   :  { %p179_p11 = scmp.ne.s32.totalorder %s268_s15, %s178_s7  ;;  %p184_p13 = scmp.lt.s32.totalorder %s178_s7, %s178_s7 }
  0x1d   :  { %p185_p0 = por %p184_p13, %p183_p12 }
  0x1f   :  { %p186_p1 = pnand %p185_p0, %p179_p11 }
  0x21   :  { %189 = shalt.err (!%p186_p1)
}
  0x22   :  { %s242_s1 = smov 128   ;;  %s243_s8 = smov 8  }
  0x23   :  { %22 = dma.hbm_to_vmem [thread:$0]  %s323_s0, 256, %s268_s15, [#allocation3], %s242_s1, %s242_s1, %s243_s8  }
  0x24   :  { %s244_s11 = smov [#allocation7]   ;;  %s190_s16 = scalar_lea.hbm %s325_s2, 16 }
  0x25   :  { %s39_s12 = sshll.u32 %s244_s11, 4  ;;  %p191_p2 = scmp.ne.s32.totalorder %s325_s2, %s190_s16  ;;  %s40_s12 = int_to_ptr.vmem [resolvable:$true] %s39_s12 }
  0x26   :  { %p194_p3 = scmp.lt.u32.totalorder %s190_s16, %s325_s2 }
  0x28   :  { %p196_p4 = pnand %p194_p3, %p191_p2 }
  0x2a   :  { %199 = shalt.err (!%p196_p4)
}
  0x2b   :  { %s200_s21 = scalar_lea.vmem %s40_s12, 16  ;;  %s204_s0 = scalar_lea.vmem %s40_s12, 32 }
  0x2c   :  { %p201_p5 = scmp.ne.s32.totalorder %s40_s12, %s200_s21  ;;  %p205_p6 = scmp.lt.s32.totalorder %s40_s12, %s40_s12 }
  0x2d   :  { %p206_p7 = scmp.lt.s32.totalorder %s204_s0, %s200_s21 }
  0x2f   :  { %p207_p8 = por %p206_p7, %p205_p6 }
  0x31   :  { %p208_p9 = pnand %p207_p8, %p201_p5 }
  0x33   :  { %211 = shalt.err (!%p208_p9)
}
  0x34   :  { %42 = dma.hbm_to_vmem [thread:$0]  %s325_s2, 16, %s40_s12, [#allocation6]  }
  0x35   :  { %234 = dma.done.wait [#allocation3], 256  }
  0x36   :  { %235 = vsyncadd [#allocation3], 4294967040 }
  0x37   :  { %236 = dma.done.wait [#allocation6], 32  }
  0x38   :  { %237 = vsyncadd [#allocation6], 4294967264  ;;  %v52_v0 = vld [vmem:[#allocation2] sm:$0xff]  ;;  %v53_v1 = vld [vmem:[#allocation2 + $0x8] sm:$0xff]  ;;  %s245_s2 = smov [#allocation8]  }
  0x39   :  { %54 = vadd.xlane.f32.xlu0 %v52_v0  ;;  %v123_v18 = vld [vmem:[#allocation5] ss:$0 sm:$0xff]  ;;  %v124_v22 = vld [vmem:[#allocation7] ss:$0 sm:$0xff]  ;;  %s110_s23 = sshll.u32 %s245_s2, 4  ;;  %s111_s23 = int_to_ptr.vmem [resolvable:$true] %s110_s23 }
  0x3a   :  { %s212_s24 = scalar_lea.vmem %s111_s23, 128  ;;  %p217_p11 = scmp.lt.s32.totalorder %s111_s23, %s111_s23 }
  0x3b   :  { %p213_p10 = scmp.ne.s32.totalorder %s111_s23, %s212_s24  ;;  %p218_p12 = scmp.lt.s32.totalorder %s212_s24, %s212_s24 }
  0x3d   :  { %56 = vadd.xlane.f32.xlu0 %v53_v1  ;;  %p219_p13 = por %p218_p12, %p217_p11 }
  0x3f   :  { %p220_p0 = pnand %p219_p13, %p213_p10 }
  0xc6   :  { %v55_v2 = vpop.xlane.xlu0 %54 }
  0xc7   :  { %v59_v3 = vmul.f32 0.0078125, %v55_v2 }
  0xc9   :  { %v61_v4 = vsub.f32 %v52_v0, %v59_v3 }
  0xca   :  { %v57_v5 = vpop.xlane.xlu0 %56 }
  0xcb   :  { %v60_v6 = vmul.f32 0.0078125, %v57_v5  ;;  %v63_v7 = vmul.f32 %v61_v4, %v61_v4 }
  0xcd   :  { %v62_v8 = vsub.f32 %v53_v1, %v60_v6  ;;  %65 = vadd.xlane.f32.xlu1 %v63_v7 }
  0xcf   :  { %v64_v9 = vmul.f32 %v62_v8, %v62_v8 }
  0xd1   :  { %67 = vadd.xlane.f32.xlu1 %v64_v9 }
 0x15a   :  { %v66_v10 = vpop.xlane.xlu1 %65 }
 0x15b   :  { %v69_v11 = vmul.f32 0.0078125, %v66_v10 }
 0x15d   :  { %v71_v12 = vadd.f32 1e-12, %v69_v11 }
 0x15e   :  { %v68_v13 = vpop.xlane.xlu1 %67 }
 0x15f   :  { %142 = vrsqrt.f32 %v71_v12  ;;  %v70_v14 = vmul.f32 0.0078125, %v68_v13 }
 0x161   :  { %v72_v15 = vadd.f32 1e-12, %v70_v14 }
 0x163   :  { %144 = vrsqrt.f32 %v72_v15 }
 0x169   :  { %v143_v16 = vpop.eup %142 }
 0x16a   :  { %v75_v17 = vmul.f32 %v143_v16, %v61_v4 }
 0x16c   :  { %v84_v21 = vmul.f32 %v123_v18, %v75_v17 }
 0x16d   :  { %v145_v19 = vpop.eup %144 }
 0x16e   :  { %v76_v20 = vmul.f32 %v145_v19, %v62_v8  ;;  %v93_v24 = vadd.f32 %v124_v22, %v84_v21 }
 0x170   :  { %v85_v23 = vmul.f32 %v123_v18, %v76_v20 }
 0x172   :  { %v94_v25 = vadd.f32 %v124_v22, %v85_v23 }
 0x174   :  { %v132_v26 = vpack.c.bf16 %v94_v25, %v93_v24 }
 0x176   :  { %133 = vst [vmem:[#allocation8] sm:$0xff] %v132_v26  }
 0x177   :  { %223 = shalt.err (!%p220_p0)
}
 0x178   :  { %s224_s27 = scalar_lea.hbm %s326_s3, 128 }
 0x179   :  { %p225_p1 = scmp.ne.s32.totalorder %s326_s3, %s224_s27  ;;  %p228_p2 = scmp.lt.u32.totalorder %s224_s27, %s326_s3 }
 0x17b   :  { %p230_p3 = pnand %p228_p2, %p225_p1 }
 0x17d   :  { %233 = shalt.err (!%p230_p3)
}
 0x17e   :  { %s246_s5 = smov 64   ;;  %s247_s6 = smov 4  }
 0x17f   :  { %116 = dma.vmem_to_hbm [thread:$0]  %s111_s23, 128, %s326_s3, [#allocation4], %s246_s5, %s246_s5, %s247_s6  }
 0x180   :  { %238 = dma.done.wait [#allocation4], 128  }
 0x181   :  { %239 = vsyncadd [#allocation4], 4294967168 }
 0x182   :  { %120 = vsyncpa [#allocation3], 1 }
 0x183   :  { %121 = vsyncpa [#allocation6], 1 }
 0x184   :  { %122 = vsyncpa [#allocation4], 1 }

// kernel: _lambda_.12
= control target key start
LH: loop header
LB: loop body
LE: loop exit
PB: predicated region body
PF: predicated region fallthrough
CT: control target
= control target key end

     0   :  { %11 = vsyncpa [#allocation3], 0  ;;  %s689_s0 = inlined_call_operand.hbm [shape: bf16[16,128], index: 0, kind: input, shape index: {}]   ;;  %s690_s1 = inlined_call_operand.hbm [shape: bf16[128,128], index: 1, kind: input, shape index: {}]   ;;  %s691_s2 = inlined_call_operand.hbm [shape: f32[1,128], index: 2, kind: input, shape index: {}, may-alias: {2,5}]   ;;  %s692_s3 = inlined_call_operand.hbm [shape: bf16[16,128], index: 3, kind: input, shape index: {}]   ;;  %s693_s4 = inlined_call_operand.hbm [shape: f32[1,128], index: 4, kind: input, shape index: {}]   ;;  %s694_s5 = inlined_call_operand.hbm [shape: f32[1,128], index: 5, kind: input, shape index: {}, may-alias: {2,5}]   ;;  %s695_s6 = inlined_call_operand.hbm [shape: bf16[16,128], index: 6, kind: output, shape index: {}]  }
   0x1   :  { %12 = vsyncpa [#allocation6], 0 }
   0x2   :  { %13 = vsyncpa [#allocation9], 0 }
   0x3   :  { %14 = vsyncpa [#allocation12], 0 }
   0x4   :  { %15 = vsyncpa [#allocation4], 0  ;;  %s540_s21 = smov [#allocation5]   ;;  %s541_s23 = smov [#allocation8]  }
   0x5   :  { %s33_s22 = sshll.u32 %s540_s21, 4  ;;  %s55_s24 = sshll.u32 %s541_s23, 4  ;;  %s34_s22 = int_to_ptr.vmem [resolvable:$true] %s33_s22  ;;  %s586_s24 = int_to_ptr.vmem [resolvable:$true] %s55_s24 }
   0x6   :  { %s376_s27 = scalar_lea.hbm %s690_s1, 1024 }
   0x7   :  { %p377_p0 = scmp.ne.s32.totalorder %s690_s1, %s376_s27  ;;  %p380_p1 = scmp.lt.u32.totalorder %s376_s27, %s690_s1 }
   0x9   :  { %p382_p2 = pnand %p380_p1, %p377_p0 }
   0xb   :  { %385 = shalt.err (!%p382_p2)
}
   0xc   :  { %s386_s8 = scalar_lea.vmem %s34_s22, 1024  ;;  %p391_p4 = scmp.lt.s32.totalorder %s34_s22, %s34_s22 }
   0xd   :  { %p387_p3 = scmp.ne.s32.totalorder %s34_s22, %s386_s8  ;;  %p392_p5 = scmp.lt.s32.totalorder %s386_s8, %s386_s8 }
   0xf   :  { %p393_p6 = por %p392_p5, %p391_p4 }
  0x11   :  { %p394_p7 = pnand %p393_p6, %p387_p3 }
  0x13   :  { %397 = shalt.err (!%p394_p7)
}
  0x14   :  { %s542_s9 = smov 64   ;;  %s543_s10 = smov 4  }
  0x15   :  { %39 = dma.hbm_to_vmem [thread:$0]  %s690_s1, 1024, %s34_s22, [#allocation6], %s542_s9, %s542_s9, %s543_s10  }
  0x16   :  { %s398_s15 = scalar_lea.hbm %s692_s3, 128 }
  0x17   :  { %p399_p8 = scmp.ne.s32.totalorder %s692_s3, %s398_s15  ;;  %p402_p9 = scmp.lt.u32.totalorder %s398_s15, %s692_s3 }
  0x19   :  { %p404_p10 = pnand %p402_p9, %p399_p8 }
  0x1b   :  { %407 = shalt.err (!%p404_p10)
}
  0x1c   :  { %s408_s20 = scalar_lea.vmem %s586_s24, 128  ;;  %p413_p12 = scmp.lt.s32.totalorder %s586_s24, %s586_s24 }
  0x1d   :  { %p409_p11 = scmp.ne.s32.totalorder %s586_s24, %s408_s20  ;;  %p414_p13 = scmp.lt.s32.totalorder %s408_s20, %s408_s20 }
  0x1f   :  { %p415_p0 = por %p414_p13, %p413_p12 }
  0x21   :  { %p416_p1 = pnand %p415_p0, %p409_p11 }
  0x23   :  { %419 = shalt.err (!%p416_p1)
}
  0x24   :  { %61 = dma.hbm_to_vmem [thread:$0]  %s692_s3, 128, %s586_s24, [#allocation9], %s542_s9, %s542_s9, %s543_s10  }
  0x25   :  { %s544_s22 = smov [#allocation2]   ;;  %s545_s25 = smov [#allocation7]  }
  0x26   :  { %s21_s23 = sshll.u32 %s544_s22, 4  ;;  %s46_s26 = sshll.u32 %s545_s25, 4  ;;  %s22_s23 = int_to_ptr.vmem [resolvable:$true] %s21_s23  ;;  %s47_s26 = int_to_ptr.vmem [resolvable:$true] %s46_s26 }
  0x27   :  { %s420_s29 = scalar_lea.hbm %s689_s0, 128 }
  0x28   :  { %p421_p2 = scmp.ne.s32.totalorder %s689_s0, %s420_s29  ;;  %p424_p3 = scmp.lt.u32.totalorder %s420_s29, %s689_s0 }
  0x2a   :  { %p426_p4 = pnand %p424_p3, %p421_p2 }
  0x2c   :  { %429 = shalt.err (!%p426_p4)
}
  0x2d   :  { %s430_s3 = scalar_lea.vmem %s22_s23, 128  ;;  %p435_p6 = scmp.lt.s32.totalorder %s22_s23, %s22_s23 }
  0x2e   :  { %p431_p5 = scmp.ne.s32.totalorder %s22_s23, %s430_s3  ;;  %p436_p7 = scmp.lt.s32.totalorder %s430_s3, %s430_s3 }
  0x30   :  { %p437_p8 = por %p436_p7, %p435_p6 }
  0x32   :  { %p438_p9 = pnand %p437_p8, %p431_p5 }
  0x34   :  { %441 = shalt.err (!%p438_p9)
}
  0x35   :  { %27 = dma.hbm_to_vmem [thread:$0]  %s689_s0, 128, %s22_s23, [#allocation3], %s542_s9, %s542_s9, %s543_s10  }
  0x36   :  { %s442_s15 = scalar_lea.hbm %s691_s2, 16 }
  0x37   :  { %p443_p10 = scmp.ne.s32.totalorder %s691_s2, %s442_s15  ;;  %p446_p11 = scmp.lt.u32.totalorder %s442_s15, %s691_s2 }
  0x39   :  { %p448_p12 = pnand %p446_p11, %p443_p10 }
  0x3b   :  { %451 = shalt.err (!%p448_p12)
}
  0x3c   :  { %s452_s20 = scalar_lea.vmem %s47_s26, 16  ;;  %s456_s1 = scalar_lea.vmem %s47_s26, 32 }
  0x3d   :  { %p453_p13 = scmp.ne.s32.totalorder %s47_s26, %s452_s20  ;;  %p457_p0 = scmp.lt.s32.totalorder %s47_s26, %s47_s26 }
  0x3e   :  { %p458_p1 = scmp.lt.s32.totalorder %s456_s1, %s452_s20 }
  0x40   :  { %p459_p2 = por %p458_p1, %p457_p0 }
  0x42   :  { %p460_p3 = pnand %p459_p2, %p453_p13 }
  0x44   :  { %463 = shalt.err (!%p460_p3)
}
  0x45   :  { %49 = dma.hbm_to_vmem [thread:$0]  %s691_s2, 16, %s47_s26, [#allocation6]  }
  0x46   :  { %s546_s22 = smov [#allocation10]   ;;  %s547_s25 = smov [#allocation11]  }
  0x47   :  { %s68_s23 = sshll.u32 %s546_s22, 4  ;;  %s78_s27 = sshll.u32 %s547_s25, 4  ;;  %s69_s23 = int_to_ptr.vmem [resolvable:$true] %s68_s23  ;;  %s79_s27 = int_to_ptr.vmem [resolvable:$true] %s78_s27 }
  0x48   :  { %s464_s30 = scalar_lea.hbm %s693_s4, 16 }
  0x49   :  { %p465_p4 = scmp.ne.s32.totalorder %s693_s4, %s464_s30  ;;  %p468_p5 = scmp.lt.u32.totalorder %s464_s30, %s693_s4 }
  0x4b   :  { %p470_p6 = pnand %p468_p5, %p465_p4 }
  0x4d   :  { %473 = shalt.err (!%p470_p6)
}
  0x4e   :  { %s474_s2 = scalar_lea.vmem %s69_s23, 16  ;;  %s478_s26 = scalar_lea.vmem %s69_s23, 32 }
  0x4f   :  { %p475_p7 = scmp.ne.s32.totalorder %s69_s23, %s474_s2  ;;  %p479_p8 = scmp.lt.s32.totalorder %s69_s23, %s69_s23 }
  0x50   :  { %p480_p9 = scmp.lt.s32.totalorder %s478_s26, %s474_s2 }
  0x52   :  { %p481_p10 = por %p480_p9, %p479_p8 }
  0x54   :  { %p482_p11 = pnand %p481_p10, %p475_p7 }
  0x56   :  { %485 = shalt.err (!%p482_p11)
}
  0x57   :  { %71 = dma.hbm_to_vmem [thread:$0]  %s693_s4, 16, %s69_s23, [#allocation9]  }
  0x58   :  { %s486_s15 = scalar_lea.hbm %s694_s5, 16 }
  0x59   :  { %p487_p12 = scmp.ne.s32.totalorder %s694_s5, %s486_s15  ;;  %p490_p13 = scmp.lt.u32.totalorder %s486_s15, %s694_s5 }
  0x5b   :  { %p492_p0 = pnand %p490_p13, %p487_p12 }
  0x5d   :  { %495 = shalt.err (!%p492_p0)
}
  0x5e   :  { %s496_s20 = scalar_lea.vmem %s79_s27, 16  ;;  %s500_s1 = scalar_lea.vmem %s79_s27, 32 }
  0x5f   :  { %p497_p1 = scmp.ne.s32.totalorder %s79_s27, %s496_s20  ;;  %p501_p2 = scmp.lt.s32.totalorder %s79_s27, %s79_s27 }
  0x60   :  { %p502_p3 = scmp.lt.s32.totalorder %s500_s1, %s496_s20 }
  0x62   :  { %p503_p4 = por %p502_p3, %p501_p2 }
  0x64   :  { %p504_p5 = pnand %p503_p4, %p497_p1 }
  0x66   :  { %507 = shalt.err (!%p504_p5)
}
  0x67   :  { %81 = dma.hbm_to_vmem [thread:$0]  %s694_s5, 16, %s79_s27, [#allocation12]  }
  0x68   :  { %530 = dma.done.wait [#allocation3], 128  }
  0x69   :  { %531 = vsyncadd [#allocation3], 4294967168 }
  0x6a   :  { %532 = dma.done.wait [#allocation6], 1040  }
  0x6b   :  { %533 = vsyncadd [#allocation6], 4294966256 }
  0x6c   :  { %534 = dma.done.wait [#allocation9], 144  }
  0x6d   :  { %535 = vsyncadd [#allocation9], 4294967152 }
  0x6e   :  { %536 = dma.done.wait [#allocation12], 16  }
  0x6f   :  { %537 = vsyncadd [#allocation12], 4294967280  ;;  %v548_v0 = vmov 0.0   ;;  %vm549_vm0 = vmmov 0   ;;  %v363_v1 = vld [vmem:[#allocation5] sm:$0xff]   ;;  %v364_v2 = vld [vmem:[#allocation5 + $0x8] sm:$0xff]  }
  0x70   :  { %332 = vmatprep.subr.bf16.mxu0 %v548_v0  ;;  %348 = vmatprep.mubr.msk.bf16.mxu0 %vm549_vm0, %v548_v0  ;;  %v365_v3 = vld [vmem:[#allocation5 + $0x10] sm:$0xff]   ;;  %v366_v4 = vld [vmem:[#allocation5 + $0x18] sm:$0xff]   ;;  %v367_v5 = vld [vmem:[#allocation5 + $0x20] sm:$0xff]   ;;  %s550_s5 = smov [#allocation13]  }
  0x71   :  { %333 = vmatpush3.bf16.msra.mxu0 %v363_v1  ;;  %v368_v6 = vld [vmem:[#allocation5 + $0x28] sm:$0xff]   ;;  %v369_v7 = vld [vmem:[#allocation5 + $0x30] sm:$0xff]   ;;  %v370_v8 = vld [vmem:[#allocation5 + $0x38] sm:$0xff]   ;;  %s283_s21 = sshll.u32 %s550_s5, 4  ;;  %s284_s21 = int_to_ptr.vmem [resolvable:$true] %s283_s21 }
  0x72   :  { %334 = vmatprep.subr.bf16.mxu0 %v548_v0  ;;  %v371_v9 = vld [vmem:[#allocation2] sm:$0xff]   ;;  %v315_v10 = vld [vmem:[#allocation8] sm:$0xff]   ;;  %v298_v11 = vld [vmem:[#allocation7] ss:$0 sm:$0xff]  ;;  %s508_s22 = scalar_lea.vmem %s284_s21, 128  ;;  %p513_p7 = scmp.lt.s32.totalorder %s284_s21, %s284_s21 }
  0x73   :  { %v316_v12 = vunpack.c.l.bf16 %v315_v10  ;;  %v317_v20 = vunpack.c.h.bf16 %v315_v10  ;;  %v308_v38 = vld [vmem:[#allocation10] ss:$0 sm:$0xff]  ;;  %v309_v42 = vld [vmem:[#allocation11] ss:$0 sm:$0xff]  ;;  %p509_p6 = scmp.ne.s32.totalorder %s284_s21, %s508_s22  ;;  %p514_p8 = scmp.lt.s32.totalorder %s508_s22, %s508_s22 }
  0x75   :  { %335 = vmatpush3.bf16.msra.mxu0 %v364_v2  ;;  %p515_p9 = por %p514_p8, %p513_p7 }
  0x76   :  { %336 = vmatprep.subr.bf16.mxu0 %v548_v0 }
  0x77   :  { %p516_p10 = pnand %p515_p9, %p509_p6 }
  0x79   :  { %337 = vmatpush3.bf16.msra.mxu0 %v365_v3 }
  0x7a   :  { %338 = vmatprep.subr.bf16.mxu0 %v548_v0 }
  0x7d   :  { %339 = vmatpush3.bf16.msra.mxu0 %v366_v4 }
  0x7e   :  { %340 = vmatprep.subr.bf16.mxu0 %v548_v0 }
  0x81   :  { %341 = vmatpush3.bf16.msra.mxu0 %v367_v5 }
  0x82   :  { %342 = vmatprep.subr.bf16.mxu0 %v548_v0 }
  0x85   :  { %343 = vmatpush3.bf16.msra.mxu0 %v368_v6 }
  0x86   :  { %344 = vmatprep.subr.bf16.mxu0 %v548_v0 }
  0x89   :  { %345 = vmatpush3.bf16.msra.mxu0 %v369_v7 }
  0x8a   :  { %346 = vmatprep.subr.bf16.mxu0 %v548_v0 }
  0x8d   :  { %347 = vmatpush3.bf16.msra.mxu0 %v370_v8 }
  0x90   :  { %349 = vmatmul.mubr.bf16.vlgmr.msra.gmra.mrb[0].mxu0 %v371_v9 }
 0x163   :  { %v214_v13 = vpop.f32.mrb[0].mxu0 }
 0x164   :  { %v215_v14 = vadd.f32 %v298_v11, %v214_v13  ;;  %v350_v15 = vpop.f32.mrb[1].mxu0 }
 0x165   :  { %v217_v16 = vpop.f32.mrb[2].mxu0 }
 0x166   :  { %v218_v17 = vadd.f32 %v298_v11, %v217_v16  ;;  %v351_v18 = vpop.f32.mrb[3].mxu0  ;;  %v225_v19 = vadd.f32 %v316_v12, %v215_v14 }
 0x168   :  { %227 = vadd.xlane.f32.xlu0 %v225_v19  ;;  %v226_v21 = vadd.f32 %v317_v20, %v218_v17 }
 0x16c   :  { %229 = vadd.xlane.f32.xlu0 %v226_v21 }
 0x1f5   :  { %v228_v22 = vpop.xlane.xlu0 %227 }
 0x1f6   :  { %v232_v23 = vmul.f32 0.0078125, %v228_v22 }
 0x1f8   :  { %v234_v24 = vsub.f32 %v225_v19, %v232_v23 }
 0x1f9   :  { %v230_v25 = vpop.xlane.xlu0 %229 }
 0x1fa   :  { %v233_v26 = vmul.f32 0.0078125, %v230_v25  ;;  %v236_v27 = vmul.f32 %v234_v24, %v234_v24 }
 0x1fc   :  { %v235_v28 = vsub.f32 %v226_v21, %v233_v26  ;;  %238 = vadd.xlane.f32.xlu1 %v236_v27 }
 0x1fe   :  { %v237_v29 = vmul.f32 %v235_v28, %v235_v28 }
 0x200   :  { %240 = vadd.xlane.f32.xlu1 %v237_v29 }
 0x289   :  { %v239_v30 = vpop.xlane.xlu1 %238 }
 0x28a   :  { %v242_v31 = vmul.f32 0.0078125, %v239_v30 }
 0x28c   :  { %v244_v32 = vadd.f32 1e-12, %v242_v31 }
 0x28d   :  { %v241_v33 = vpop.xlane.xlu1 %240 }
 0x28e   :  { %372 = vrsqrt.f32 %v244_v32  ;;  %v243_v34 = vmul.f32 0.0078125, %v241_v33 }
 0x290   :  { %v245_v35 = vadd.f32 1e-12, %v243_v34 }
 0x292   :  { %374 = vrsqrt.f32 %v245_v35 }
 0x298   :  { %v373_v36 = vpop.eup %372 }
 0x299   :  { %v248_v37 = vmul.f32 %v373_v36, %v234_v24 }
 0x29b   :  { %v257_v41 = vmul.f32 %v308_v38, %v248_v37 }
 0x29c   :  { %v375_v39 = vpop.eup %374 }
 0x29d   :  { %v249_v40 = vmul.f32 %v375_v39, %v235_v28  ;;  %v266_v44 = vadd.f32 %v309_v42, %v257_v41 }
 0x29f   :  { %v258_v43 = vmul.f32 %v308_v38, %v249_v40 }
 0x2a1   :  { %v267_v45 = vadd.f32 %v309_v42, %v258_v43 }
 0x2a3   :  { %v321_v46 = vpack.c.bf16 %v267_v45, %v266_v44 }
 0x2a5   :  { %322 = vst [vmem:[#allocation13] sm:$0xff] %v321_v46  }
 0x2a6   :  { %519 = shalt.err (!%p516_p10)
}
 0x2a7   :  { %s520_s27 = scalar_lea.hbm %s695_s6, 128 }
 0x2a8   :  { %p521_p11 = scmp.ne.s32.totalorder %s695_s6, %s520_s27  ;;  %p524_p12 = scmp.lt.u32.totalorder %s520_s27, %s695_s6 }
 0x2aa   :  { %p526_p13 = pnand %p524_p12, %p521_p11 }
 0x2ac   :  { %529 = shalt.err (!%p526_p13)
}
 0x2ad   :  { %289 = dma.vmem_to_hbm [thread:$0]  %s284_s21, 128, %s695_s6, [#allocation4], %s542_s9, %s542_s9, %s543_s10  }
 0x2ae   :  { %538 = dma.done.wait [#allocation4], 128  }
 0x2af   :  { %539 = vsyncadd [#allocation4], 4294967168 }
 0x2b0   :  { %293 = vsyncpa [#allocation3], 1 }
 0x2b1   :  { %294 = vsyncpa [#allocation6], 1 }
 0x2b2   :  { %295 = vsyncpa [#allocation9], 1 }
 0x2b3   :  { %296 = vsyncpa [#allocation12], 1 }
 0x2b4   :  { %297 = vsyncpa [#allocation4], 1 }

// kernel: _lambda_.10
= control target key start
LH: loop header
LB: loop body
LE: loop exit
PB: predicated region body
PF: predicated region fallthrough
CT: control target
= control target key end

     0   :  { %8 = vsyncpa [#allocation4], 0  ;;  %s694_s0 = inlined_call_operand.hbm [shape: bf16[16,128], index: 0, kind: input, shape index: {}]   ;;  %s695_s1 = inlined_call_operand.hbm [shape: bf16[128,384], index: 1, kind: input, shape index: {}]   ;;  %s696_s2 = inlined_call_operand.hbm [shape: f32[1,384], index: 2, kind: input, shape index: {}]   ;;  %s697_s3 = inlined_call_operand.hbm [shape: bf16[16,384], index: 3, kind: output, shape index: {}]  }
   0x1   :  { %9 = vsyncpa [#allocation7], 0 }
   0x2   :  { %10 = vsyncpa [#allocation5], 0  ;;  %s609_s12 = smov [#allocation6]   ;;  %s515_s16 = scalar_lea.hbm %s695_s1, 3072 }
   0x3   :  { %s28_s13 = sshll.u32 %s609_s12, 4  ;;  %p516_p0 = scmp.ne.s32.totalorder %s695_s1, %s515_s16  ;;  %s29_s13 = int_to_ptr.vmem [resolvable:$true] %s28_s13 }
   0x4   :  { %p519_p1 = scmp.lt.u32.totalorder %s515_s16, %s695_s1 }
   0x6   :  { %p521_p2 = pnand %p519_p1, %p516_p0 }
   0x8   :  { %524 = shalt.err (!%p521_p2)
}
   0x9   :  { %s525_s21 = scalar_lea.vmem %s29_s13, 3072  ;;  %p530_p4 = scmp.lt.s32.totalorder %s29_s13, %s29_s13 }
   0xa   :  { %p526_p3 = scmp.ne.s32.totalorder %s29_s13, %s525_s21  ;;  %p531_p5 = scmp.lt.s32.totalorder %s525_s21, %s525_s21 }
   0xc   :  { %p532_p6 = por %p531_p5, %p530_p4 }
   0xe   :  { %p533_p7 = pnand %p532_p6, %p526_p3 }
  0x10   :  { %536 = shalt.err (!%p533_p7)
}
  0x11   :  { %s610_s22 = smov 192   ;;  %s611_s23 = smov 12  }
  0x12   :  { %34 = dma.hbm_to_vmem [thread:$0]  %s695_s1, 3072, %s29_s13, [#allocation7], %s610_s22, %s610_s22, %s611_s23  }
  0x13   :  { %s612_s26 = smov [#allocation3]   ;;  %s537_s30 = scalar_lea.hbm %s694_s0, 128 }
  0x14   :  { %s16_s27 = sshll.u32 %s612_s26, 4  ;;  %p538_p8 = scmp.ne.s32.totalorder %s694_s0, %s537_s30  ;;  %s17_s27 = int_to_ptr.vmem [resolvable:$true] %s16_s27 }
  0x15   :  { %p541_p9 = scmp.lt.u32.totalorder %s537_s30, %s694_s0 }
  0x17   :  { %p543_p10 = pnand %p541_p9, %p538_p8 }
  0x19   :  { %546 = shalt.err (!%p543_p10)
}
  0x1a   :  { %s547_s8 = scalar_lea.vmem %s17_s27, 128  ;;  %p552_p12 = scmp.lt.s32.totalorder %s17_s27, %s17_s27 }
  0x1b   :  { %p548_p11 = scmp.ne.s32.totalorder %s17_s27, %s547_s8  ;;  %p553_p13 = scmp.lt.s32.totalorder %s547_s8, %s547_s8 }
  0x1d   :  { %p554_p0 = por %p553_p13, %p552_p12 }
  0x1f   :  { %p555_p1 = pnand %p554_p0, %p548_p11 }
  0x21   :  { %558 = shalt.err (!%p555_p1)
}
  0x22   :  { %s613_s1 = smov 64   ;;  %s614_s9 = smov 4  }
  0x23   :  { %22 = dma.hbm_to_vmem [thread:$0]  %s694_s0, 128, %s17_s27, [#allocation4], %s613_s1, %s613_s1, %s614_s9  }
  0x24   :  { %s615_s12 = smov [#allocation8]   ;;  %s559_s16 = scalar_lea.hbm %s696_s2, 48 }
  0x25   :  { %s41_s13 = sshll.u32 %s615_s12, 4  ;;  %p560_p2 = scmp.ne.s32.totalorder %s696_s2, %s559_s16  ;;  %s42_s13 = int_to_ptr.vmem [resolvable:$true] %s41_s13 }
  0x26   :  { %p563_p3 = scmp.lt.u32.totalorder %s559_s16, %s696_s2 }
  0x28   :  { %p565_p4 = pnand %p563_p3, %p560_p2 }
  0x2a   :  { %568 = shalt.err (!%p565_p4)
}
  0x2b   :  { %s569_s21 = scalar_lea.vmem %s42_s13, 48  ;;  %s573_s0 = scalar_lea.vmem %s42_s13, 64 }
  0x2c   :  { %p570_p5 = scmp.ne.s32.totalorder %s42_s13, %s569_s21  ;;  %p574_p6 = scmp.lt.s32.totalorder %s42_s13, %s42_s13 }
  0x2d   :  { %p575_p7 = scmp.lt.s32.totalorder %s573_s0, %s569_s21 }
  0x2f   :  { %p576_p8 = por %p575_p7, %p574_p6 }
  0x31   :  { %p577_p9 = pnand %p576_p8, %p570_p5 }
  0x33   :  { %580 = shalt.err (!%p577_p9)
}
  0x34   :  { %44 = dma.hbm_to_vmem [thread:$0]  %s696_s2, 48, %s42_s13, [#allocation7]  }
  0x35   :  { %603 = dma.done.wait [#allocation4], 128  }
  0x36   :  { %604 = vsyncadd [#allocation4], 4294967168 }
  0x37   :  { %605 = dma.done.wait [#allocation7], 3120  }
  0x38   :  { %606 = vsyncadd [#allocation7], 4294964176  ;;  %v616_v0 = vmov 0.0   ;;  %vm617_vm0 = vmmov 0   ;;  %v618_v1 = vmov 0   ;;  %v514_v26 = vld [vmem:[#allocation3] sm:$0xff]   ;;  %v346_v27 = vlaneseq }
  0x39   :  { %451 = vmatprep.subr.bf16.mxu1 %v616_v0  ;;  %467 = vmatprep.mubr.msk.bf16.mxu1 %vm617_vm0, %v616_v0  ;;  %v482_v2 = vld [vmem:[#allocation6 + $0x4] ss:$12 sps:$4 sm:$0xff]   ;;  %v484_v3 = vld [vmem:[#allocation6 + $0x8] ss:$12 sps:$4 sm:$0xff]   ;;  %v485_v4 = vld [vmem:[#allocation6] ss:$12 sps:$4 sm:$0xff]  }
  0x3a   :  { %271 = vmatprep.mubr.bf16.mxu0 %v618_v1  ;;  %239 = vmatprep.subr.bf16.mxu0 %v482_v2  ;;  %v486_v5 = vld [vmem:[#allocation6 + $0x1c] ss:$12 sps:$4 sm:$0xff]   ;;  %v488_v6 = vld [vmem:[#allocation6 + $0x20] ss:$12 sps:$4 sm:$0xff]   ;;  %v489_v7 = vld [vmem:[#allocation6 + $0x18] ss:$12 sps:$4 sm:$0xff]  }
  0x3b   :  { %452 = vmatpush3.bf16.msra.mxu1 %v484_v3  ;;  %240 = vmatpush1.bf16.msra.mxu0 %v485_v4  ;;  %v490_v8 = vld [vmem:[#allocation6 + $0x34] ss:$12 sps:$4 sm:$0xff]   ;;  %v492_v9 = vld [vmem:[#allocation6 + $0x38] ss:$12 sps:$4 sm:$0xff]   ;;  %v493_v10 = vld [vmem:[#allocation6 + $0x30] ss:$12 sps:$4 sm:$0xff]  }
  0x3c   :  { %453 = vmatprep.subr.bf16.mxu1 %v616_v0  ;;  %241 = vmatprep.subr.bf16.mxu0 %v486_v5  ;;  %v494_v11 = vld [vmem:[#allocation6 + $0x4c] ss:$12 sps:$4 sm:$0xff]   ;;  %v496_v12 = vld [vmem:[#allocation6 + $0x50] ss:$12 sps:$4 sm:$0xff]   ;;  %v497_v13 = vld [vmem:[#allocation6 + $0x48] ss:$12 sps:$4 sm:$0xff]  }
  0x3d   :  { %v498_v14 = vld [vmem:[#allocation6 + $0x64] ss:$12 sps:$4 sm:$0xff]   ;;  %v500_v15 = vld [vmem:[#allocation6 + $0x68] ss:$12 sps:$4 sm:$0xff]   ;;  %v501_v16 = vld [vmem:[#allocation6 + $0x60] ss:$12 sps:$4 sm:$0xff]  }
  0x3e   :  { %v502_v17 = vld [vmem:[#allocation6 + $0x7c] ss:$12 sps:$4 sm:$0xff]   ;;  %v504_v18 = vld [vmem:[#allocation6 + $0x80] ss:$12 sps:$4 sm:$0xff]   ;;  %v505_v19 = vld [vmem:[#allocation6 + $0x78] ss:$12 sps:$4 sm:$0xff]  }
  0x3f   :  { %454 = vmatpush3.bf16.msra.mxu1 %v488_v6  ;;  %242 = vmatpush1.bf16.msra.mxu0 %v489_v7  ;;  %v506_v20 = vld [vmem:[#allocation6 + $0x94] ss:$12 sps:$4 sm:$0xff]   ;;  %v508_v21 = vld [vmem:[#allocation6 + $0x98] ss:$12 sps:$4 sm:$0xff]   ;;  %v509_v22 = vld [vmem:[#allocation6 + $0x90] ss:$12 sps:$4 sm:$0xff]  }
  0x40   :  { %455 = vmatprep.subr.bf16.mxu1 %v616_v0  ;;  %243 = vmatprep.subr.bf16.mxu0 %v490_v8  ;;  %v510_v23 = vld [vmem:[#allocation6 + $0xac] ss:$12 sps:$4 sm:$0xff]   ;;  %v512_v24 = vld [vmem:[#allocation6 + $0xb0] ss:$12 sps:$4 sm:$0xff]   ;;  %v513_v25 = vld [vmem:[#allocation6 + $0xa8] ss:$12 sps:$4 sm:$0xff]  }
  0x41   :  { %v347_v28 = vshrl.u32 %v346_v27, 7  ;;  %v344_v30 = vld [vmem:[#allocation8] sm:$0x7]  ;;  %s619_s2 = smov [#allocation9]  }
  0x42   :  { %s396_s26 = sshll.u32 %s619_s2, 4  ;;  %s397_s26 = int_to_ptr.vmem [resolvable:$true] %s396_s26 }
  0x43   :  { %456 = vmatpush3.bf16.msra.mxu1 %v492_v9  ;;  %244 = vmatpush1.bf16.msra.mxu0 %v493_v10  ;;  %v356_v29 = vsub.s32 2, %v347_v28  ;;  %v348_v31 = vsub.s32 0, %v347_v28  ;;  %v352_v32 = vsub.s32 1, %v347_v28  ;;  %s581_s27 = scalar_lea.vmem %s397_s26, 384  ;;  %p586_p11 = scmp.lt.s32.totalorder %s397_s26, %s397_s26 }
  0x44   :  { %457 = vmatprep.subr.bf16.mxu1 %v616_v0  ;;  %245 = vmatprep.subr.bf16.mxu0 %v494_v11  ;;  %p582_p10 = scmp.ne.s32.totalorder %s397_s26, %s581_s27  ;;  %p587_p12 = scmp.lt.s32.totalorder %s581_s27, %s581_s27 }
  0x45   :  { %v357_v33 = vrot.slane %v344_v30, %v356_v29  ;;  %v349_v34 = vrot.slane %v344_v30, %v348_v31  ;;  %v353_v35 = vrot.slane %v344_v30, %v352_v32 }
  0x46   :  { %p588_p13 = por %p587_p12, %p586_p11 }
  0x47   :  { %458 = vmatpush3.bf16.msra.mxu1 %v496_v12  ;;  %246 = vmatpush1.bf16.msra.mxu0 %v497_v13 }
  0x48   :  { %459 = vmatprep.subr.bf16.mxu1 %v616_v0  ;;  %247 = vmatprep.subr.bf16.mxu0 %v498_v14  ;;  %p589_p0 = pnand %p588_p13, %p582_p10 }
  0x4b   :  { %460 = vmatpush3.bf16.msra.mxu1 %v500_v15  ;;  %248 = vmatpush1.bf16.msra.mxu0 %v501_v16 }
  0x4c   :  { %461 = vmatprep.subr.bf16.mxu1 %v616_v0  ;;  %249 = vmatprep.subr.bf16.mxu0 %v502_v17 }
  0x4f   :  { %462 = vmatpush3.bf16.msra.mxu1 %v504_v18  ;;  %250 = vmatpush1.bf16.msra.mxu0 %v505_v19 }
  0x50   :  { %463 = vmatprep.subr.bf16.mxu1 %v616_v0  ;;  %251 = vmatprep.subr.bf16.mxu0 %v506_v20 }
  0x53   :  { %464 = vmatpush3.bf16.msra.mxu1 %v508_v21  ;;  %252 = vmatpush1.bf16.msra.mxu0 %v509_v22 }
  0x54   :  { %465 = vmatprep.subr.bf16.mxu1 %v616_v0  ;;  %253 = vmatprep.subr.bf16.mxu0 %v510_v23 }
  0x57   :  { %466 = vmatpush3.bf16.msra.mxu1 %v512_v24  ;;  %254 = vmatpush1.bf16.msra.mxu0 %v513_v25 }
  0x5a   :  { %468 = vmatmul.mubr.bf16.vlgmr.msra.gmra.mrb[0].mxu1 %v514_v26  ;;  %272 = vmatmul.mubr.bf16.vlgmr.msra.gmra.mrb[0].mxu0 %v514_v26 }
 0x12d   :  { %v316_v36 = vpop.f32.mrb[0].mxu1  ;;  %v273_v38 = vpop.f32.mrb[0].mxu0 }
 0x12e   :  { %v363_v37 = vadd.f32 %v357_v33, %v316_v36  ;;  %v469_v39 = vpop.f32.mrb[1].mxu1  ;;  %v361_v40 = vadd.f32 %v349_v34, %v273_v38  ;;  %v275_v41 = vpop.f32.mrb[1].mxu0 }
 0x12f   :  { %v319_v42 = vpop.f32.mrb[2].mxu1  ;;  %v362_v44 = vadd.f32 %v353_v35, %v275_v41  ;;  %v277_v46 = vpop.f32.mrb[2].mxu0 }
 0x130   :  { %v439_v43 = vpack.c.bf16 %v363_v37, %v363_v37  ;;  %v366_v45 = vadd.f32 %v357_v33, %v319_v42  ;;  %v470_v47 = vpop.f32.mrb[3].mxu1  ;;  %v364_v48 = vadd.f32 %v349_v34, %v277_v46  ;;  %v279_v49 = vpop.f32.mrb[3].mxu0 }
 0x131   :  { %v438_v50 = vpack.c.bf16 %v362_v44, %v361_v40  ;;  %v365_v52 = vadd.f32 %v353_v35, %v279_v49 }
 0x132   :  { %388 = vst [vmem:[#allocation9 + $0x8] sm:$0xf] %v439_v43  ;;  %v441_v51 = vpack.c.bf16 %v366_v45, %v366_v45 }
 0x133   :  { %387 = vst [vmem:[#allocation9] sm:$0xff] %v438_v50  ;;  %v440_v53 = vpack.c.bf16 %v365_v52, %v364_v48 }
 0x134   :  { %390 = vst [vmem:[#allocation9 + $0x14] sm:$0xf] %v441_v51 }
 0x135   :  { %389 = vst [vmem:[#allocation9 + $0xc] sm:$0xff] %v440_v53 }
 0x136   :  { %592 = shalt.err (!%p589_p0)
}
 0x137   :  { %s593_s30 = scalar_lea.hbm %s697_s3, 384 }
 0x138   :  { %p594_p1 = scmp.ne.s32.totalorder %s697_s3, %s593_s30  ;;  %p597_p2 = scmp.lt.u32.totalorder %s593_s30, %s697_s3 }
 0x13a   :  { %p599_p3 = pnand %p597_p2, %p594_p1 }
 0x13c   :  { %602 = shalt.err (!%p599_p3)
}
 0x13d   :  { %402 = dma.vmem_to_hbm [thread:$0]  %s397_s26, 384, %s697_s3, [#allocation5], %s610_s22, %s610_s22, %s611_s23  }
 0x13e   :  { %607 = dma.done.wait [#allocation5], 384  }
 0x13f   :  { %608 = vsyncadd [#allocation5], 4294966912 }
 0x140   :  { %406 = vsyncpa [#allocation4], 1 }
 0x141   :  { %407 = vsyncpa [#allocation7], 1 }
 0x142   :  { %408 = vsyncpa [#allocation5], 1 }

// kernel: _lambda_.11
= control target key start
LH: loop header
LB: loop body
LE: loop exit
PB: predicated region body
PF: predicated region fallthrough
CT: control target
= control target key end

     0   :  { %s1834_s0 = inlined_call_operand.hbm [shape: bf16[2,8,384], index: 0, kind: input, shape index: {}, may-alias: {0,1,2}]   ;;  %s1835_s1 = inlined_call_operand.hbm [shape: bf16[2,8,384], index: 1, kind: input, shape index: {}, may-alias: {0,1,2}]   ;;  %s1836_s2 = inlined_call_operand.hbm [shape: bf16[2,8,384], index: 2, kind: input, shape index: {}, may-alias: {0,1,2}]   ;;  %s1837_s3 = inlined_call_operand.hbm [shape: f32[2,1,8], index: 3, kind: input, shape index: {}]   ;;  %s1838_s4 = inlined_call_operand.hbm [shape: bf16[2,8,128], index: 4, kind: output, shape index: {}]  }
   0x1   :  { %1849 = sst [smem:[#allocation22_spill]] %s1834_s0 }
   0x2   :  { %1850 = sst [smem:[#allocation23_spill]] %s1835_s1 }
   0x3   :  { %9 = vsyncpa [#allocation4], 0 }
   0x4   :  { %11 = vsyncpa [#allocation4 + $0x1], 0 }
   0x5   :  { %12 = vsyncpa [#allocation7], 0 }
   0x6   :  { %14 = vsyncpa [#allocation7 + $0x1], 0 }
   0x7   :  { %15 = vsyncpa [#allocation10], 0 }
   0x8   :  { %17 = vsyncpa [#allocation10 + $0x1], 0 }
   0x9   :  { %18 = vsyncpa [#allocation5], 0 }
   0xa   :  { %20 = vsyncpa [#allocation5 + $0x1], 0  ;;  %s1470_s15 = smov 0   ;;  %s1472_s16 = smov 0  }
   0xb   :  { %s1474_s17 = smov 0   ;;  %s1476_s18 = smov 0  }
   0xc   :  { %s1478_s19 = smov 0   ;;  %s1480_s20 = smov 0  }
   0xd LB: > { %1851 = sst [smem:[#allocation16_spill]] %s1413_s15  ;;  %s1501_s21 = sadd.s32 4294967295, %s1433_s20   ;;  %s1433_s20 = sphi %s1480_s20, %s26_s20   ;;  %s1429_s19 = sphi %s1478_s19, %s1884_s19   ;;  %s1425_s18 = sphi %s1476_s18, %s1883_s18   ;;  %s1421_s17 = sphi %s1474_s17, %s1879_s17   ;;  %s1417_s16 = sphi %s1472_s16, %s1882_s16   ;;  %s1413_s15 = sphi %s1470_s15, %s1881_s15  }
   0xe   : > { %1852 = sst [smem:[#allocation17_spill]] %s1421_s17  ;;  %s1012_s22 = sadd.s32 4294967294, %s1433_s20  }
   0xf   : > { %1853 = sst [smem:[#allocation18_spill]] %s1433_s20  ;;  %s38_s23 = sadd.s32 1, %s1429_s19 }
  0x10   : > { %s47_s24 = sadd.s32 1, %s1421_s17  ;;  %p40_p0 = scmp.ge.s32.totalorder %s38_s23, 2 }
  0x11   : > { %p54_p1 = scmp.ne.s32.totalorder %s1421_s17, %s1417_s16  ;;  %p55_p2 = scmp.eq.s32.totalorder %s1433_s20, 0 }
  0x12   : > { %p60_p3 = scmp.ne.s32.totalorder %s1417_s16, %s1413_s15  ;;  %s1886_s23 = smov (%p40_p0, %s38_s23), 0 }
  0x13   : > { %1854 = sst [smem:[#allocation19_spill]] %s1886_s23  ;;  %p1513_p4 = por %p55_p2, %p54_p1 }
  0x14   : > { %p61_p5 = scmp.eq.s32.totalorder %s1501_s21, 0  ;;  %s42_s26 = ssub.s32 %s1429_s19, %s1886_s23 }
  0x15   : > { %p164_p6 = scmp.eq.s32.totalorder %s1501_s21, 1  ;;  %p45_p7 = scmp.eq.s32.totalorder %s42_s26, 0 }
  0x16   : > { %p1521_p8 = por %p61_p5, %p60_p3  ;;  %p170_p10 = scmp.eq.s32.totalorder %s1012_s22, 1 }
  0x17   : > { %p1525_p9 = por %p164_p6, %p54_p1  ;;  %p1141_p13 = scmp.lt.s32.totalorder %s1433_s20, 2 }
  0x18   : > { %s1856_s27 = scalar_select %p1521_p8, 1, 0 }
  0x19   : > { %s1857_s28 = scalar_select %p1525_p9, 1, 0 }
  0x1a   : > { %s1530_s29 = scalar_select %p45_p7, %s1421_s17, %s47_s24  }
  0x1b   : > { %p1532_p11 = por %p170_p10, %p60_p3  ;;  %s1539_s5 = sand.u32 1, %s1421_s17  }
  0x1c   : > { %1858 = sst [smem:[#allocation20_spill]] %s1530_s29  ;;  %s1542_s6 = sshll.u32 %s1539_s5, 2 }
  0x1d   : > { %s1859_s30 = scalar_select %p1532_p11, 1, 0 }
  0x1e   : > { %s1545_s7 = smul.u32 192, %s1429_s19  ;;  %p1549_p0 = pnand %p1141_p13, %p1513_p4 }
  0x1f   : > { %1860 = sst [smem:[#allocation21_spill]] %s1859_s30  ;;  %s211_s9 = sand.u32 1, %s1433_s20  }
  0x20   : > { %s1861_s8 = scalar_select %p1549_p0, 1, 0 }
  0x21   : > { %s1862_s1 = sld [smem:[#allocation23_spill]]  ;;  %s215_s14 = scalar_lea.vmem [#allocation6], %s1542_s6 }
  0x22   : > { %s224_s22 = sshll.u32 %s215_s14, 4  ;;  %s1564_s24 = scalar_lea.sflag [#allocation7], %s211_s9  ;;  %s1561_s22 = int_to_ptr.vmem [resolvable:$true] %s224_s22 }
  0x23   : > { %p1569_p3 = pneg %p1549_p0 }
  0x27   : > { %s905_s12 = scalar_lea.hbm %s1862_s1, %s1545_s7  ;;  %s1226_s14 = scalar_lea.hbm %s1862_s1, 384 }
  0x28   : > { %s1558_s13 = scalar_lea.hbm %s905_s12, 64  ;;  %s1251_s25 = scalar_lea.hbm %s905_s12, 128 }
  0x29   : > { %p1222_p2 = scmp.ne.s32.totalorder %s1558_s13, %s1251_s25  ;;  %p1227_p6 = scmp.lt.u32.totalorder %s1558_s13, %s1862_s1 }
  0x2a   : > { %p1228_p7 = scmp.lt.u32.totalorder %s1226_s14, %s1251_s25  ;;  %p1230_p13 = scmp.lt.u32.totalorder %s1251_s25, %s1558_s13 }
  0x2b   : > { %p1224_p4 = pnand %p1569_p3, %p1222_p2 }
  0x2c   : > { %p1229_p10 = por %p1228_p7, %p1227_p6 }
  0x2d   : > { %p1225_p5 = pneg %p1224_p4 }
  0x2e   : > { %p1231_p12 = por %p1230_p13, %p1229_p10 }
  0x30   : > { %p1232_p1 = pnand %p1231_p12, %p1225_p5 }
  0x32   : > { %1235 = shalt.err (!%p1232_p1)
}
  0x33   : > { %s1236_s9 = scalar_lea.vmem %s1561_s22, 64  ;;  %s1435_s12 = smov [#allocation6]  }
  0x34   : > { %p1237_p2 = scmp.ne.s32.totalorder %s1561_s22, %s1236_s9  ;;  %s1241_s10 = sshll.u32 %s1435_s12, 4  ;;  %s1242_s10 = int_to_ptr.vmem [resolvable:$false] %s1241_s10 }
  0x35   : > { %s1243_s23 = scalar_lea.vmem %s1242_s10, 128  ;;  %p1244_p9 = scmp.lt.s32.totalorder %s1561_s22, %s1242_s10 }
  0x36   : > { %p1239_p4 = pnand %p1237_p2, %p1569_p3  ;;  %p1245_p8 = scmp.lt.s32.totalorder %s1243_s23, %s1236_s9 }
  0x38   : > { %p1240_p11 = pneg %p1239_p4  ;;  %p1246_p6 = por %p1245_p8, %p1244_p9 }
  0x3a   : > { %p1247_p7 = pnand %p1246_p6, %p1240_p11 }
  0x3c   : > { %1250 = shalt.err (!%p1247_p7)
}
  0x3d   : > { %1130 = dma.hbm_to_vmem [thread:$0]  (!%p1549_p0), %s1558_s13, 64, %s1561_s22, %s1564_s24  }
  0x3e   : > { %p266_p12 = scmp.lt.s32.totalorder %s1433_s20, 3  ;;  %p1864_p1 = scmp.ge.s32.totalorder %s1433_s20, 1 }
  0x3f   : > { %s1866_s0 = sld [smem:[#allocation22_spill]]  ;;  %s194_s9 = scalar_lea.vmem [#allocation3], %s1542_s6 }
  0x40   : > { %p1596_p5 = pnand %p1864_p1, %p266_p12  ;;  %s204_s12 = sshll.u32 %s194_s9, 4  ;;  %s205_s12 = int_to_ptr.vmem [resolvable:$true] %s204_s12 }
  0x41   : > { %s191_s10 = scalar_lea.sflag [#allocation4], %s1539_s5 }
  0x42   : > { %s1865_s29 = scalar_select %p1596_p5, 1, 0 }
  0x45   : > { %s1604_s14 = scalar_lea.hbm %s1866_s0, %s1545_s7  ;;  %s1257_s1 = scalar_lea.hbm %s1866_s0, 384 }
  0x46   : > { %s1252_s13 = scalar_lea.hbm %s1604_s14, 64  ;;  %p1258_p10 = scmp.lt.u32.totalorder %s1604_s14, %s1866_s0 }
  0x47   : > { %p1253_p8 = scmp.ne.s32.totalorder %s1604_s14, %s1252_s13  ;;  %p1259_p13 = scmp.lt.u32.totalorder %s1257_s1, %s1252_s13 }
  0x48   : > { %p1261_p4 = scmp.lt.u32.totalorder %s1252_s13, %s1604_s14 }
  0x49   : > { %p1255_p9 = pnand %p1253_p8, %p1569_p3  ;;  %p1260_p2 = por %p1259_p13, %p1258_p10 }
  0x4b   : > { %p1256_p11 = pneg %p1255_p9  ;;  %p1262_p6 = por %p1261_p4, %p1260_p2 }
  0x4d   : > { %p1263_p7 = pnand %p1262_p6, %p1256_p11 }
  0x4f   : > { %1266 = shalt.err (!%p1263_p7)
}
  0x50   : > { %s1267_s9 = scalar_lea.vmem %s205_s12, 64  ;;  %s1436_s17 = smov [#allocation3]  }
  0x51   : > { %p1268_p12 = scmp.ne.s32.totalorder %s205_s12, %s1267_s9  ;;  %s1272_s20 = sshll.u32 %s1436_s17, 4  ;;  %s1273_s20 = int_to_ptr.vmem [resolvable:$false] %s1272_s20 }
  0x52   : > { %s1274_s22 = scalar_lea.vmem %s1273_s20, 128  ;;  %p1275_p9 = scmp.lt.s32.totalorder %s205_s12, %s1273_s20 }
  0x53   : > { %p1270_p1 = pnand %p1268_p12, %p1569_p3  ;;  %p1276_p5 = scmp.lt.s32.totalorder %s1274_s22, %s1267_s9 }
  0x55   : > { %p1271_p8 = pneg %p1270_p1  ;;  %p1277_p0 = por %p1276_p5, %p1275_p9 }
  0x57   : > { %p1278_p10 = pnand %p1277_p0, %p1271_p8 }
  0x59   : > { %1281 = shalt.err (!%p1278_p10)
}
  0x5a   : > { %p1867_p13 = scmp.ne.s32.totalorder %s1861_s8, 0  ;;  %s912_s23 = scalar_lea.hbm %s1836_s2, %s1545_s7 }
  0x5b   : > { %s235_s25 = scalar_lea.vmem [#allocation8], %s1542_s6  ;;  %s913_s11 = scalar_lea.hbm %s912_s23, 128 }
  0x5c   : > { %1127 = dma.hbm_to_vmem [thread:$0]  (!%p1867_p13), %s1604_s14, 64, %s205_s12, %s191_s10  }
  0x5d   : > { %s244_s17 = sshll.u32 %s235_s25, 4  ;;  %s1312_s20 = scalar_lea.hbm %s912_s23, 192  ;;  %s245_s17 = int_to_ptr.vmem [resolvable:$true] %s244_s17 }
  0x5e   : > { %p1283_p11 = scmp.ne.s32.totalorder %s913_s11, %s1312_s20  ;;  %s1287_s0 = scalar_lea.hbm %s1836_s2, 384 }
  0x5f   : > { %p1288_p2 = scmp.lt.u32.totalorder %s913_s11, %s1836_s2  ;;  %p1289_p4 = scmp.lt.u32.totalorder %s1287_s0, %s1312_s20 }
  0x60   : > { %p1285_p0 = pnand %p1283_p11, %p1569_p3  ;;  %p1291_p7 = scmp.lt.u32.totalorder %s1312_s20, %s913_s11 }
  0x61   : > { %p1290_p6 = por %p1289_p4, %p1288_p2 }
  0x62   : > { %p1286_p5 = pneg %p1285_p0 }
  0x63   : > { %p1292_p12 = por %p1291_p7, %p1290_p6 }
  0x65   : > { %p1293_p1 = pnand %p1292_p12, %p1286_p5 }
  0x67   : > { %1296 = shalt.err (!%p1293_p1)
}
  0x68   : > { %s1297_s6 = scalar_lea.vmem %s245_s17, 64  ;;  %s1437_s7 = smov [#allocation8]  }
  0x69   : > { %p1298_p8 = scmp.ne.s32.totalorder %s245_s17, %s1297_s6  ;;  %s1302_s14 = sshll.u32 %s1437_s7, 4  ;;  %s1303_s14 = int_to_ptr.vmem [resolvable:$false] %s1302_s14 }
  0x6a   : > { %s1304_s12 = scalar_lea.vmem %s1303_s14, 128  ;;  %p1305_p11 = scmp.lt.s32.totalorder %s245_s17, %s1303_s14 }
  0x6b   : > { %p1300_p9 = pnand %p1298_p8, %p1569_p3  ;;  %p1306_p0 = scmp.lt.s32.totalorder %s1304_s12, %s1297_s6 }
  0x6d   : > { %p1301_p10 = pneg %p1300_p9  ;;  %p1307_p13 = por %p1306_p0, %p1305_p11 }
  0x6f   : > { %p1308_p2 = pnand %p1307_p13, %p1301_p10 }
  0x71   : > { %1311 = shalt.err (!%p1308_p2)
}
  0x72   : > { %p1868_p4 = scmp.ne.s32.totalorder %s1861_s8, 0  ;;  %s1021_s0 = sshll.u32 %s1429_s19, 4 }
  0x73   : > { %s254_s15 = scalar_lea.vmem [#allocation9], %s1539_s5  ;;  %s1648_s13 = scalar_lea.hbm %s1837_s3, %s1021_s0 }
  0x74   : > { %1133 = dma.hbm_to_vmem [thread:$0]  (!%p1868_p4), %s913_s11, 64, %s245_s17, %s1564_s24  }
  0x75   : > { %s261_s30 = sshll.u32 %s254_s15, 4  ;;  %s252_s23 = scalar_lea.sflag [#allocation10], %s1539_s5  ;;  %s262_s30 = int_to_ptr.vmem [resolvable:$true] %s261_s30 }
  0x76   : > { %s1313_s25 = scalar_lea.hbm %s1648_s13, 16  ;;  %s1318_s11 = scalar_lea.hbm %s1837_s3, 32 }
  0x77   : > { %p1314_p13 = scmp.ne.s32.totalorder %s1648_s13, %s1313_s25  ;;  %p1319_p7 = scmp.lt.u32.totalorder %s1648_s13, %s1837_s3 }
  0x78   : > { %p1320_p12 = scmp.lt.u32.totalorder %s1318_s11, %s1313_s25  ;;  %p1322_p8 = scmp.lt.u32.totalorder %s1313_s25, %s1648_s13 }
  0x79   : > { %p1316_p5 = pnand %p1314_p13, %p1569_p3 }
  0x7a   : > { %p1321_p1 = por %p1320_p12, %p1319_p7 }
  0x7b   : > { %p1317_p6 = pneg %p1316_p5 }
  0x7c   : > { %p1323_p9 = por %p1322_p8, %p1321_p1 }
  0x7e   : > { %p1324_p10 = pnand %p1323_p9, %p1317_p6 }
  0x80   : > { %1327 = shalt.err (!%p1324_p10)
}
  0x81   : > { %s1328_s5 = scalar_lea.vmem %s262_s30, 16  ;;  %s1438_s22 = smov [#allocation9]  }
  0x82   : > { %p1329_p11 = scmp.ne.s32.totalorder %s262_s30, %s1328_s5  ;;  %s1333_s6 = sshll.u32 %s1438_s22, 4  ;;  %s1334_s6 = int_to_ptr.vmem [resolvable:$false] %s1333_s6 }
  0x83   : > { %s1335_s7 = scalar_lea.vmem %s1334_s6, 32  ;;  %p1336_p13 = scmp.lt.s32.totalorder %s262_s30, %s1334_s6 }
  0x84   : > { %p1331_p0 = pnand %p1329_p11, %p1569_p3  ;;  %p1337_p5 = scmp.lt.s32.totalorder %s1335_s7, %s1328_s5 }
  0x86   : > { %p1332_p2 = pneg %p1331_p0  ;;  %p1338_p4 = por %p1337_p5, %p1336_p13 }
  0x88   : > { %p1339_p7 = pnand %p1338_p4, %p1332_p2 }
  0x8a   : > { %1342 = shalt.err (!%p1339_p7)
}
  0x8b   : > { %p1869_p12 = scmp.ne.s32.totalorder %s1861_s8, 0  ;;  %p1870_p6 = scmp.ne.s32.totalorder %s1865_s29, 0 }
  0x8c   : > { %s1671_s26 = sand.u32 (!%p1870_p6), 1, %s1417_s16   ;;  %p1871_p3 = scmp.ne.s32.totalorder (!%p1870_p6), %s1856_s27, 0 }
  0x8d   : > { %1136 = dma.hbm_to_vmem [thread:$0]  (!%p1869_p12), %s1648_s13, 16, %s262_s30, %s252_s23  }
  0x8e   : > { %270 = sbr.rel (%p1870_p6) target bundleno = 1638 (0x666), region = 36  ;;  %s1674_s14 = sshll.u32 (!%p1870_p6), %s1671_s26, 2 }
  0x8f   : > { %s273_s12 = scalar_lea.sflag (!%p1870_p6), [#allocation4], %s1671_s26  ;;  %s1678_s0 = scalar_lea.vmem (!%p1870_p6), [#allocation3], %s1674_s14 }
  0x95   : > { %1396 = dma.done.wait (%p1871_p3), %s273_s12, 64  }
  0x96   : > { %1398 = vsyncadd (%p1871_p3), %s273_s12, 4294967232  ;;  %s281_s8 = sand.u32 1, %s1501_s21   ;;  %s1686_s15 = scalar_lea.vmem [#allocation6], %s1674_s14 }
  0x97   : > { %s282_s29 = scalar_lea.sflag [#allocation7], %s281_s8 }
  0x98   : > { %1400 = dma.done.wait (%p1871_p3), %s282_s29, 128  }
  0x99   : > { %1402 = vsyncadd (%p1871_p3), %s282_s29, 4294967168  ;;  %s1693_s30 = scalar_lea.vmem [#allocation8], %s1674_s14  ;;  %s300_s10 = scalar_lea.sflag [#allocation10], %s1671_s26 }
  0x9a   : > { %s302_s1 = scalar_lea.vmem [#allocation9], %s1671_s26 }
  0x9b   : > { %1404 = dma.done.wait (%p1871_p3), %s300_s10, 16  }
  0x9c   : > { %1406 = vsyncadd (%p1871_p3), %s300_s10, 4294967280  ;;  %v1439_v0 = vmov 0.0   ;;  %vm1440_vm0 = vmmov 0   ;;  %vm352_vm1 = vcmask 261120   ;;  %v344_v1 = vld [vmem:[%s1686_s15] sm:$0xf] }
  0x9d   : > { %1065 = vmatprep.subr.bf16.mxu0 %v1439_v0  ;;  %1067 = vmatprep.mubr.msk.bf16.mxu0 %vm1440_vm0, %v1439_v0  ;;  %v357_v2 = vsel %vm352_vm1, %v344_v1, 0  ;;  %v343_v3 = vld [vmem:[%s1678_s0] sm:$0xf]  ;;  %v1714_v4 = vld [vmem:[%s302_s1] ss:$0 sm:$0xff]  ;;  %vm399_vm2 = vcmask 64512  }
  0x9e   : > { %1071 = vmatprep.subr.bf16.mxu1 %v1439_v0  ;;  %1073 = vmatprep.mubr.msk.bf16.mxu1 %vm1440_vm0, %v1439_v0  ;;  %v1196_v11 = vld [vmem:[%s1686_s15] ss:$0 sps:$4 sm:$0xff]   ;;  %s1441_s21 = smov 96   ;;  %v1197_v12 = vld [vmem:[%s1678_s0] ss:$0 sps:$4 sm:$0xff]   ;;  %s1442_s27 = smov 64  }
  0x9f   : > { %1066 = vmatpush3.bf16.xpose.msra.mxu0 %v357_v2  ;;  %471 = vrot.lane.b32.xlu1 %v1196_v11, %s1441_s21  ;;  %v1199_v13 = vld [vmem:[%s1678_s0] ss:$0 sps:$4 sm:$0xff]   ;;  %v1200_v14 = vld [vmem:[%s1686_s15] ss:$0 sps:$4 sm:$0xff]   ;;  %s1443_s13 = smov 32   ;;  %vm415_vm3 = vcmask 1043456  }
  0xa0   : > { %1083 = vmatprep.subr.bf16.mxu0 %v1439_v0  ;;  %v1201_v15 = vld [vmem:[%s1678_s0] ss:$0 sps:$4 sm:$0xff]   ;;  %v345_v21 = vld [vmem:[%s1693_s30] sm:$0xf]  ;;  %v1198_v23 = vld [vmem:[%s1686_s15] ss:$0 sps:$4 sm:$0xff]  }
  0xa1   : > { %v417_v22 = vsel %vm415_vm3, %v345_v21, 0  ;;  %vm586_vm4 = vcmask 523520   ;;  %vm714_vm5 = vcmask 785920   ;;  %vm842_vm6 = vcmask 1048320   ;;  %s1046_s23 = sshll.u32 %s1425_s18, 6  ;;  %s340_s25 = scalar_lea.vmem [#allocation11], %s1674_s14 }
  0xa2   : > { %1072 = vmatpush3.bf16.msra.mxu1 %v417_v22  ;;  %s862_s24 = sshll.u32 %s340_s25, 4  ;;  %s1785_s20 = scalar_lea.hbm %s1838_s4, %s1046_s23  ;;  %s1787_s24 = int_to_ptr.vmem [resolvable:$true] %s862_s24 }
  0xa3   : > { %466 = vrot.lane.b32.xlu1 %v1197_v12, %s1441_s21  ;;  %1077 = vmatprep.subr.bf16.mxu1 %v1439_v0  ;;  %s848_s9 = scalar_lea.sflag [#allocation5], %s1671_s26  ;;  %s1343_s5 = scalar_lea.vmem %s1787_s24, 64 }
  0xa4   : > { %p1344_p4 = scmp.ne.s32.totalorder %s1787_s24, %s1343_s5  ;;  %p1872_p1 = scmp.ne.s32.totalorder %s1857_s28, 0 }
  0xa5   : > { %s1444_s18 = smov [#allocation11]  }
  0xa6   : > { %1068 = vmatmul.mubr.msk.bf16.vlgmr.msra.gmra.mrb[0].mxu0 %vm352_vm1, %v343_v3  ;;  %p1345_p8 = pnand %p1344_p4, %p1872_p1  ;;  %s1347_s22 = sshll.u32 %s1444_s18, 4  ;;  %s1348_s22 = int_to_ptr.vmem [resolvable:$false] %s1347_s22 }
  0xa7   : > { %1085 = vmatprep.mubr.msk.bf16.mxu0 %vm1440_vm0, %v1439_v0  ;;  %594 = vrot.lane.b32.xlu1 %v1199_v13, %s1442_s27  ;;  %v1204_v13 = vld [vmem:[%s1693_s30] ss:$0 sps:$4 sm:$0xff]   ;;  %s1349_s6 = scalar_lea.vmem %s1348_s22, 128  ;;  %p1350_p10 = scmp.lt.s32.totalorder %s1787_s24, %s1348_s22 }
  0xa8   : > { %p1346_p9 = pneg %p1345_p8  ;;  %p1351_p11 = scmp.lt.s32.totalorder %s1349_s6, %s1343_s5 }
  0xaa   : > { %p1352_p0 = por %p1351_p11, %p1350_p10 }
  0xab   : > { %727 = vrot.lane.b32.xlu1 %v1200_v14, %s1443_s13 }
  0xac   : > { %p1353_p2 = pnand %p1352_p0, %p1346_p9 }
  0xaf   : > { %722 = vrot.lane.b32.xlu1 %v1201_v15, %s1443_s13 }
 0x111   : > { %v472_v26 = vpop.permute.xlu1 %471 }
 0x112   : > { %v477_v28 = vsel %vm352_vm1, %v472_v26, 0 }
 0x115   : > { %v467_v30 = vpop.permute.xlu1 %466 }
 0x119   : > { %v595_v32 = vpop.permute.xlu1 %594 }
 0x11d   : > { %v728_v34 = vpop.permute.xlu1 %727 }
 0x11e   : > { %v733_v35 = vsel %vm352_vm1, %v728_v34, 0 }
 0x121   : > { %v723_v36 = vpop.permute.xlu1 %722 }
 0x179   : > { %v393_v5 = vpop.f32.mrb[0].mxu0 }
 0x17a   : > { %v394_v6 = vadd.f32 %v1714_v4, %v393_v5  ;;  %v1069_v7 = vpop.f32.mrb[1].mxu0 }
 0x17b   : > { %v396_v8 = vpop.f32.mrb[2].mxu0  ;;  %v1203_v7 = vld [vmem:[%s1693_s30] ss:$0 sps:$4 sm:$0xff]  }
 0x17c   : > { %v1070_v9 = vpop.f32.mrb[3].mxu0  ;;  %v400_v10 = vsel %vm399_vm2, %v394_v6, -inf }
 0x17d   : > { %401 = vmax.xlane.f32.xlu0 %v400_v10 }
 0x20a   : > { %v402_v16 = vpop.xlane.xlu0 %401 }
 0x20b   : > { %v403_v17 = vsub.f32 %v394_v6, %v402_v16  ;;  %v1202_v6 = vld [vmem:[%s1693_s30] ss:$0 sps:$4 sm:$0xff]  }
 0x20d   : > { %v404_v18 = vmul.f32 1.442695, %v403_v17 }
 0x20f   : > { %1205 = vpow2.f32 %v404_v18 }
 0x219   : > { %v1206_v19 = vpop.eup %1205 }
 0x21a   : > { %v406_v20 = vsel %vm399_vm2, %v1206_v19, 0.0 }
 0x21b   : > { %407 = vadd.xlane.f32.xlu0 %v406_v20 }
 0x231   : > { %599 = vrot.lane.b32.xlu0 %v1198_v23, %s1442_s27 }
 0x2a8   : > { %v408_v24 = vpop.xlane.xlu0 %407 }
 0x2a9   : > { %1207 = vrcp.f32 %v408_v24 }
 0x2ac   : > { %v600_v31 = vpop.permute.xlu0 %599 }
 0x2ad   : > { %v605_v33 = vsel %vm352_vm1, %v600_v31, 0 }
 0x2b3   : > { %v1208_v25 = vpop.eup %1207 }
 0x2b4   : > { %v410_v27 = vmul.f32 %v1208_v25, %v1206_v19 }
 0x2b6   : > { %v411_v29 = vpack.c.bf16 %v410_v27, %v410_v27 }
 0x2b8   : > { %1074 = vmatmul.mubr.msk.bf16.vlgmr.msra.gmra.mrb[0].mxu1 %vm399_vm2, %v411_v29 }
 0x2b9   : > { %1078 = vmatpush3.bf16.xpose.msra.mxu1 %v477_v28  ;;  %1079 = vmatprep.mubr.msk.bf16.mxu1 %vm1440_vm0, %v1439_v0 }
 0x2ba   : > { %1089 = vmatprep.subr.bf16.mxu1 %v1439_v0 }
 0x2c0   : > { %1080 = vmatmul.mubr.msk.bf16.vlgmr.msra.gmra.mrb[4].mxu1 %vm352_vm1, %v467_v30 }
 0x2c1   : > { %1090 = vmatpush3.bf16.xpose.msra.mxu1 %v605_v33  ;;  %1091 = vmatprep.mubr.msk.bf16.mxu1 %vm1440_vm0, %v1439_v0 }
 0x2c2   : > { %1101 = vmatprep.subr.bf16.mxu1 %v1439_v0 }
 0x2c8   : > { %1092 = vmatmul.mubr.msk.bf16.vlgmr.msra.gmra.mrb[8].mxu1 %vm352_vm1, %v595_v32 }
 0x2c9   : > { %1102 = vmatpush3.bf16.xpose.msra.mxu1 %v733_v35  ;;  %1103 = vmatprep.mubr.msk.bf16.mxu1 %vm1440_vm0, %v1439_v0 }
 0x2d0   : > { %1104 = vmatmul.mubr.msk.bf16.vlgmr.msra.gmra.mrb[12].mxu1 %vm352_vm1, %v723_v36 }
 0x38b   : > { %v453_v37 = vpop.f32.mrb[0].mxu1 }
 0x38c   : > { %459 = vst.msk [vmem:[#allocation2] sm:$0xff] %vm352_vm1, %v453_v37  ;;  %v1075_v38 = vpop.f32.mrb[1].mxu1 }
 0x38d   : > { %v456_v39 = vpop.f32.mrb[2].mxu1 }
 0x38e   : > { %v1076_v40 = vpop.f32.mrb[3].mxu1 }
 0x393   : > { %v513_v41 = vpop.f32.mrb[4].mxu1 }
 0x394   : > { %v514_v42 = vadd.f32 %v1714_v4, %v513_v41  ;;  %v1081_v43 = vpop.f32.mrb[5].mxu1 }
 0x395   : > { %v516_v44 = vpop.f32.mrb[6].mxu1 }
 0x396   : > { %v1082_v45 = vpop.f32.mrb[7].mxu1  ;;  %v519_v46 = vsel %vm399_vm2, %v514_v42, -inf }
 0x397   : > { %520 = vmax.xlane.f32.xlu1 %v519_v46 }
 0x39b   : > { %v641_v47 = vpop.f32.mrb[8].mxu1 }
 0x39c   : > { %v642_v48 = vadd.f32 %v1714_v4, %v641_v47  ;;  %v1093_v49 = vpop.f32.mrb[9].mxu1 }
 0x39d   : > { %v644_v50 = vpop.f32.mrb[10].mxu1 }
 0x39e   : > { %v647_v51 = vsel %vm399_vm2, %v642_v48, -inf  ;;  %v1094_v52 = vpop.f32.mrb[11].mxu1 }
 0x39f   : > { %648 = vmax.xlane.f32.xlu0 %v647_v51 }
 0x3a3   : > { %v769_v53 = vpop.f32.mrb[12].mxu1 }
 0x3a4   : > { %v770_v54 = vadd.f32 %v1714_v4, %v769_v53  ;;  %v1105_v55 = vpop.f32.mrb[13].mxu1 }
 0x3a5   : > { %v772_v56 = vpop.f32.mrb[14].mxu1 }
 0x3a6   : > { %v775_v57 = vsel %vm399_vm2, %v770_v54, -inf  ;;  %v1106_v58 = vpop.f32.mrb[15].mxu1 }
 0x3a7   : > { %776 = vmax.xlane.f32.xlu1 %v775_v57 }
 0x424   : > { %v521_v59 = vpop.xlane.xlu1 %520 }
 0x425   : > { %v522_v60 = vsub.f32 %v514_v42, %v521_v59 }
 0x427   : > { %v523_v61 = vmul.f32 1.442695, %v522_v60 }
 0x429   : > { %1209 = vpow2.f32 %v523_v61 }
 0x42c   : > { %v649_v62 = vpop.xlane.xlu0 %648 }
 0x42d   : > { %v650_v63 = vsub.f32 %v642_v48, %v649_v62 }
 0x42f   : > { %v651_v1 = vmul.f32 1.442695, %v650_v63 }
 0x431   : > { %1211 = vpow2.f32 %v651_v1 }
 0x433   : > { %v1210_v2 = vpop.eup %1209 }
 0x434   : > { %v525_v3 = vsel %vm399_vm2, %v1210_v2, 0.0  ;;  %v777_v8 = vpop.xlane.xlu1 %776 }
 0x435   : > { %526 = vadd.xlane.f32.xlu1 %v525_v3  ;;  %v778_v9 = vsub.f32 %v770_v54, %v777_v8 }
 0x437   : > { %v779_v10 = vmul.f32 1.442695, %v778_v9 }
 0x439   : > { %1213 = vpow2.f32 %v779_v10 }
 0x43b   : > { %v1212_v4 = vpop.eup %1211 }
 0x43c   : > { %v653_v5 = vsel %vm399_vm2, %v1212_v4, 0.0 }
 0x43d   : > { %654 = vadd.xlane.f32.xlu0 %v653_v5 }
 0x443   : > { %v1214_v11 = vpop.eup %1213 }
 0x444   : > { %v781_v12 = vsel %vm399_vm2, %v1214_v11, 0.0 }
 0x446   : > { %662 = vrot.lane.b32.xlu1 %v1202_v6, %s1442_s27 }
 0x453   : > { %534 = vrot.lane.b32.xlu0 %v1203_v7, %s1441_s21 }
 0x46a   : > { %782 = vadd.xlane.f32.xlu1 %v781_v12 }
 0x47b   : > { %790 = vrot.lane.b32.xlu1 %v1204_v13, %s1443_s13 }
 0x4c2   : > { %v527_v14 = vpop.xlane.xlu1 %526 }
 0x4c3   : > { %1215 = vrcp.f32 %v527_v14 }
 0x4c6   : > { %v663_v20 = vpop.permute.xlu1 %662 }
 0x4c7   : > { %v668_v22 = vsel %vm415_vm3, %v663_v20, 0 }
 0x4ca   : > { %v655_v15 = vpop.xlane.xlu0 %654 }
 0x4cb   : > { %1217 = vrcp.f32 %v655_v15 }
 0x4cd   : > { %v1216_v16 = vpop.eup %1215 }
 0x4ce   : > { %v529_v17 = vmul.f32 %v1216_v16, %v1210_v2  ;;  %v535_v18 = vpop.permute.xlu0 %534 }
 0x4cf   : > { %v540_v19 = vsel %vm415_vm3, %v535_v18, 0 }
 0x4d0   : > { %1084 = vmatpush3.bf16.msra.mxu0 %v540_v19  ;;  %v530_v21 = vpack.c.bf16 %v529_v17, %v529_v17 }
 0x4d1   : > { %1095 = vmatprep.subr.bf16.mxu0 %v1439_v0 }
 0x4d3   : > { %1086 = vmatmul.mubr.msk.bf16.vlgmr.msra.gmra.mrb[4].mxu0 %vm399_vm2, %v530_v21 }
 0x4d4   : > { %1096 = vmatpush3.bf16.msra.mxu0 %v668_v22  ;;  %1097 = vmatprep.mubr.msk.bf16.mxu0 %vm1440_vm0, %v1439_v0 }
 0x4d5   : > { %v1218_v23 = vpop.eup %1217  ;;  %1107 = vmatprep.subr.bf16.mxu0 %v1439_v0 }
 0x4d6   : > { %v657_v24 = vmul.f32 %v1218_v23, %v1212_v4 }
 0x4d8   : > { %v658_v25 = vpack.c.bf16 %v657_v24, %v657_v24 }
 0x4db   : > { %1098 = vmatmul.mubr.msk.bf16.vlgmr.msra.gmra.mrb[8].mxu0 %vm399_vm2, %v658_v25 }
 0x4dc   : > { %1109 = vmatprep.mubr.msk.bf16.mxu0 %vm1440_vm0, %v1439_v0 }
 0x4f7   : > { %v783_v26 = vpop.xlane.xlu1 %782 }
 0x4f8   : > { %1219 = vrcp.f32 %v783_v26 }
 0x4fb   : > { %v791_v27 = vpop.permute.xlu1 %790 }
 0x4fc   : > { %v796_v28 = vsel %vm415_vm3, %v791_v27, 0 }
 0x4fd   : > { %1108 = vmatpush3.bf16.msra.mxu0 %v796_v28 }
 0x502   : > { %v1220_v29 = vpop.eup %1219 }
 0x503   : > { %v785_v30 = vmul.f32 %v1220_v29, %v1214_v11 }
 0x505   : > { %v786_v31 = vpack.c.bf16 %v785_v30, %v785_v30 }
 0x507   : > { %1110 = vmatmul.mubr.msk.bf16.vlgmr.msra.gmra.mrb[12].mxu0 %vm399_vm2, %v786_v31 }
 0x5a6   : > { %v576_v32 = vpop.f32.mrb[4].mxu0 }
 0x5a7   : > { %583 = vrot.lane.b32.xlu0 %v576_v32, %s1443_s13  ;;  %v1087_v33 = vpop.f32.mrb[5].mxu0 }
 0x5a8   : > { %v579_v34 = vpop.f32.mrb[6].mxu0 }
 0x5a9   : > { %v1088_v35 = vpop.f32.mrb[7].mxu0 }
 0x5ae   : > { %v704_v36 = vpop.f32.mrb[8].mxu0 }
 0x5af   : > { %711 = vrot.lane.b32.xlu1 %v704_v36, %s1442_s27  ;;  %v1099_v0 = vpop.f32.mrb[9].mxu0 }
 0x5b0   : > { %v707_v37 = vpop.f32.mrb[10].mxu0 }
 0x5b1   : > { %v1100_v38 = vpop.f32.mrb[11].mxu0 }
 0x5da   : > { %v832_v39 = vpop.f32.mrb[12].mxu0 }
 0x5db   : > { %839 = vrot.lane.b32.xlu0 %v832_v39, %s1441_s21  ;;  %v1111_v40 = vpop.f32.mrb[13].mxu0 }
 0x5dc   : > { %v835_v41 = vpop.f32.mrb[14].mxu0 }
 0x5dd   : > { %v1112_v42 = vpop.f32.mrb[15].mxu0 }
 0x619   : > { %v584_v43 = vpop.permute.xlu0 %583 }
 0x61a   : > { %587 = vst.msk [vmem:[#allocation2] sm:$0xff] %vm586_vm4, %v584_v43 }
 0x621   : > { %v712_v44 = vpop.permute.xlu1 %711 }
 0x622   : > { %715 = vst.msk [vmem:[#allocation2] sm:$0xff] %vm714_vm5, %v712_v44 }
 0x64d   : > { %v840_v45 = vpop.permute.xlu0 %839 }
 0x64e   : > { %843 = vst.msk [vmem:[#allocation2] sm:$0xff] %vm842_vm6, %v840_v45 }
 0x655   : > { %v844_v46 = vld [vmem:[#allocation2] sm:$0xff] }
 0x656   : > { %v845_v47 = vpack.c.bf16 %v844_v46, %v844_v46 }
 0x658   : > { %846 = vst [vmem:[%s340_s25] sm:$0xf] %v845_v47 }
 0x659   : > { %1356 = shalt.err (!%p1353_p2)
}
 0x65a   : > { %s1357_s7 = scalar_lea.hbm %s1785_s20, 64  ;;  %s1361_s12 = scalar_lea.hbm %s1838_s4, 128 }
 0x65b   : > { %p1358_p13 = scmp.ne.s32.totalorder %s1785_s20, %s1357_s7  ;;  %p1362_p12 = scmp.lt.u32.totalorder %s1785_s20, %s1838_s4 }
 0x65c   : > { %p1363_p6 = scmp.lt.u32.totalorder %s1361_s12, %s1357_s7  ;;  %p1365_p4 = scmp.lt.u32.totalorder %s1357_s7, %s1785_s20 }
 0x65d   : > { %p1359_p5 = pnand %p1358_p13, %p1872_p1 }
 0x65e   : > { %p1364_p3 = por %p1363_p6, %p1362_p12 }
 0x65f   : > { %p1360_p7 = pneg %p1359_p5 }
 0x660   : > { %p1366_p8 = por %p1365_p4, %p1364_p3 }
 0x662   : > { %p1367_p9 = pnand %p1366_p8, %p1360_p7 }
 0x664   : > { %1370 = shalt.err (!%p1367_p9)
}
 0x665   : > { %1122 = dma.vmem_to_hbm [thread:$0]  (%p1872_p1), %s1787_s24, 64, %s1785_s20, %s848_s9  }
 0x666 PF: > { %s1873_s29 = sld [smem:[#allocation16_spill]]  ;;  %s1874_s15 = sld [smem:[#allocation21_spill]] }
 0x667   : > { %s1875_s30 = sld [smem:[#allocation18_spill]] }
 0x66c   : > { %s874_s10 = sand.u32 1, %s1873_s29   ;;  %p1876_p10 = scmp.ne.s32.totalorder %s1874_s15, 0 }
 0x66d   : > { %p1877_p11 = scmp.ge.s32.totalorder %s1875_s30, 2  ;;  %s875_s1 = scalar_lea.sflag [#allocation5], %s874_s10 }
 0x66f   : > { %p1138_p0 = pnand %p1877_p11, %p1876_p10 }
 0x671   : > { %1408 = dma.done.wait (!%p1138_p0), %s875_s1, 64  }
 0x672   : > { %1410 = vsyncadd (!%p1138_p0), %s875_s1, 4294967232  ;;  %s26_s20 = sadd.s32 1, %s1875_s30   ;;  %s1878_s21 = sld [smem:[#allocation17_spill]] }
 0x673   : > { %p23_p2 = scmp.ge.s32.totalorder %s26_s20, 4   ;;  %s1879_s17 = sld [smem:[#allocation20_spill]] }
 0x674   : > { %s1880_s28 = sld [smem:[#allocation19_spill]]  ;;  %s1881_s15 = smov %s1417_s16 }
 0x675   : > { %s1883_s18 = smov %s1429_s19  ;;  %25 = sbr.rel (!%p23_p2) target bundleno = 13 (0xd), region = 118 }
 0x678   : > { %s1882_s16 = smov %s1878_s21 }
 0x67a   : > { %s1884_s19 = smov %s1880_s28 }
 0x67c   :  { %880 = vsyncpa [#allocation4], 1 }
 0x67d   :  { %882 = vsyncpa [#allocation4 + $0x1], 1 }
 0x67e   :  { %883 = vsyncpa [#allocation7], 1 }
 0x67f   :  { %885 = vsyncpa [#allocation7 + $0x1], 1 }
 0x680   :  { %886 = vsyncpa [#allocation10], 1 }
 0x681   :  { %888 = vsyncpa [#allocation10 + $0x1], 1 }
 0x682   :  { %889 = vsyncpa [#allocation5], 1 }
 0x683   :  { %891 = vsyncpa [#allocation5 + $0x1], 1 }

// kernel: _lambda_.13
= control target key start
LH: loop header
LB: loop body
LE: loop exit
PB: predicated region body
PF: predicated region fallthrough
CT: control target
= control target key end

     0   :  { %12 = vsyncpa [#allocation4], 0  ;;  %s1565_s0 = inlined_call_operand.hbm [shape: bf16[16,128], index: 0, kind: input, shape index: {}]   ;;  %s1566_s1 = inlined_call_operand.hbm [shape: bf16[128,512], index: 1, kind: input, shape index: {}]   ;;  %s1567_s2 = inlined_call_operand.hbm [shape: f32[1,512], index: 2, kind: input, shape index: {}]   ;;  %s1568_s3 = inlined_call_operand.hbm [shape: bf16[512,128], index: 3, kind: input, shape index: {}]   ;;  %s1569_s4 = inlined_call_operand.hbm [shape: f32[1,128], index: 4, kind: input, shape index: {}, may-alias: {4,6}]   ;;  %s1570_s5 = inlined_call_operand.hbm [shape: f32[1,128], index: 5, kind: input, shape index: {}]   ;;  %s1571_s6 = inlined_call_operand.hbm [shape: f32[1,128], index: 6, kind: input, shape index: {}, may-alias: {4,6}]   ;;  %s1572_s7 = inlined_call_operand.hbm [shape: bf16[16,128], index: 7, kind: output, shape index: {}]  }
   0x1   :  { %13 = vsyncpa [#allocation7], 0 }
   0x2   :  { %14 = vsyncpa [#allocation10], 0 }
   0x3   :  { %15 = vsyncpa [#allocation13], 0 }
   0x4   :  { %16 = vsyncpa [#allocation5], 0  ;;  %s1365_s24 = smov [#allocation6]   ;;  %s1179_s28 = scalar_lea.hbm %s1566_s1, 4096 }
   0x5   :  { %s34_s25 = sshll.u32 %s1365_s24, 4  ;;  %p1180_p0 = scmp.ne.s32.totalorder %s1566_s1, %s1179_s28  ;;  %s35_s25 = int_to_ptr.vmem [resolvable:$true] %s34_s25 }
   0x6   :  { %p1183_p1 = scmp.lt.u32.totalorder %s1179_s28, %s1566_s1 }
   0x8   :  { %p1185_p2 = pnand %p1183_p1, %p1180_p0 }
   0xa   :  { %1188 = shalt.err (!%p1185_p2)
}
   0xb   :  { %s1189_s10 = scalar_lea.vmem %s35_s25, 4096  ;;  %p1194_p4 = scmp.lt.s32.totalorder %s35_s25, %s35_s25 }
   0xc   :  { %p1190_p3 = scmp.ne.s32.totalorder %s35_s25, %s1189_s10  ;;  %p1195_p5 = scmp.lt.s32.totalorder %s1189_s10, %s1189_s10 }
   0xe   :  { %p1196_p6 = por %p1195_p5, %p1194_p4 }
  0x10   :  { %p1197_p7 = pnand %p1196_p6, %p1190_p3 }
  0x12   :  { %1200 = shalt.err (!%p1197_p7)
}
  0x13   :  { %s1366_s11 = smov 256   ;;  %s1367_s12 = smov 16  }
  0x14   :  { %40 = dma.hbm_to_vmem [thread:$0]  %s1566_s1, 4096, %s35_s25, [#allocation7], %s1366_s11, %s1366_s11, %s1367_s12  }
  0x15   :  { %s1368_s15 = smov [#allocation9]   ;;  %s1369_s17 = smov [#allocation12]  }
  0x16   :  { %s56_s16 = sshll.u32 %s1368_s15, 4  ;;  %s79_s18 = sshll.u32 %s1369_s17, 4  ;;  %s57_s16 = int_to_ptr.vmem [resolvable:$true] %s56_s16  ;;  %s80_s18 = int_to_ptr.vmem [resolvable:$true] %s79_s18 }
  0x17   :  { %s1201_s21 = scalar_lea.hbm %s1568_s3, 4096 }
  0x18   :  { %p1202_p8 = scmp.ne.s32.totalorder %s1568_s3, %s1201_s21  ;;  %p1205_p9 = scmp.lt.u32.totalorder %s1201_s21, %s1568_s3 }
  0x1a   :  { %p1207_p10 = pnand %p1205_p9, %p1202_p8 }
  0x1c   :  { %1210 = shalt.err (!%p1207_p10)
}
  0x1d   :  { %s1211_s1 = scalar_lea.vmem %s57_s16, 4096  ;;  %p1216_p12 = scmp.lt.s32.totalorder %s57_s16, %s57_s16 }
  0x1e   :  { %p1212_p11 = scmp.ne.s32.totalorder %s57_s16, %s1211_s1  ;;  %p1217_p13 = scmp.lt.s32.totalorder %s1211_s1, %s1211_s1 }
  0x20   :  { %p1218_p0 = por %p1217_p13, %p1216_p12 }
  0x22   :  { %p1219_p1 = pnand %p1218_p0, %p1212_p11 }
  0x24   :  { %1222 = shalt.err (!%p1219_p1)
}
  0x25   :  { %s1370_s25 = smov 64   ;;  %s1371_s27 = smov 4  }
  0x26   :  { %62 = dma.hbm_to_vmem [thread:$0]  %s1568_s3, 4096, %s57_s16, [#allocation10], %s1370_s25, %s1370_s25, %s1371_s27  }
  0x27   :  { %s1223_s9 = scalar_lea.hbm %s1570_s5, 16 }
  0x28   :  { %p1224_p2 = scmp.ne.s32.totalorder %s1570_s5, %s1223_s9  ;;  %p1227_p3 = scmp.lt.u32.totalorder %s1223_s9, %s1570_s5 }
  0x2a   :  { %p1229_p4 = pnand %p1227_p3, %p1224_p2 }
  0x2c   :  { %1232 = shalt.err (!%p1229_p4)
}
  0x2d   :  { %s1233_s14 = scalar_lea.vmem %s80_s18, 16  ;;  %s1237_s15 = scalar_lea.vmem %s80_s18, 32 }
  0x2e   :  { %p1234_p5 = scmp.ne.s32.totalorder %s80_s18, %s1233_s14  ;;  %p1238_p6 = scmp.lt.s32.totalorder %s80_s18, %s80_s18 }
  0x2f   :  { %p1239_p7 = scmp.lt.s32.totalorder %s1237_s15, %s1233_s14 }
  0x31   :  { %p1240_p8 = por %p1239_p7, %p1238_p6 }
  0x33   :  { %p1241_p9 = pnand %p1240_p8, %p1234_p5 }
  0x35   :  { %1244 = shalt.err (!%p1241_p9)
}
  0x36   :  { %82 = dma.hbm_to_vmem [thread:$0]  %s1570_s5, 16, %s80_s18, [#allocation13]  }
  0x37   :  { %s1372_s17 = smov [#allocation3]   ;;  %s1373_s20 = smov [#allocation8]  }
  0x38   :  { %s22_s19 = sshll.u32 %s1372_s17, 4  ;;  %s47_s21 = sshll.u32 %s1373_s20, 4  ;;  %s23_s19 = int_to_ptr.vmem [resolvable:$true] %s22_s19  ;;  %s48_s21 = int_to_ptr.vmem [resolvable:$true] %s47_s21 }
  0x39   :  { %s1245_s24 = scalar_lea.hbm %s1565_s0, 128 }
  0x3a   :  { %p1246_p10 = scmp.ne.s32.totalorder %s1565_s0, %s1245_s24  ;;  %p1249_p11 = scmp.lt.u32.totalorder %s1245_s24, %s1565_s0 }
  0x3c   :  { %p1251_p12 = pnand %p1249_p11, %p1246_p10 }
  0x3e   :  { %1254 = shalt.err (!%p1251_p12)
}
  0x3f   :  { %s1255_s5 = scalar_lea.vmem %s23_s19, 128  ;;  %p1260_p0 = scmp.lt.s32.totalorder %s23_s19, %s23_s19 }
  0x40   :  { %p1256_p13 = scmp.ne.s32.totalorder %s23_s19, %s1255_s5  ;;  %p1261_p1 = scmp.lt.s32.totalorder %s1255_s5, %s1255_s5 }
  0x42   :  { %p1262_p2 = por %p1261_p1, %p1260_p0 }
  0x44   :  { %p1263_p3 = pnand %p1262_p2, %p1256_p13 }
  0x46   :  { %1266 = shalt.err (!%p1263_p3)
}
  0x47   :  { %28 = dma.hbm_to_vmem [thread:$0]  %s1565_s0, 128, %s23_s19, [#allocation4], %s1370_s25, %s1370_s25, %s1371_s27  }
  0x48   :  { %s1267_s10 = scalar_lea.hbm %s1567_s2, 64 }
  0x49   :  { %p1268_p4 = scmp.ne.s32.totalorder %s1567_s2, %s1267_s10  ;;  %p1271_p5 = scmp.lt.u32.totalorder %s1267_s10, %s1567_s2 }
  0x4b   :  { %p1273_p6 = pnand %p1271_p5, %p1268_p4 }
  0x4d   :  { %1276 = shalt.err (!%p1273_p6)
}
  0x4e   :  { %s1277_s15 = scalar_lea.vmem %s48_s21, 64  ;;  %p1282_p8 = scmp.lt.s32.totalorder %s48_s21, %s48_s21 }
  0x4f   :  { %p1278_p7 = scmp.ne.s32.totalorder %s48_s21, %s1277_s15  ;;  %p1283_p9 = scmp.lt.s32.totalorder %s1277_s15, %s1277_s15 }
  0x51   :  { %p1284_p10 = por %p1283_p9, %p1282_p8 }
  0x53   :  { %p1285_p11 = pnand %p1284_p10, %p1278_p7 }
  0x55   :  { %1288 = shalt.err (!%p1285_p11)
}
  0x56   :  { %50 = dma.hbm_to_vmem [thread:$0]  %s1567_s2, 64, %s48_s21, [#allocation7]  }
  0x57   :  { %s1374_s16 = smov [#allocation11]   ;;  %s1375_s19 = smov [#allocation14]  }
  0x58   :  { %s69_s17 = sshll.u32 %s1374_s16, 4  ;;  %s89_s20 = sshll.u32 %s1375_s19, 4  ;;  %s70_s17 = int_to_ptr.vmem [resolvable:$true] %s69_s17  ;;  %s90_s20 = int_to_ptr.vmem [resolvable:$true] %s89_s20 }
  0x59   :  { %s1289_s24 = scalar_lea.hbm %s1569_s4, 16 }
  0x5a   :  { %p1290_p12 = scmp.ne.s32.totalorder %s1569_s4, %s1289_s24  ;;  %p1293_p13 = scmp.lt.u32.totalorder %s1289_s24, %s1569_s4 }
  0x5c   :  { %p1295_p0 = pnand %p1293_p13, %p1290_p12 }
  0x5e   :  { %1298 = shalt.err (!%p1295_p0)
}
  0x5f   :  { %s1299_s2 = scalar_lea.vmem %s70_s17, 16  ;;  %s1303_s21 = scalar_lea.vmem %s70_s17, 32 }
  0x60   :  { %p1300_p1 = scmp.ne.s32.totalorder %s70_s17, %s1299_s2  ;;  %p1304_p2 = scmp.lt.s32.totalorder %s70_s17, %s70_s17 }
  0x61   :  { %p1305_p3 = scmp.lt.s32.totalorder %s1303_s21, %s1299_s2 }
  0x63   :  { %p1306_p4 = por %p1305_p3, %p1304_p2 }
  0x65   :  { %p1307_p5 = pnand %p1306_p4, %p1300_p1 }
  0x67   :  { %1310 = shalt.err (!%p1307_p5)
}
  0x68   :  { %72 = dma.hbm_to_vmem [thread:$0]  %s1569_s4, 16, %s70_s17, [#allocation10]  }
  0x69   :  { %s1311_s9 = scalar_lea.hbm %s1571_s6, 16 }
  0x6a   :  { %p1312_p6 = scmp.ne.s32.totalorder %s1571_s6, %s1311_s9  ;;  %p1315_p7 = scmp.lt.u32.totalorder %s1311_s9, %s1571_s6 }
  0x6c   :  { %p1317_p8 = pnand %p1315_p7, %p1312_p6 }
  0x6e   :  { %1320 = shalt.err (!%p1317_p8)
}
  0x6f   :  { %s1321_s14 = scalar_lea.vmem %s90_s20, 16  ;;  %s1325_s15 = scalar_lea.vmem %s90_s20, 32 }
  0x70   :  { %p1322_p9 = scmp.ne.s32.totalorder %s90_s20, %s1321_s14  ;;  %p1326_p10 = scmp.lt.s32.totalorder %s90_s20, %s90_s20 }
  0x71   :  { %p1327_p11 = scmp.lt.s32.totalorder %s1325_s15, %s1321_s14 }
  0x73   :  { %p1328_p12 = por %p1327_p11, %p1326_p10 }
  0x75   :  { %p1329_p13 = pnand %p1328_p12, %p1322_p9 }
  0x77   :  { %1332 = shalt.err (!%p1329_p13)
}
  0x78   :  { %92 = dma.hbm_to_vmem [thread:$0]  %s1571_s6, 16, %s90_s20, [#allocation13]  }
  0x79   :  { %1355 = dma.done.wait [#allocation4], 128  }
  0x7a   :  { %1356 = vsyncadd [#allocation4], 4294967168 }
  0x7b   :  { %1357 = dma.done.wait [#allocation7], 4160  }
  0x7c   :  { %1358 = vsyncadd [#allocation7], 4294963136 }
  0x7d   :  { %1359 = dma.done.wait [#allocation10], 4112  }
  0x7e   :  { %1360 = vsyncadd [#allocation10], 4294963184 }
  0x7f   :  { %1361 = dma.done.wait [#allocation13], 32  }
  0x80   :  { %1362 = vsyncadd [#allocation13], 4294967264  ;;  %v1376_v0 = vmov 0   ;;  %v1078_v1 = vld [vmem:[#allocation6 + $0x4] ss:$16 sps:$4 sm:$0xff]   ;;  %v1126_v33 = vld [vmem:[#allocation3] sm:$0xff]  }
  0x81   :  { %375 = vmatprep.mubr.bf16.mxu0 %v1376_v0  ;;  %418 = vmatprep.mubr.bf16.mxu1 %v1376_v0  ;;  %v1080_v2 = vld [vmem:[#allocation6 + $0xc] ss:$16 sps:$4 sm:$0xff]   ;;  %v1082_v3 = vld [vmem:[#allocation6] ss:$16 sps:$4 sm:$0xff]   ;;  %v1083_v4 = vld [vmem:[#allocation6 + $0x8] ss:$16 sps:$4 sm:$0xff]  }
  0x82   :  { %343 = vmatprep.subr.bf16.mxu0 %v1078_v1  ;;  %386 = vmatprep.subr.bf16.mxu1 %v1080_v2  ;;  %v1084_v5 = vld [vmem:[#allocation6 + $0x24] ss:$16 sps:$4 sm:$0xff]   ;;  %v1086_v6 = vld [vmem:[#allocation6 + $0x2c] ss:$16 sps:$4 sm:$0xff]   ;;  %v1088_v7 = vld [vmem:[#allocation6 + $0x20] ss:$16 sps:$4 sm:$0xff]   ;;  %v157_v2 = vlaneseq }
  0x83   :  { %344 = vmatpush1.bf16.msra.mxu0 %v1082_v3  ;;  %387 = vmatpush1.bf16.msra.mxu1 %v1083_v4  ;;  %v1089_v8 = vld [vmem:[#allocation6 + $0x28] ss:$16 sps:$4 sm:$0xff]   ;;  %v1090_v9 = vld [vmem:[#allocation6 + $0x44] ss:$16 sps:$4 sm:$0xff]   ;;  %v1092_v10 = vld [vmem:[#allocation6 + $0x4c] ss:$16 sps:$4 sm:$0xff]  }
  0x84   :  { %345 = vmatprep.subr.bf16.mxu0 %v1084_v5  ;;  %388 = vmatprep.subr.bf16.mxu1 %v1086_v6  ;;  %v1094_v11 = vld [vmem:[#allocation6 + $0x40] ss:$16 sps:$4 sm:$0xff]   ;;  %v1095_v12 = vld [vmem:[#allocation6 + $0x48] ss:$16 sps:$4 sm:$0xff]   ;;  %v1096_v13 = vld [vmem:[#allocation6 + $0x64] ss:$16 sps:$4 sm:$0xff]  }
  0x85   :  { %v1098_v14 = vld [vmem:[#allocation6 + $0x6c] ss:$16 sps:$4 sm:$0xff]   ;;  %v1100_v15 = vld [vmem:[#allocation6 + $0x60] ss:$16 sps:$4 sm:$0xff]   ;;  %v1101_v16 = vld [vmem:[#allocation6 + $0x68] ss:$16 sps:$4 sm:$0xff]  }
  0x86   :  { %v1102_v17 = vld [vmem:[#allocation6 + $0x84] ss:$16 sps:$4 sm:$0xff]   ;;  %v1104_v18 = vld [vmem:[#allocation6 + $0x8c] ss:$16 sps:$4 sm:$0xff]   ;;  %v1106_v19 = vld [vmem:[#allocation6 + $0x80] ss:$16 sps:$4 sm:$0xff]  }
  0x87   :  { %346 = vmatpush1.bf16.msra.mxu0 %v1088_v7  ;;  %389 = vmatpush1.bf16.msra.mxu1 %v1089_v8  ;;  %v1107_v20 = vld [vmem:[#allocation6 + $0x88] ss:$16 sps:$4 sm:$0xff]   ;;  %v1108_v21 = vld [vmem:[#allocation6 + $0xa4] ss:$16 sps:$4 sm:$0xff]   ;;  %v1110_v22 = vld [vmem:[#allocation6 + $0xac] ss:$16 sps:$4 sm:$0xff]  }
  0x88   :  { %347 = vmatprep.subr.bf16.mxu0 %v1090_v9  ;;  %390 = vmatprep.subr.bf16.mxu1 %v1092_v10  ;;  %v1112_v23 = vld [vmem:[#allocation6 + $0xa0] ss:$16 sps:$4 sm:$0xff]   ;;  %v1113_v24 = vld [vmem:[#allocation6 + $0xa8] ss:$16 sps:$4 sm:$0xff]   ;;  %v1114_v25 = vld [vmem:[#allocation6 + $0xc4] ss:$16 sps:$4 sm:$0xff]  }
  0x89   :  { %v1116_v26 = vld [vmem:[#allocation6 + $0xcc] ss:$16 sps:$4 sm:$0xff]   ;;  %v1118_v27 = vld [vmem:[#allocation6 + $0xc0] ss:$16 sps:$4 sm:$0xff]   ;;  %v1119_v28 = vld [vmem:[#allocation6 + $0xc8] ss:$16 sps:$4 sm:$0xff]  }
  0x8a   :  { %v1120_v29 = vld [vmem:[#allocation6 + $0xe4] ss:$16 sps:$4 sm:$0xff]   ;;  %v1122_v30 = vld [vmem:[#allocation6 + $0xec] ss:$16 sps:$4 sm:$0xff]   ;;  %v1124_v31 = vld [vmem:[#allocation6 + $0xe0] ss:$16 sps:$4 sm:$0xff]  }
  0x8b   :  { %348 = vmatpush1.bf16.msra.mxu0 %v1094_v11  ;;  %391 = vmatpush1.bf16.msra.mxu1 %v1095_v12  ;;  %v1125_v32 = vld [vmem:[#allocation6 + $0xe8] ss:$16 sps:$4 sm:$0xff]   ;;  %v1131_v38 = vld [vmem:[#allocation9 + $0x48] sm:$0xff]   ;;  %v1139_v46 = vld [vmem:[#allocation9 + $0x58] sm:$0xff]   ;;  %v158_v3 = vshrl.u32 %v157_v2, 7  ;;  %s1377_s6 = smov [#allocation15]  }
  0x8c   :  { %349 = vmatprep.subr.bf16.mxu0 %v1096_v13  ;;  %392 = vmatprep.subr.bf16.mxu1 %v1098_v14  ;;  %v1127_v34 = vld [vmem:[#allocation9 + $0x40] sm:$0xff]   ;;  %v1132_v39 = vld [vmem:[#allocation9 + $0xc8] sm:$0xff]   ;;  %v1135_v42 = vld [vmem:[#allocation9 + $0x50] sm:$0xff]   ;;  %s925_s3 = sshll.u32 %s1377_s6, 4  ;;  %s926_s3 = int_to_ptr.vmem [resolvable:$true] %s925_s3 }
  0x8d   :  { %v1128_v35 = vld [vmem:[#allocation9 + $0xc0] sm:$0xff]   ;;  %v1133_v40 = vld [vmem:[#allocation9 + $0x8] sm:$0xff]   ;;  %v1136_v43 = vld [vmem:[#allocation9 + $0xd0] sm:$0xff]   ;;  %v159_v4 = vsub.s32 0, %v158_v3  ;;  %v167_v5 = vsub.s32 2, %v158_v3  ;;  %v163_v7 = vsub.s32 1, %v158_v3  ;;  %p1338_p1 = scmp.lt.s32.totalorder %s926_s3, %s926_s3 }
  0x8e   :  { %v1129_v36 = vld [vmem:[#allocation9] sm:$0xff]   ;;  %v1134_v41 = vld [vmem:[#allocation9 + $0x88] sm:$0xff]   ;;  %v1137_v44 = vld [vmem:[#allocation9 + $0x10] sm:$0xff]   ;;  %v171_v8 = vsub.s32 3, %v158_v3  ;;  %s1333_s16 = scalar_lea.vmem %s926_s3, 128 }
  0x8f   :  { %350 = vmatpush1.bf16.msra.mxu0 %v1100_v15  ;;  %393 = vmatpush1.bf16.msra.mxu1 %v1101_v16  ;;  %v1130_v37 = vld [vmem:[#allocation9 + $0x80] sm:$0xff]   ;;  %v1138_v45 = vld [vmem:[#allocation9 + $0x90] sm:$0xff]   ;;  %v1140_v47 = vld [vmem:[#allocation9 + $0xd8] sm:$0xff]   ;;  %p1334_p0 = scmp.ne.s32.totalorder %s926_s3, %s1333_s16  ;;  %p1339_p2 = scmp.lt.s32.totalorder %s1333_s16, %s1333_s16 }
  0x90   :  { %351 = vmatprep.subr.bf16.mxu0 %v1102_v17  ;;  %394 = vmatprep.subr.bf16.mxu1 %v1104_v18  ;;  %v1141_v48 = vld [vmem:[#allocation9 + $0x18] sm:$0xff]   ;;  %v1143_v50 = vld [vmem:[#allocation9 + $0x60] sm:$0xff]   ;;  %v1147_v54 = vld [vmem:[#allocation9 + $0x68] sm:$0xff]  }
  0x91   :  { %v1142_v49 = vld [vmem:[#allocation9 + $0x98] sm:$0xff]   ;;  %v1144_v51 = vld [vmem:[#allocation9 + $0xe0] sm:$0xff]   ;;  %v1148_v55 = vld [vmem:[#allocation9 + $0xe8] sm:$0xff]   ;;  %p1340_p3 = por %p1339_p2, %p1338_p1 }
  0x92   :  { %v1145_v52 = vld [vmem:[#allocation9 + $0x20] sm:$0xff]   ;;  %v1149_v56 = vld [vmem:[#allocation9 + $0x28] sm:$0xff]   ;;  %v1151_v58 = vld [vmem:[#allocation9 + $0x70] sm:$0xff]  }
  0x93   :  { %352 = vmatpush1.bf16.msra.mxu0 %v1106_v19  ;;  %395 = vmatpush1.bf16.msra.mxu1 %v1107_v20  ;;  %v1146_v53 = vld [vmem:[#allocation9 + $0xa0] sm:$0xff]   ;;  %v1150_v57 = vld [vmem:[#allocation9 + $0xa8] sm:$0xff]   ;;  %v1152_v59 = vld [vmem:[#allocation9 + $0xf0] sm:$0xff]   ;;  %p1341_p4 = pnand %p1340_p3, %p1334_p0 }
  0x94   :  { %353 = vmatprep.subr.bf16.mxu0 %v1108_v21  ;;  %396 = vmatprep.subr.bf16.mxu1 %v1110_v22  ;;  %v1153_v60 = vld [vmem:[#allocation9 + $0x30] sm:$0xff]   ;;  %v1155_v62 = vld [vmem:[#allocation9 + $0x78] sm:$0xff]  }
  0x95   :  { %v1154_v61 = vld [vmem:[#allocation9 + $0xb0] sm:$0xff]   ;;  %v1156_v63 = vld [vmem:[#allocation9 + $0xf8] sm:$0xff]  }
  0x96   :  { %v1157_v0 = vld [vmem:[#allocation9 + $0x38] sm:$0xff]  }
  0x97   :  { %354 = vmatpush1.bf16.msra.mxu0 %v1112_v23  ;;  %397 = vmatpush1.bf16.msra.mxu1 %v1113_v24  ;;  %v1158_v1 = vld [vmem:[#allocation9 + $0xb8] sm:$0xff]  }
  0x98   :  { %355 = vmatprep.subr.bf16.mxu0 %v1114_v25  ;;  %398 = vmatprep.subr.bf16.mxu1 %v1116_v26  ;;  %v155_v6 = vld [vmem:[#allocation8] sm:$0xf] }
  0x99   :  { %v160_v9 = vrot.slane %v155_v6, %v159_v4  ;;  %v168_v10 = vrot.slane %v155_v6, %v167_v5  ;;  %v164_v11 = vrot.slane %v155_v6, %v163_v7  ;;  %v172_v12 = vrot.slane %v155_v6, %v171_v8 }
  0x9b   :  { %356 = vmatpush1.bf16.msra.mxu0 %v1118_v27  ;;  %399 = vmatpush1.bf16.msra.mxu1 %v1119_v28 }
  0x9c   :  { %357 = vmatprep.subr.bf16.mxu0 %v1120_v29  ;;  %400 = vmatprep.subr.bf16.mxu1 %v1122_v30 }
  0x9f   :  { %358 = vmatpush1.bf16.msra.mxu0 %v1124_v31  ;;  %401 = vmatpush1.bf16.msra.mxu1 %v1125_v32 }
  0xa0   :  { %1021 = vmatprep.subr.bf16.mxu0 %v1127_v34  ;;  %1043 = vmatprep.subr.bf16.mxu1 %v1128_v35 }
  0xa2   :  { %376 = vmatmul.mubr.bf16.vlgmr.msra.gmra.mrb[0].mxu0 %v1126_v33  ;;  %419 = vmatmul.mubr.bf16.vlgmr.msra.gmra.mrb[0].mxu1 %v1126_v33 }
  0xa3   :  { %1022 = vmatpush3.bf16.msra.mxu0 %v1129_v36  ;;  %1044 = vmatpush3.bf16.msra.mxu1 %v1130_v37 }
  0xa4   :  { %1023 = vmatprep.subr.bf16.mxu0 %v1131_v38  ;;  %1045 = vmatprep.subr.bf16.mxu1 %v1132_v39 }
  0xa7   :  { %1024 = vmatpush3.bf16.msra.mxu0 %v1133_v40  ;;  %1046 = vmatpush3.bf16.msra.mxu1 %v1134_v41 }
  0xa8   :  { %1025 = vmatprep.subr.bf16.mxu0 %v1135_v42  ;;  %1047 = vmatprep.subr.bf16.mxu1 %v1136_v43 }
  0xab   :  { %1026 = vmatpush3.bf16.msra.mxu0 %v1137_v44  ;;  %1048 = vmatpush3.bf16.msra.mxu1 %v1138_v45 }
  0xac   :  { %1027 = vmatprep.subr.bf16.mxu0 %v1139_v46  ;;  %1049 = vmatprep.subr.bf16.mxu1 %v1140_v47 }
  0xaf   :  { %1028 = vmatpush3.bf16.msra.mxu0 %v1141_v48  ;;  %1050 = vmatpush3.bf16.msra.mxu1 %v1142_v49 }
  0xb0   :  { %1029 = vmatprep.subr.bf16.mxu0 %v1143_v50  ;;  %1051 = vmatprep.subr.bf16.mxu1 %v1144_v51 }
  0xb3   :  { %1030 = vmatpush3.bf16.msra.mxu0 %v1145_v52  ;;  %1052 = vmatpush3.bf16.msra.mxu1 %v1146_v53 }
  0xb4   :  { %1031 = vmatprep.subr.bf16.mxu0 %v1147_v54  ;;  %1053 = vmatprep.subr.bf16.mxu1 %v1148_v55 }
  0xb7   :  { %1032 = vmatpush3.bf16.msra.mxu0 %v1149_v56  ;;  %1054 = vmatpush3.bf16.msra.mxu1 %v1150_v57 }
  0xb8   :  { %1033 = vmatprep.subr.bf16.mxu0 %v1151_v58  ;;  %1055 = vmatprep.subr.bf16.mxu1 %v1152_v59 }
  0xbb   :  { %1034 = vmatpush3.bf16.msra.mxu0 %v1153_v60  ;;  %1056 = vmatpush3.bf16.msra.mxu1 %v1154_v61 }
  0xbc   :  { %1035 = vmatprep.subr.bf16.mxu0 %v1155_v62  ;;  %1057 = vmatprep.subr.bf16.mxu1 %v1156_v63 }
  0xbf   :  { %1036 = vmatpush3.bf16.msra.mxu0 %v1157_v0  ;;  %1058 = vmatpush3.bf16.msra.mxu1 %v1158_v1 }
 0x175   :  { %v377_v13 = vpop.f32.mrb[0].mxu0  ;;  %v420_v14 = vpop.f32.mrb[0].mxu1 }
 0x176   :  { %v1508_v15 = vadd.f32 %v377_v13, %v160_v9  ;;  %v1510_v16 = vadd.f32 %v420_v14, %v168_v10  ;;  %v379_v17 = vpop.f32.mrb[1].mxu0  ;;  %v422_v18 = vpop.f32.mrb[1].mxu1 }
 0x177   :  { %v1512_v19 = vadd.f32 %v379_v17, %v164_v11  ;;  %v1514_v20 = vadd.f32 %v422_v18, %v172_v12  ;;  %v381_v21 = vpop.f32.mrb[2].mxu0  ;;  %v424_v22 = vpop.f32.mrb[2].mxu1 }
 0x178   :  { %v437_v23 = vmul.f32 0.044715, %v1508_v15  ;;  %v439_v24 = vmul.f32 0.044715, %v1510_v16  ;;  %v382_v25 = vadd.f32 %v381_v21, %v160_v9  ;;  %v425_v26 = vadd.f32 %v424_v22, %v168_v10  ;;  %v383_v27 = vpop.f32.mrb[3].mxu0  ;;  %v426_v28 = vpop.f32.mrb[3].mxu1 }
 0x179   :  { %v438_v29 = vmul.f32 0.044715, %v1512_v19  ;;  %v440_v30 = vmul.f32 0.044715, %v1514_v20  ;;  %v1520_v31 = vadd.f32 %v383_v27, %v164_v11  ;;  %v1522_v32 = vadd.f32 %v426_v28, %v172_v12 }
 0x17a   :  { %v445_v33 = vmul.f32 %v437_v23, %v1508_v15  ;;  %v447_v34 = vmul.f32 %v439_v24, %v1510_v16  ;;  %v441_v35 = vmul.f32 0.044715, %v382_v25  ;;  %v443_v36 = vmul.f32 0.044715, %v425_v26 }
 0x17b   :  { %v446_v37 = vmul.f32 %v438_v29, %v1512_v19  ;;  %v448_v38 = vmul.f32 %v440_v30, %v1514_v20  ;;  %v442_v39 = vmul.f32 0.044715, %v1520_v31  ;;  %v444_v40 = vmul.f32 0.044715, %v1522_v32 }
 0x17c   :  { %v453_v41 = vmul.f32 %v445_v33, %v1508_v15  ;;  %v455_v42 = vmul.f32 %v447_v34, %v1510_v16  ;;  %v449_v43 = vmul.f32 %v441_v35, %v382_v25  ;;  %v451_v44 = vmul.f32 %v443_v36, %v425_v26 }
 0x17d   :  { %v454_v45 = vmul.f32 %v446_v37, %v1512_v19  ;;  %v456_v46 = vmul.f32 %v448_v38, %v1514_v20  ;;  %v450_v47 = vmul.f32 %v442_v39, %v1520_v31  ;;  %v452_v48 = vmul.f32 %v444_v40, %v1522_v32 }
 0x17e   :  { %v461_v49 = vadd.f32 %v453_v41, %v1508_v15  ;;  %v463_v50 = vadd.f32 %v455_v42, %v1510_v16  ;;  %v457_v51 = vmul.f32 %v449_v43, %v382_v25  ;;  %v459_v52 = vmul.f32 %v451_v44, %v425_v26 }
 0x17f   :  { %v458_v53 = vmul.f32 %v450_v47, %v1520_v31  ;;  %v460_v54 = vmul.f32 %v452_v48, %v1522_v32  ;;  %v462_v59 = vadd.f32 %v454_v45, %v1512_v19  ;;  %v464_v63 = vadd.f32 %v456_v46, %v1514_v20  ;;  %v1013_v48 = vld [vmem:[#allocation3] sm:$0xff]  }
 0x180   :  { %v469_v55 = vmul.f32 0.7978846, %v461_v49  ;;  %v471_v56 = vmul.f32 0.7978846, %v463_v50  ;;  %v465_v57 = vadd.f32 %v457_v51, %v382_v25  ;;  %v467_v58 = vadd.f32 %v459_v52, %v425_v26 }
 0x181   :  { %v466_v60 = vadd.f32 %v458_v53, %v1520_v31  ;;  %v470_v0 = vmul.f32 0.7978846, %v462_v59  ;;  %v468_v2 = vadd.f32 %v460_v54, %v1522_v32  ;;  %v472_v3 = vmul.f32 0.7978846, %v464_v63  ;;  %v1005_v53 = vld [vmem:[#allocation11] ss:$0 sm:$0xff] }
 0x182   :  { %1159 = vtanh.f32 %v469_v55  ;;  %v473_v61 = vmul.f32 0.7978846, %v465_v57  ;;  %v475_v62 = vmul.f32 0.7978846, %v467_v58  ;;  %v429_v11 = vmul.f32 0.5, %v1508_v15 }
 0x183   :  { %1161 = vtanh.f32 %v471_v56  ;;  %v474_v1 = vmul.f32 0.7978846, %v466_v60  ;;  %v476_v4 = vmul.f32 0.7978846, %v468_v2  ;;  %v433_v12 = vmul.f32 0.5, %v382_v25 }
 0x184   :  { %1163 = vtanh.f32 %v473_v61  ;;  %v431_v17 = vmul.f32 0.5, %v1510_v16  ;;  %v435_v18 = vmul.f32 0.5, %v425_v26  ;;  %v430_v23 = vmul.f32 0.5, %v1512_v19 }
 0x185   :  { %1165 = vtanh.f32 %v475_v62  ;;  %v434_v30 = vmul.f32 0.5, %v1520_v31  ;;  %v432_v25 = vmul.f32 0.5, %v1514_v20  ;;  %v436_v36 = vmul.f32 0.5, %v1522_v32 }
 0x186   :  { %1167 = vtanh.f32 %v470_v0  ;;  %v1014_v56 = vunpack.c.l.bf16 %v1013_v48  ;;  %v1015_v61 = vunpack.c.h.bf16 %v1013_v48 }
 0x187   :  { %1169 = vtanh.f32 %v474_v1 }
 0x188   :  { %1171 = vtanh.f32 %v472_v3 }
 0x189   :  { %1173 = vtanh.f32 %v476_v4 }
 0x18c   :  { %v1160_v5 = vpop.eup %1159 }
 0x18d   :  { %v1162_v6 = vpop.eup %1161  ;;  %v485_v7 = vadd.f32 1.0, %v1160_v5 }
 0x18e   :  { %v1164_v8 = vpop.eup %1163  ;;  %v487_v9 = vadd.f32 1.0, %v1162_v6 }
 0x18f   :  { %v1166_v10 = vpop.eup %1165  ;;  %v489_v13 = vadd.f32 1.0, %v1164_v8  ;;  %v493_v27 = vmul.f32 %v485_v7, %v429_v11 }
 0x190   :  { %v1168_v14 = vpop.eup %1167  ;;  %v491_v21 = vadd.f32 1.0, %v1166_v10  ;;  %v495_v34 = vmul.f32 %v487_v9, %v431_v17  ;;  %v1006_v17 = vld [vmem:[#allocation12] ss:$0 sm:$0xff] }
 0x191   :  { %v1170_v22 = vpop.eup %1169  ;;  %v486_v24 = vadd.f32 1.0, %v1168_v14  ;;  %v497_v28 = vmul.f32 %v489_v13, %v433_v12 }
 0x192   :  { %v1172_v29 = vpop.eup %1171  ;;  %v490_v33 = vadd.f32 1.0, %v1170_v22  ;;  %v499_v35 = vmul.f32 %v491_v21, %v435_v18 }
 0x193   :  { %v1174_v15 = vpop.eup %1173  ;;  %v488_v16 = vadd.f32 1.0, %v1172_v29  ;;  %v503_v26 = vpack.c.bf16 %v497_v28, %v493_v27  ;;  %v494_v37 = vmul.f32 %v486_v24, %v430_v23  ;;  %v1007_v23 = vld [vmem:[#allocation14] ss:$0 sm:$0xff] }
 0x194   :  { %v498_v38 = vmul.f32 %v490_v33, %v434_v30  ;;  %v492_v39 = vadd.f32 1.0, %v1174_v15  ;;  %v505_v19 = vpack.c.bf16 %v499_v35, %v495_v34 }
 0x195   :  { %v496_v41 = vmul.f32 %v488_v16, %v432_v25 }
 0x196   :  { %v504_v40 = vpack.c.bf16 %v498_v38, %v494_v37  ;;  %v500_v42 = vmul.f32 %v492_v39, %v436_v36 }
 0x198   :  { %795 = vmatprep.mubr.bf16.mxu0 %v504_v40  ;;  %v506_v43 = vpack.c.bf16 %v500_v42, %v496_v41 }
 0x199   :  { %796 = vmatmul.mubr.bf16.vlgmr.msra.gmra.mrb[4].mxu0 %v503_v26 }
 0x19a   :  { %836 = vmatprep.mubr.bf16.mxu1 %v506_v43 }
 0x19b   :  { %837 = vmatmul.mubr.bf16.vlgmr.msra.gmra.mrb[4].mxu1 %v505_v19 }
 0x26c   :  { %v1037_v31 = vpop.f32.mrb[4].mxu0 }
 0x26d   :  { %v1038_v44 = vpop.f32.mrb[5].mxu0 }
 0x26e   :  { %v1059_v45 = vpop.f32.mrb[4].mxu1  ;;  %v1039_v20 = vadd.f32 %v1038_v44, %v1037_v31  ;;  %v1040_v46 = vpop.f32.mrb[6].mxu0 }
 0x26f   :  { %v1060_v32 = vpop.f32.mrb[5].mxu1  ;;  %v1041_v47 = vpop.f32.mrb[7].mxu0 }
 0x270   :  { %v1061_v49 = vadd.f32 %v1060_v32, %v1059_v45  ;;  %v1062_v50 = vpop.f32.mrb[6].mxu1  ;;  %v1042_v51 = vadd.f32 %v1041_v47, %v1040_v46 }
 0x271   :  { %v1063_v52 = vpop.f32.mrb[7].mxu1 }
 0x272   :  { %v839_v54 = vadd.f32 %v1061_v49, %v1039_v20  ;;  %v1064_v55 = vadd.f32 %v1063_v52, %v1062_v50 }
 0x274   :  { %v842_v57 = vadd.f32 %v1064_v55, %v1042_v51  ;;  %v861_v58 = vadd.f32 %v1005_v53, %v839_v54 }
 0x276   :  { %v867_v59 = vadd.f32 %v1014_v56, %v861_v58  ;;  %v862_v60 = vadd.f32 %v1005_v53, %v842_v57 }
 0x278   :  { %869 = vadd.xlane.f32.xlu0 %v867_v59  ;;  %v868_v62 = vadd.f32 %v1015_v61, %v862_v60 }
 0x27c   :  { %871 = vadd.xlane.f32.xlu0 %v868_v62 }
 0x305   :  { %v870_v63 = vpop.xlane.xlu0 %869 }
 0x306   :  { %v874_v0 = vmul.f32 0.0078125, %v870_v63 }
 0x308   :  { %v876_v1 = vsub.f32 %v867_v59, %v874_v0 }
 0x309   :  { %v872_v2 = vpop.xlane.xlu0 %871 }
 0x30a   :  { %v875_v3 = vmul.f32 0.0078125, %v872_v2  ;;  %v878_v4 = vmul.f32 %v876_v1, %v876_v1 }
 0x30c   :  { %v877_v5 = vsub.f32 %v868_v62, %v875_v3  ;;  %880 = vadd.xlane.f32.xlu1 %v878_v4 }
 0x30e   :  { %v879_v6 = vmul.f32 %v877_v5, %v877_v5 }
 0x310   :  { %882 = vadd.xlane.f32.xlu1 %v879_v6 }
 0x399   :  { %v881_v7 = vpop.xlane.xlu1 %880 }
 0x39a   :  { %v884_v8 = vmul.f32 0.0078125, %v881_v7 }
 0x39c   :  { %v886_v9 = vadd.f32 1e-12, %v884_v8 }
 0x39d   :  { %v883_v10 = vpop.xlane.xlu1 %882 }
 0x39e   :  { %1175 = vrsqrt.f32 %v886_v9  ;;  %v885_v11 = vmul.f32 0.0078125, %v883_v10 }
 0x3a0   :  { %v887_v12 = vadd.f32 1e-12, %v885_v11 }
 0x3a2   :  { %1177 = vrsqrt.f32 %v887_v12 }
 0x3a8   :  { %v1176_v13 = vpop.eup %1175 }
 0x3a9   :  { %v890_v14 = vmul.f32 %v1176_v13, %v876_v1 }
 0x3ab   :  { %v899_v22 = vmul.f32 %v1006_v17, %v890_v14 }
 0x3ac   :  { %v1178_v18 = vpop.eup %1177 }
 0x3ad   :  { %v891_v21 = vmul.f32 %v1178_v18, %v877_v5  ;;  %v908_v27 = vadd.f32 %v1007_v23, %v899_v22 }
 0x3af   :  { %v900_v24 = vmul.f32 %v1006_v17, %v891_v21 }
 0x3b1   :  { %v909_v28 = vadd.f32 %v1007_v23, %v900_v24 }
 0x3b3   :  { %v1019_v29 = vpack.c.bf16 %v909_v28, %v908_v27 }
 0x3b5   :  { %1020 = vst [vmem:[#allocation15] sm:$0xff] %v1019_v29  }
 0x3b6   :  { %1344 = shalt.err (!%p1341_p4)
}
 0x3b7   :  { %s1345_s20 = scalar_lea.hbm %s1572_s7, 128 }
 0x3b8   :  { %p1346_p5 = scmp.ne.s32.totalorder %s1572_s7, %s1345_s20  ;;  %p1349_p6 = scmp.lt.u32.totalorder %s1345_s20, %s1572_s7 }
 0x3ba   :  { %p1351_p7 = pnand %p1349_p6, %p1346_p5 }
 0x3bc   :  { %1354 = shalt.err (!%p1351_p7)
}
 0x3bd   :  { %931 = dma.vmem_to_hbm [thread:$0]  %s926_s3, 128, %s1572_s7, [#allocation5], %s1370_s25, %s1370_s25, %s1371_s27  }
 0x3be   :  { %1363 = dma.done.wait [#allocation5], 128  }
 0x3bf   :  { %1364 = vsyncadd [#allocation5], 4294967168 }
 0x3c0   :  { %935 = vsyncpa [#allocation4], 1 }
 0x3c1   :  { %936 = vsyncpa [#allocation7], 1 }
 0x3c2   :  { %937 = vsyncpa [#allocation10], 1 }
 0x3c3   :  { %938 = vsyncpa [#allocation13], 1 }
 0x3c4   :  { %939 = vsyncpa [#allocation5], 1 }

</bundles_post_ra>
